<compile_context>
chip_gen: v7x
topology: tpu7x:2x2x1
jax: 0.10.0
libtpu: 0.0.40
codegen_flags: <defaults>
</compile_context>

<pallas_src>
import itertools
import math
from functools import partial

import numpy as np
import jax
import jax.numpy as jnp
from jax import lax
from jax.experimental import pallas as pl
from jax.experimental.pallas import tpu as pltpu


# Activation / weight storage dtype (f32 accumulation everywhere).
DT = jnp.bfloat16
VMEM_LIMIT_BYTES = 64 * 1024 * 1024   # above the per-gen scoped defaults
TM_CAP = 512                          # row-tile cap sized for v7x (64 MiB VMEM)

_WEIGHT_SINGLE_BUFFER = False         # set by _probe_single_buffer() in __main__


# ----------------------------------------------------------------------------
# Small helpers
# ----------------------------------------------------------------------------
def _cparams(semantics):
    return pltpu.CompilerParams(dimension_semantics=semantics,
                                vmem_limit_bytes=VMEM_LIMIT_BYTES)


def _cspec(shape):
    """BlockSpec for a grid-invariant (weight/bias) input; single-buffered when
    pl.Buffered(1) is supported (halves its VMEM footprint)."""
    nd = len(shape)
    idx = lambda *args: (0,) * nd
    if _WEIGHT_SINGLE_BUFFER and hasattr(pl, "Buffered"):
        try:
            return pl.BlockSpec(shape, idx, pipeline_mode=pl.Buffered(1))
        except TypeError:
            pass
    return pl.BlockSpec(shape, idx)


def _probe_copy_kernel(x_ref, o_ref):
    o_ref[...] = x_ref[...]


def _probe_single_buffer():
    """Check (eagerly, outside any jit trace) that pipeline_mode=pl.Buffered(1)
    constructs, lowers and runs on this JAX/TPU; fall back cleanly if not."""
    if not hasattr(pl, "Buffered"):
        return False
    try:
        spec = pl.BlockSpec((8, 128), lambda i: (0, 0),
                            pipeline_mode=pl.Buffered(1))
        fn = pl.pallas_call(
            _probe_copy_kernel,
            out_shape=jax.ShapeDtypeStruct((8, 128), jnp.float32),
            grid=(1,),
            in_specs=[spec],
            out_specs=pl.BlockSpec((8, 128), lambda i: (0, 0)),
        )
        jax.block_until_ready(fn(jnp.zeros((8, 128), jnp.float32)))
        return True
    except Exception:
        return False


def _row_tiling(M, align, cap=TM_CAP):
    """(padded_M, TM): TM is a multiple of `align`, divides padded_M, capped."""
    Mp = -(-M // align) * align
    tm = max(align, min(cap, Mp))
    tm -= tm % align
    while Mp % tm:
        tm -= align
    return Mp, tm


def _pack_factor(M, dims, max_g=8):
    """Pixel-fold factor g so every dim*g is a multiple of 128 (lane-dense,
    unmasked loads/stores).  g must divide the pixel count M; 1 = no packing."""
    need = 1
    for c in dims:
        r = 128 // math.gcd(128, c)
        need = need * r // math.gcd(need, r)
    if need == 1 or need > max_g or M % need:
        return 1
    return need


# ----------------------------------------------------------------------------
# Pallas kernels
# ----------------------------------------------------------------------------
def ffn_kernel(x_ref, w1_ref, b1_ref, w2_ref, b2_ref, o_ref):
    """Fused ConvMlp + residual: out = x + pw2(relu(pw1(x))).
    The hidden activation never leaves VMEM; accumulation in f32."""
    x = x_ref[...]
    h = jnp.dot(x, w1_ref[...], preferred_element_type=jnp.float32) + b1_ref[...]
    h = jnp.maximum(h, 0.0).astype(w2_ref.dtype)
    y = jnp.dot(h, w2_ref[...], preferred_element_type=jnp.float32) + b2_ref[...]
    o_ref[...] = (y + x.astype(jnp.float32)).astype(o_ref.dtype)


def dw_kernel(x_ref, w_ref, b_ref, o_ref, xp_ref, *, K, pad, H, W, residual):
    """Depthwise KxK conv + folded BN (+ optional residual) on one NHWC image.
    The zero halo is built in a VMEM scratch (no wrapper-side jnp.pad HBM pass)."""
    xp_ref[...] = jnp.zeros(xp_ref.shape, xp_ref.dtype)
    xp_ref[:, pad:pad + H, pad:pad + W, :] = x_ref[...].astype(xp_ref.dtype)
    # TODO(synk): generate the kw shifts with pltpu.roll on the sublane axis to
    #             cut unaligned vector-load pressure (XLU slot is idle here).
    acc = jnp.zeros(o_ref.shape, jnp.float32)
    for kh in range(K):
        for kw in range(K):
            tap = w_ref[kh * K + kw:kh * K + kw + 1, :].astype(jnp.float32)  # (1, C)
            acc = acc + xp_ref[:, kh:kh + H, kw:kw + W, :] * tap
    acc = acc + b_ref[...]
    if residual:
        acc = acc + x_ref[...].astype(jnp.float32)
    o_ref[...] = acc.astype(o_ref.dtype)


def mixer_kernel(x_ref, qkvs_w_ref, qkvs_b_ref, dws_m_ref, dws_b_ref,
                 mix_m_ref, mix_b_ref, bias_ref, proj_w_ref, proj_b_ref,
                 o_ref, xf_ref, *, wr, nW, Cq):
    """One row-strip of windows per grid step.  For each wr x wr window the
    whole CascadedGroupAttention mixer (qkvs 1x1 -> dw-on-q / per-head dw-on-v
    as precomputed per-window linear maps -> softmax attention -> ReLU -> proj)
    plus the mixer residual runs entirely in VMEM."""
    qkvs_w = qkvs_w_ref[...]
    qkvs_b = qkvs_b_ref[...]
    dws_m = dws_m_ref[...].astype(jnp.float32)     # (N, N, Cq)
    dws_b = dws_b_ref[...]
    mix_m = mix_m_ref[...].astype(jnp.float32)     # (N, N, D)
    mix_b = mix_b_ref[...]
    bias = bias_ref[...]                           # (N, N)
    proj_w = proj_w_ref[...]
    proj_b = proj_b_ref[...]
    for w in range(nW):
        # gather this window's wr*wr pixels into an (N, C) scratch, row by row
        for j in range(wr):
            xf_ref[j * wr:(j + 1) * wr, :] = x_ref[0, j, w * wr:(w + 1) * wr, :]
        xw = xf_ref[...]                           # (N, C) activation dtype
        xf32 = xw.astype(jnp.float32)
        # qkvs: 1x1 ConvBN  C -> C//2; q = first Cq channels, k = next Cq
        feat = jnp.dot(xw, qkvs_w, preferred_element_type=jnp.float32) + qkvs_b
        # dws depthwise on q as a per-window linear map (BN + attn scale folded)
        q = jnp.sum(dws_m * feat[:, :Cq][None, :, :], axis=1) + dws_b   # (N, Cq)
        k = feat[:, Cq:2 * Cq]                                          # (N, Cq)
        # per-head "mix" value convs fused into one per-window map over all D
        v = jnp.sum(mix_m * xf32[None, :, :], axis=1) + mix_b           # (N, D)
        # attention; exact softmax divide (review correctness note)
        s = lax.dot_general(q, k, (((1,), (1,)), ((), ())),
                            preferred_element_type=jnp.float32) + bias
        s = s - jnp.max(s, axis=-1, keepdims=True)
        e = jnp.exp(s)
        attn = e / jnp.sum(e, axis=-1, keepdims=True)
        o = jnp.dot(attn, v, preferred_element_type=jnp.float32)        # (N, D)
        # proj: ReLU -> 1x1 ConvBN (D -> C), with the mixer residual fused in
        y = jnp.dot(jnp.maximum(o, 0.0).astype(proj_w.dtype), proj_w,
                    preferred_element_type=jnp.float32) + proj_b
        y = (y + xf32).astype(o_ref.dtype)
        for j in range(wr):
            o_ref[0, j, w * wr:(w + 1) * wr, :] = y[j * wr:(j + 1) * wr, :]


# ----------------------------------------------------------------------------
# Wrappers (reshapes / pallas_call plumbing; reshapes here are metadata-only)
# ----------------------------------------------------------------------------
def ffn(x, w1, b1, w2, b2):
    """x + pw2(relu(pw1(x))) in one pallas_call, gridded over row tiles."""
    B, H, Wd, C = x.shape
    hid = w1.shape[1]
    M = B * H * Wd
    x2 = x.reshape(M, C)
    # lane-dense packing: fold g pixels so channel dims become multiples of 128
    # (unmasked vld/vst); the weight becomes block-diagonal kron(I_g, W).
    g = _pack_factor(M, (C, hid))
    if g > 1:
        x2 = x2.reshape(M // g, g * C)
        eye = jnp.eye(g, dtype=w1.dtype)
        w1 = jnp.kron(eye, w1)
        w2 = jnp.kron(eye.astype(w2.dtype), w2)
        b1 = jnp.tile(b1, (1, g))
        b2 = jnp.tile(b2, (1, g))
    Mg, Cg = x2.shape
    Hg = w1.shape[1]
    align = 16 if x2.dtype == jnp.bfloat16 else 8
    Mp, TM = _row_tiling(Mg, align)
    if Mp != Mg:
        x2 = jnp.pad(x2, ((0, Mp - Mg), (0, 0)))
    out = pl.pallas_call(
        ffn_kernel,
        out_shape=jax.ShapeDtypeStruct((Mp, Cg), x2.dtype),
        grid=(Mp // TM,),
        in_specs=[pl.BlockSpec((TM, Cg), lambda i: (i, 0)),
                  _cspec(w1.shape), _cspec(b1.shape),
                  _cspec(w2.shape), _cspec(b2.shape)],
        out_specs=pl.BlockSpec((TM, Cg), lambda i: (i, 0)),
        compiler_params=_cparams(("parallel",)),
    )(x2, w1, b1, w2, b2)
    if Mp != Mg:
        out = out[:Mg]
    return out.reshape(B, H, Wd, C)


def depthwise(x, w, b, K, pad, residual=False):
    """Depthwise KxK ConvBN (+residual), gridded per batch image (parallel).
    TODO(synk): grid over (B x row-strips) with an overlapping-halo index_map
                to give v7x megacore >=4 steps when B is small."""
    B, H, W, C = x.shape
    return pl.pallas_call(
        partial(dw_kernel, K=K, pad=pad, H=H, W=W, residual=residual),
        out_shape=jax.ShapeDtypeStruct((B, H, W, C), x.dtype),
        grid=(B,),
        in_specs=[pl.BlockSpec((1, H, W, C), lambda bi: (bi, 0, 0, 0)),
                  _cspec((K * K, C)), _cspec((1, C))],
        out_specs=pl.BlockSpec((1, H, W, C), lambda bi: (bi, 0, 0, 0)),
        scratch_shapes=[pltpu.VMEM((1, H + 2 * pad, W + 2 * pad, C), jnp.float32)],
        compiler_params=_cparams(("parallel",)),
    )(x, w, b)


def local_window_attention(x, p, cfg):
    """x + LocalWindowAttention(x), fully fused into one pallas_call gridded
    over (batch, window-row); no HBM window (un)partition relayouts."""
    B, H, W, C = x.shape
    wr = min(cfg['window_resolution'], cfg['resolution'])
    pad_b = (wr - H % wr) % wr
    pad_r = (wr - W % wr) % wr
    xp = jnp.pad(x, ((0, 0), (0, pad_b), (0, pad_r), (0, 0))) if (pad_b or pad_r) else x
    pH, pW = H + pad_b, W + pad_r
    nH, nW = pH // wr, pW // wr
    N = wr * wr
    Cq = C // 4

    out = pl.pallas_call(
        partial(mixer_kernel, wr=wr, nW=nW, Cq=Cq),
        out_shape=jax.ShapeDtypeStruct((B, pH, pW, C), x.dtype),
        grid=(B, nH),
        in_specs=[pl.BlockSpec((1, wr, pW, C), lambda b, r: (b, r, 0, 0)),
                  _cspec(p['qkvs_w'].shape), _cspec(p['qkvs_b'].shape),
                  _cspec(p['dws_M'].shape), _cspec(p['dws_b'].shape),
                  _cspec(p['mix_M'].shape), _cspec(p['mix_b'].shape),
                  _cspec(p['attn_bias'].shape),
                  _cspec(p['proj_w'].shape), _cspec(p['proj_b'].shape)],
        out_specs=pl.BlockSpec((1, wr, pW, C), lambda b, r: (b, r, 0, 0)),
        scratch_shapes=[pltpu.VMEM((N, C), x.dtype)],
        compiler_params=_cparams(("parallel", "parallel")),
    )(xp, p['qkvs_w'], p['qkvs_b'], p['dws_M'], p['dws_b'],
      p['mix_M'], p['mix_b'], p['attn_bias'], p['proj_w'], p['proj_b'])
    if pad_b or pad_r:
        out = out[:, :H, :W, :]
    return out


def efficientvit_block(x, p, cfg):
    x = depthwise(x, p['dw0_w'], p['dw0_b'], 3, 1, residual=True)          # dw0
    x = ffn(x, p['ffn0_w1'], p['ffn0_b1'], p['ffn0_w2'], p['ffn0_b2'])      # ffn0
    x = local_window_attention(x, p, cfg)                                   # mixer
    x = depthwise(x, p['dw1_w'], p['dw1_b'], 3, 1, residual=True)          # dw1
    x = ffn(x, p['ffn1_w1'], p['ffn1_b1'], p['ffn1_w2'], p['ffn1_b2'])      # ffn1
    return x


def efficientvit_stage(x, params, cfg):
    # downsample = Identity (default downsample=('', 1), in_dim == out_dim)
    # TODO(synk): 'subsample' downsample path (PatchMerging + SELayer) not implemented.
    x = x.astype(DT)
    for bp in params['blocks']:
        x = efficientvit_block(x, bp, cfg)
    return x


# ----------------------------------------------------------------------------
# Deterministic parameter construction (shapes follow the PyTorch __init__)
# ----------------------------------------------------------------------------
def build_attention_bias_idxs(resolution):
    points = list(itertools.product(range(resolution), range(resolution)))
    N = len(points)
    offsets = {}
    idxs = []
    for p1 in points:
        for p2 in points:
            off = (abs(p1[0] - p2[0]), abs(p1[1] - p2[1]))
            if off not in offsets:
                offsets[off] = len(offsets)
            idxs.append(offsets[off])
    return np.asarray(idxs, np.int32).reshape(N, N), len(offsets)


def window_dw_matrix(w_taps, K, wr):
    """Per-window linear operator of a depthwise KxK conv with zero padding
    (K-1)//2:  M (N, N, C) with out[o, c] = sum_i M[o, i, c] * x[i, c]."""
    N = wr * wr
    pad = (K - 1) // 2
    sel = np.zeros((N, N, K * K), np.float32)
    for oh in range(wr):
        for ow in range(wr):
            o = oh * wr + ow
            for kh in range(K):
                for kw in range(K):
                    ih, iw = oh + kh - pad, ow + kw - pad
                    if 0 <= ih < wr and 0 <= iw < wr:
                        sel[o, ih * wr + iw, kh * K + kw] = 1.0
    return jnp.einsum('oit,tc->oic', jnp.asarray(sel), w_taps)


def init_block_params(key, cfg):
    dim = cfg['dim']
    num_heads = cfg['num_heads']
    kernels = cfg['kernels']
    d = cfg['attn_ratio'] * cfg['key_dim']
    hid = dim * 2
    wr = min(cfg['window_resolution'], cfg['resolution'])
    scale = cfg['key_dim'] ** (-0.5)
    Kmax = max(kernels)
    assert dim == num_heads * d, "split_out_channels[i] must equal d"
    assert all(kk % 2 == 1 for kk in kernels), "odd dw kernels expected"

    kit = iter(jax.random.split(key, 64))

    def rnd(shape, s=0.2):
        return jax.random.normal(next(kit), shape, jnp.float32) * s

    def bn_fold(cout):
        # eval-mode BN with running_mean=0, running_var=1, eps=1e-5
        gamma = 1.0 + rnd((cout,), 0.2)
        beta = rnd((cout,), 0.1)
        return gamma / jnp.sqrt(1.0 + 1e-5), beta

    def pw_convbn(cin, cout):
        w = rnd((cin, cout))
        s, b = bn_fold(cout)
        return (w * s[None, :]).astype(DT), b.reshape(1, cout)

    def dw_convbn(c, K):
        w = rnd((K * K, c))
        s, b = bn_fold(c)
        return w * s[None, :], b.reshape(1, c)        # f32; callers cast taps

    p = {}
    w0, b0 = dw_convbn(dim, 3)
    p['dw0_w'], p['dw0_b'] = w0.astype(DT), b0
    p['ffn0_w1'], p['ffn0_b1'] = pw_convbn(dim, hid)
    p['ffn0_w2'], p['ffn0_b2'] = pw_convbn(hid, dim)

    # --- CascadedGroupAttention (fused mixer) parameters ---
    p['qkvs_w'], p['qkvs_b'] = pw_convbn(dim, dim // 2)
    # dws: depthwise ConvBN on q; attention q-scale folded in; expressed as a
    # per-window (N, N, Cq) linear operator.
    dws_w, dws_b = dw_convbn(dim // 4, Kmax)
    p['dws_M'] = window_dw_matrix(dws_w * scale, Kmax, wr).astype(DT)
    p['dws_b'] = dws_b * scale
    # mix: per-head plain depthwise Conv2d (with bias) on the matching channel
    # chunk of x; fused into a single per-window (N, N, D) operator.
    mcols, bcols = [], []
    for h in range(num_heads):
        K = kernels[h]
        mcols.append(window_dw_matrix(rnd((K * K, d)), K, wr))
        bcols.append(rnd((d,), 0.1))
    p['mix_M'] = jnp.concatenate(mcols, axis=2).astype(DT)
    p['mix_b'] = jnp.concatenate(bcols).reshape(1, num_heads * d)

    p['proj_w'], p['proj_b'] = pw_convbn(d * num_heads, dim)
    idxs, n_off = build_attention_bias_idxs(wr)
    attn_biases = rnd((num_heads, n_off), 0.1)
    # the reference forward uses attn_bias[0] only (mmpretrain mixvit behaviour)
    p['attn_bias'] = attn_biases[0][jnp.asarray(idxs)]

    w1, b1 = dw_convbn(dim, 3)
    p['dw1_w'], p['dw1_b'] = w1.astype(DT), b1
    p['ffn1_w1'], p['ffn1_b1'] = pw_convbn(dim, hid)
    p['ffn1_w2'], p['ffn1_b2'] = pw_convbn(hid, dim)
    return p


def init_stage_params(key, cfg):
    keys = jax.random.split(key, cfg['depth'])
    return {'blocks': [init_block_params(k, cfg) for k in keys]}


# ----------------------------------------------------------------------------
if __name__ == "__main__":
    # dim = num_heads * attn_ratio * key_dim  (required by the reference assert)
    cfg = dict(dim=16, key_dim=4, num_heads=2, attn_ratio=2,
               resolution=8, window_resolution=4, kernels=(5, 5), depth=1)

    # probe Buffered(1) support eagerly (outside jit) so _cspec can use it
    _WEIGHT_SINGLE_BUFFER = _probe_single_buffer()

    key = jax.random.PRNGKey(0)
    kx, kp = jax.random.split(key)
    B = 2
    # layout: NHWC input (equivalent PyTorch NCHW input would be (2, 16, 8, 8))
    x = jax.random.normal(kx, (B, cfg['resolution'], cfg['resolution'], cfg['dim']),
                          jnp.float32)
    params = init_stage_params(kp, cfg)

    fwd = jax.jit(partial(efficientvit_stage, cfg=cfg))
    y = jax.block_until_ready(fwd(x, params))

    assert y.shape == x.shape, (y.shape, x.shape)
    assert bool(jnp.all(jnp.isfinite(y.astype(jnp.float32))))
    print("KERNEL_OK")
</pallas_src>

<mosaic_0001>
module attributes {stable_mosaic.version = 11 : i64} {
  func.func @_probe_copy_kernel(%arg0: i32, %arg1: memref<8x128xf32, #tpu.memory_space<vmem>>, %arg2: memref<8x128xf32, #tpu.memory_space<vmem>>) attributes {dimension_semantics = [#tpu.dimension_semantics<arbitrary>], iteration_bounds = array<i64: 1>, scalar_prefetch = 0 : i64, scratch_operands = 0 : i64, tpu.core_type = #tpu.core_type<tc>, window_params = [{pipeline_mode = #tpu.pipeline_mode<synchronous>, transform_indices = @transform_0, window_bounds = array<i64: 8, 128>}, {pipeline_mode = #tpu.pipeline_mode<synchronous>, transform_indices = @transform_1, window_bounds = array<i64: 8, 128>}]} {
    %c0 = arith.constant 0 : index
    %c0_0 = arith.constant 0 : index
    %0 = vector.load %arg1[%c0, %c0_0] : memref<8x128xf32, #tpu.memory_space<vmem>>, vector<8x128xf32>
    %c0_1 = arith.constant 0 : index
    %c0_2 = arith.constant 0 : index
    %1 = vector.load %arg2[%c0_1, %c0_2] : memref<8x128xf32, #tpu.memory_space<vmem>>, vector<8x128xf32>
    tpu.vector_store %arg2[%c0_1, %c0_2], %0 {strides = array<i32>} : memref<8x128xf32, #tpu.memory_space<vmem>>, vector<8x128xf32>,
    return
  }
  func.func @transform_0(%arg0: i32) -> (i32, i32) {
    %c0_i32 = arith.constant 0 : i32
    %c0_i32_0 = arith.constant 0 : i32
    %c0_i32_1 = arith.constant 0 : i32
    return %c0_i32, %c0_i32_0 : i32, i32
  }
  func.func @transform_1(%arg0: i32) -> (i32, i32) {
    %c0_i32 = arith.constant 0 : i32
    %c0_i32_0 = arith.constant 0 : i32
    %c0_i32_1 = arith.constant 0 : i32
    return %c0_i32, %c0_i32_0 : i32, i32
  }
}

module attributes {stable_mosaic.version = 11 : i64} {
  func.func @dw_kernel(%arg0: i32, %arg1: memref<1x8x8x16xbf16, #tpu.memory_space<vmem>>, %arg2: memref<9x16xbf16, #tpu.memory_space<vmem>>, %arg3: memref<1x16xf32, #tpu.memory_space<vmem>>, %arg4: memref<1x8x8x16xbf16, #tpu.memory_space<vmem>>, %arg5: memref<1x10x10x16xf32, #tpu.memory_space<vmem>>) attributes {dimension_semantics = [#tpu.dimension_semantics<parallel>], iteration_bounds = array<i64: 2>, scalar_prefetch = 0 : i64, scratch_operands = 1 : i64, tpu.core_type = #tpu.core_type<tc>, window_params = [{transform_indices = @transform_0, window_bounds = array<i64: 1, 8, 8, 16>}, {pipeline_mode = #tpu.pipeline_mode<synchronous>, transform_indices = @transform_1, window_bounds = array<i64: 9, 16>}, {pipeline_mode = #tpu.pipeline_mode<synchronous>, transform_indices = @transform_2, window_bounds = array<i64: 1, 16>}, {transform_indices = @transform_3, window_bounds = array<i64: 1, 8, 8, 16>}]} {
    %cst = arith.constant 0.000000e+00 : f32
    %0 = vector.broadcast %cst : f32 to vector<1x10x10x16xf32>
    %c0 = arith.constant 0 : index
    %c0_0 = arith.constant 0 : index
    %c0_1 = arith.constant 0 : index
    %c0_2 = arith.constant 0 : index
    %1 = vector.load %arg5[%c0, %c0_0, %c0_1, %c0_2] : memref<1x10x10x16xf32, #tpu.memory_space<vmem>>, vector<1x10x10x16xf32>
    tpu.vector_store %arg5[%c0, %c0_0, %c0_1, %c0_2], %0 {strides = array<i32>} : memref<1x10x10x16xf32, #tpu.memory_space<vmem>>, vector<1x10x10x16xf32>,
    %c0_3 = arith.constant 0 : index
    %c0_4 = arith.constant 0 : index
    %c0_5 = arith.constant 0 : index
    %c0_6 = arith.constant 0 : index
    %2 = vector.load %arg1[%c0_3, %c0_4, %c0_5, %c0_6] : memref<1x8x8x16xbf16, #tpu.memory_space<vmem>>, vector<1x8x8x16xbf16>
    %3 = arith.extf %2 : vector<1x8x8x16xbf16> to vector<1x8x8x16xf32>
    %c0_7 = arith.constant 0 : index
    %c1 = arith.constant 1 : index
    %c1_8 = arith.constant 1 : index
    %c0_9 = arith.constant 0 : index
    %4 = vector.load %arg5[%c0_7, %c1, %c1_8, %c0_9] : memref<1x10x10x16xf32, #tpu.memory_space<vmem>>, vector<1x8x8x16xf32>
    tpu.vector_store %arg5[%c0_7, %c1, %c1_8, %c0_9], %3 {strides = array<i32>} : memref<1x10x10x16xf32, #tpu.memory_space<vmem>>, vector<1x8x8x16xf32>,
    %cst_10 = arith.constant 0.000000e+00 : f32
    %5 = vector.broadcast %cst_10 : f32 to vector<1x8x8x16xf32>
    %c0_11 = arith.constant 0 : index
    %c0_12 = arith.constant 0 : index
    %6 = vector.load %arg2[%c0_11, %c0_12] : memref<9x16xbf16, #tpu.memory_space<vmem>>, vector<1x16xbf16>
    %7 = arith.extf %6 : vector<1x16xbf16> to vector<1x16xf32>
    %c0_13 = arith.constant 0 : index
    %c0_14 = arith.constant 0 : index
    %c0_15 = arith.constant 0 : index
    %c0_16 = arith.constant 0 : index
    %8 = vector.load %arg5[%c0_13, %c0_14, %c0_15, %c0_16] : memref<1x10x10x16xf32, #tpu.memory_space<vmem>>, vector<1x8x8x16xf32>
    %9 = vector.shape_cast %7 : vector<1x16xf32> to vector<1x1x1x16xf32>
    %10 = vector.broadcast %9 : vector<1x1x1x16xf32> to vector<1x8x8x16xf32>
    %11 = arith.mulf %8, %10 : vector<1x8x8x16xf32>
    %12 = arith.addf %5, %11 : vector<1x8x8x16xf32>
    %c1_17 = arith.constant 1 : index
    %c0_18 = arith.constant 0 : index
    %13 = vector.load %arg2[%c1_17, %c0_18] : memref<9x16xbf16, #tpu.memory_space<vmem>>, vector<1x16xbf16>
    %14 = arith.extf %13 : vector<1x16xbf16> to vector<1x16xf32>
    %c0_19 = arith.constant 0 : index
    %c0_20 = arith.constant 0 : index
    %c1_21 = arith.constant 1 : index
    %c0_22 = arith.constant 0 : index
    %15 = vector.load %arg5[%c0_19, %c0_20, %c1_21, %c0_22] : memref<1x10x10x16xf32, #tpu.memory_space<vmem>>, vector<1x8x8x16xf32>
    %16 = vector.shape_cast %14 : vector<1x16xf32> to vector<1x1x1x16xf32>
    %17 = vector.broadcast %16 : vector<1x1x1x16xf32> to vector<1x8x8x16xf32>
    %18 = arith.mulf %15, %17 : vector<1x8x8x16xf32>
    %19 = arith.addf %12, %18 : vector<1x8x8x16xf32>
    %c2 = arith.constant 2 : index
    %c0_23 = arith.constant 0 : index
    %20 = vector.load %arg2[%c2, %c0_23] : memref<9x16xbf16, #tpu.memory_space<vmem>>, vector<1x16xbf16>
    %21 = arith.extf %20 : vector<1x16xbf16> to vector<1x16xf32>
    %c0_24 = arith.constant 0 : index
    %c0_25 = arith.constant 0 : index
    %c2_26 = arith.constant 2 : index
    %c0_27 = arith.constant 0 : index
    %22 = vector.load %arg5[%c0_24, %c0_25, %c2_26, %c0_27] : memref<1x10x10x16xf32, #tpu.memory_space<vmem>>, vector<1x8x8x16xf32>
    %23 = vector.shape_cast %21 : vector<1x16xf32> to vector<1x1x1x16xf32>
    %24 = vector.broadcast %23 : vector<1x1x1x16xf32> to vector<1x8x8x16xf32>
    %25 = arith.mulf %22, %24 : vector<1x8x8x16xf32>
    %26 = arith.addf %19, %25 : vector<1x8x8x16xf32>
    %c3 = arith.constant 3 : index
    %c0_28 = arith.constant 0 : index
    %27 = vector.load %arg2[%c3, %c0_28] : memref<9x16xbf16, #tpu.memory_space<vmem>>, vector<1x16xbf16>
    %28 = arith.extf %27 : vector<1x16xbf16> to vector<1x16xf32>
    %c0_29 = arith.constant 0 : index
    %c1_30 = arith.constant 1 : index
    %c0_31 = arith.constant 0 : index
    %c0_32 = arith.constant 0 : index
    %29 = vector.load %arg5[%c0_29, %c1_30, %c0_31, %c0_32] : memref<1x10x10x16xf32, #tpu.memory_space<vmem>>, vector<1x8x8x16xf32>
    %30 = vector.shape_cast %28 : vector<1x16xf32> to vector<1x1x1x16xf32>
    %31 = vector.broadcast %30 : vector<1x1x1x16xf32> to vector<1x8x8x16xf32>
    %32 = arith.mulf %29, %31 : vector<1x8x8x16xf32>
    %33 = arith.addf %26, %32 : vector<1x8x8x16xf32>
    %c4 = arith.constant 4 : index
    %c0_33 = arith.constant 0 : index
    %34 = vector.load %arg2[%c4, %c0_33] : memref<9x16xbf16, #tpu.memory_space<vmem>>, vector<1x16xbf16>
    %35 = arith.extf %34 : vector<1x16xbf16> to vector<1x16xf32>
    %c0_34 = arith.constant 0 : index
    %c1_35 = arith.constant 1 : index
    %c1_36 = arith.constant 1 : index
    %c0_37 = arith.constant 0 : index
    %36 = vector.load %arg5[%c0_34, %c1_35, %c1_36, %c0_37] : memref<1x10x10x16xf32, #tpu.memory_space<vmem>>, vector<1x8x8x16xf32>
    %37 = vector.shape_cast %35 : vector<1x16xf32> to vector<1x1x1x16xf32>
    %38 = vector.broadcast %37 : vector<1x1x1x16xf32> to vector<1x8x8x16xf32>
    %39 = arith.mulf %36, %38 : vector<1x8x8x16xf32>
    %40 = arith.addf %33, %39 : vector<1x8x8x16xf32>
    %c5 = arith.constant 5 : index
    %c0_38 = arith.constant 0 : index
    %41 = vector.load %arg2[%c5, %c0_38] : memref<9x16xbf16, #tpu.memory_space<vmem>>, vector<1x16xbf16>
    %42 = arith.extf %41 : vector<1x16xbf16> to vector<1x16xf32>
    %c0_39 = arith.constant 0 : index
    %c1_40 = arith.constant 1 : index
    %c2_41 = arith.constant 2 : index
    %c0_42 = arith.constant 0 : index
    %43 = vector.load %arg5[%c0_39, %c1_40, %c2_41, %c0_42] : memref<1x10x10x16xf32, #tpu.memory_space<vmem>>, vector<1x8x8x16xf32>
    %44 = vector.shape_cast %42 : vector<1x16xf32> to vector<1x1x1x16xf32>
    %45 = vector.broadcast %44 : vector<1x1x1x16xf32> to vector<1x8x8x16xf32>
    %46 = arith.mulf %43, %45 : vector<1x8x8x16xf32>
    %47 = arith.addf %40, %46 : vector<1x8x8x16xf32>
    %c6 = arith.constant 6 : index
    %c0_43 = arith.constant 0 : index
    %48 = vector.load %arg2[%c6, %c0_43] : memref<9x16xbf16, #tpu.memory_space<vmem>>, vector<1x16xbf16>
    %49 = arith.extf %48 : vector<1x16xbf16> to vector<1x16xf32>
    %c0_44 = arith.constant 0 : index
    %c2_45 = arith.constant 2 : index
    %c0_46 = arith.constant 0 : index
    %c0_47 = arith.constant 0 : index
    %50 = vector.load %arg5[%c0_44, %c2_45, %c0_46, %c0_47] : memref<1x10x10x16xf32, #tpu.memory_space<vmem>>, vector<1x8x8x16xf32>
    %51 = vector.shape_cast %49 : vector<1x16xf32> to vector<1x1x1x16xf32>
    %52 = vector.broadcast %51 : vector<1x1x1x16xf32> to vector<1x8x8x16xf32>
    %53 = arith.mulf %50, %52 : vector<1x8x8x16xf32>
    %54 = arith.addf %47, %53 : vector<1x8x8x16xf32>
    %c7 = arith.constant 7 : index
    %c0_48 = arith.constant 0 : index
    %55 = vector.load %arg2[%c7, %c0_48] : memref<9x16xbf16, #tpu.memory_space<vmem>>, vector<1x16xbf16>
    %56 = arith.extf %55 : vector<1x16xbf16> to vector<1x16xf32>
    %c0_49 = arith.constant 0 : index
    %c2_50 = arith.constant 2 : index
    %c1_51 = arith.constant 1 : index
    %c0_52 = arith.constant 0 : index
    %57 = vector.load %arg5[%c0_49, %c2_50, %c1_51, %c0_52] : memref<1x10x10x16xf32, #tpu.memory_space<vmem>>, vector<1x8x8x16xf32>
    %58 = vector.shape_cast %56 : vector<1x16xf32> to vector<1x1x1x16xf32>
    %59 = vector.broadcast %58 : vector<1x1x1x16xf32> to vector<1x8x8x16xf32>
    %60 = arith.mulf %57, %59 : vector<1x8x8x16xf32>
    %61 = arith.addf %54, %60 : vector<1x8x8x16xf32>
    %c8 = arith.constant 8 : index
    %c0_53 = arith.constant 0 : index
    %62 = vector.load %arg2[%c8, %c0_53] : memref<9x16xbf16, #tpu.memory_space<vmem>>, vector<1x16xbf16>
    %63 = arith.extf %62 : vector<1x16xbf16> to vector<1x16xf32>
    %c0_54 = arith.constant 0 : index
    %c2_55 = arith.constant 2 : index
    %c2_56 = arith.constant 2 : index
    %c0_57 = arith.constant 0 : index
    %64 = vector.load %arg5[%c0_54, %c2_55, %c2_56, %c0_57] : memref<1x10x10x16xf32, #tpu.memory_space<vmem>>, vector<1x8x8x16xf32>
    %65 = vector.shape_cast %63 : vector<1x16xf32> to vector<1x1x1x16xf32>
    %66 = vector.broadcast %65 : vector<1x1x1x16xf32> to vector<1x8x8x16xf32>
    %67 = arith.mulf %64, %66 : vector<1x8x8x16xf32>
    %68 = arith.addf %61, %67 : vector<1x8x8x16xf32>
    %c0_58 = arith.constant 0 : index
    %c0_59 = arith.constant 0 : index
    %69 = vector.load %arg3[%c0_58, %c0_59] : memref<1x16xf32, #tpu.memory_space<vmem>>, vector<1x16xf32>
    %70 = vector.shape_cast %69 : vector<1x16xf32> to vector<1x1x1x16xf32>
    %71 = vector.broadcast %70 : vector<1x1x1x16xf32> to vector<1x8x8x16xf32>
    %72 = arith.addf %68, %71 : vector<1x8x8x16xf32>
    %c0_60 = arith.constant 0 : index
    %c0_61 = arith.constant 0 : index
    %c0_62 = arith.constant 0 : index
    %c0_63 = arith.constant 0 : index
    %73 = vector.load %arg1[%c0_60, %c0_61, %c0_62, %c0_63] : memref<1x8x8x16xbf16, #tpu.memory_space<vmem>>, vector<1x8x8x16xbf16>
    %74 = arith.extf %73 : vector<1x8x8x16xbf16> to vector<1x8x8x16xf32>
    %75 = arith.addf %72, %74 : vector<1x8x8x16xf32>
    %76 = arith.truncf %75 : vector<1x8x8x16xf32> to vector<1x8x8x16xbf16>
    %c0_64 = arith.constant 0 : index
    %c0_65 = arith.constant 0 : index
    %c0_66 = arith.constant 0 : index
    %c0_67 = arith.constant 0 : index
    %77 = vector.load %arg4[%c0_64, %c0_65, %c0_66, %c0_67] : memref<1x8x8x16xbf16, #tpu.memory_space<vmem>>, vector<1x8x8x16xbf16>
    tpu.vector_store %arg4[%c0_64, %c0_65, %c0_66, %c0_67], %76 {strides = array<i32>} : memref<1x8x8x16xbf16, #tpu.memory_space<vmem>>, vector<1x8x8x16xbf16>,
    return
  }
  func.func @transform_0(%arg0: i32) -> (i32, i32, i32, i32) {
    %c0_i32 = arith.constant 0 : i32
    %c0_i32_0 = arith.constant 0 : i32
    %c0_i32_1 = arith.constant 0 : i32
    %c0_i32_2 = arith.constant 0 : i32
    return %arg0, %c0_i32, %c0_i32_0, %c0_i32_1 : i32, i32, i32, i32
  }
  func.func @transform_1(%arg0: i32) -> (i32, i32) {
    %c0_i32 = arith.constant 0 : i32
    %c0_i32_0 = arith.constant 0 : i32
    %c0_i32_1 = arith.constant 0 : i32
    return %c0_i32, %c0_i32_0 : i32, i32
  }
  func.func @transform_2(%arg0: i32) -> (i32, i32) {
    %c0_i32 = arith.constant 0 : i32
    %c0_i32_0 = arith.constant 0 : i32
    %c0_i32_1 = arith.constant 0 : i32
    return %c0_i32, %c0_i32_0 : i32, i32
  }
  func.func @transform_3(%arg0: i32) -> (i32, i32, i32, i32) {
    %c0_i32 = arith.constant 0 : i32
    %c0_i32_0 = arith.constant 0 : i32
    %c0_i32_1 = arith.constant 0 : i32
    %c0_i32_2 = arith.constant 0 : i32
    return %arg0, %c0_i32, %c0_i32_0, %c0_i32_1 : i32, i32, i32, i32
  }
}

module attributes {stable_mosaic.version = 11 : i64} {
  func.func @ffn_kernel(%arg0: i32, %arg1: memref<16x128xbf16, #tpu.memory_space<vmem>>, %arg2: memref<128x256xbf16, #tpu.memory_space<vmem>>, %arg3: memref<1x256xf32, #tpu.memory_space<vmem>>, %arg4: memref<256x128xbf16, #tpu.memory_space<vmem>>, %arg5: memref<1x128xf32, #tpu.memory_space<vmem>>, %arg6: memref<16x128xbf16, #tpu.memory_space<vmem>>) attributes {dimension_semantics = [#tpu.dimension_semantics<parallel>], iteration_bounds = array<i64: 1>, scalar_prefetch = 0 : i64, scratch_operands = 0 : i64, tpu.core_type = #tpu.core_type<tc>, window_params = [{transform_indices = @transform_0, window_bounds = array<i64: 16, 128>}, {pipeline_mode = #tpu.pipeline_mode<synchronous>, transform_indices = @transform_1, window_bounds = array<i64: 128, 256>}, {pipeline_mode = #tpu.pipeline_mode<synchronous>, transform_indices = @transform_2, window_bounds = array<i64: 1, 256>}, {pipeline_mode = #tpu.pipeline_mode<synchronous>, transform_indices = @transform_3, window_bounds = array<i64: 256, 128>}, {pipeline_mode = #tpu.pipeline_mode<synchronous>, transform_indices = @transform_4, window_bounds = array<i64: 1, 128>}, {transform_indices = @transform_5, window_bounds = array<i64: 16, 128>}]} {
    %c0 = arith.constant 0 : index
    %c0_0 = arith.constant 0 : index
    %0 = vector.load %arg1[%c0, %c0_0] : memref<16x128xbf16, #tpu.memory_space<vmem>>, vector<16x128xbf16>
    %c0_1 = arith.constant 0 : index
    %c0_2 = arith.constant 0 : index
    %1 = vector.load %arg2[%c0_1, %c0_2] : memref<128x256xbf16, #tpu.memory_space<vmem>>, vector<128x256xbf16>
    %cst = arith.constant dense<0.000000e+00> : vector<16x256xf32>
    %2 = tpu.matmul %0, %1, %cst {dimension_numbers = #tpu.dot_dimension_numbers<[1], [0], [0], [1], [0, 0, 1, 1], [], []>} : vector<16x128xbf16>, vector<128x256xbf16>, vector<16x256xf32> -> vector<16x256xf32>
    %c0_3 = arith.constant 0 : index
    %c0_4 = arith.constant 0 : index
    %3 = vector.load %arg3[%c0_3, %c0_4] : memref<1x256xf32, #tpu.memory_space<vmem>>, vector<1x256xf32>
    %4 = vector.broadcast %3 : vector<1x256xf32> to vector<16x256xf32>
    %5 = arith.addf %2, %4 : vector<16x256xf32>
    %cst_5 = arith.constant 0.000000e+00 : f32
    %6 = vector.broadcast %cst_5 : f32 to vector<16x256xf32>
    %7 = arith.maximumf %5, %6 : vector<16x256xf32>
    %8 = arith.truncf %7 : vector<16x256xf32> to vector<16x256xbf16>
    %c0_6 = arith.constant 0 : index
    %c0_7 = arith.constant 0 : index
    %9 = vector.load %arg4[%c0_6, %c0_7] : memref<256x128xbf16, #tpu.memory_space<vmem>>, vector<256x128xbf16>
    %cst_8 = arith.constant dense<0.000000e+00> : vector<16x128xf32>
    %10 = tpu.matmul %8, %9, %cst_8 {dimension_numbers = #tpu.dot_dimension_numbers<[1], [0], [0], [1], [0, 0, 1, 1], [], []>} : vector<16x256xbf16>, vector<256x128xbf16>, vector<16x128xf32> -> vector<16x128xf32>
    %c0_9 = arith.constant 0 : index
    %c0_10 = arith.constant 0 : index
    %11 = vector.load %arg5[%c0_9, %c0_10] : memref<1x128xf32, #tpu.memory_space<vmem>>, vector<1x128xf32>
    %12 = vector.broadcast %11 : vector<1x128xf32> to vector<16x128xf32>
    %13 = arith.addf %10, %12 : vector<16x128xf32>
    %14 = arith.extf %0 : vector<16x128xbf16> to vector<16x128xf32>
    %15 = arith.addf %13, %14 : vector<16x128xf32>
    %16 = arith.truncf %15 : vector<16x128xf32> to vector<16x128xbf16>
    %c0_11 = arith.constant 0 : index
    %c0_12 = arith.constant 0 : index
    %17 = vector.load %arg6[%c0_11, %c0_12] : memref<16x128xbf16, #tpu.memory_space<vmem>>, vector<16x128xbf16>
    tpu.vector_store %arg6[%c0_11, %c0_12], %16 {strides = array<i32>} : memref<16x128xbf16, #tpu.memory_space<vmem>>, vector<16x128xbf16>,
    return
  }
  func.func @transform_0(%arg0: i32) -> (i32, i32) {
    %c0_i32 = arith.constant 0 : i32
    %c0_i32_0 = arith.constant 0 : i32
    return %arg0, %c0_i32 : i32, i32
  }
  func.func @transform_1(%arg0: i32) -> (i32, i32) {
    %c0_i32 = arith.constant 0 : i32
    %c0_i32_0 = arith.constant 0 : i32
    %c0_i32_1 = arith.constant 0 : i32
    return %c0_i32, %c0_i32_0 : i32, i32
  }
  func.func @transform_2(%arg0: i32) -> (i32, i32) {
    %c0_i32 = arith.constant 0 : i32
    %c0_i32_0 = arith.constant 0 : i32
    %c0_i32_1 = arith.constant 0 : i32
    return %c0_i32, %c0_i32_0 : i32, i32
  }
  func.func @transform_3(%arg0: i32) -> (i32, i32) {
    %c0_i32 = arith.constant 0 : i32
    %c0_i32_0 = arith.constant 0 : i32
    %c0_i32_1 = arith.constant 0 : i32
    return %c0_i32, %c0_i32_0 : i32, i32
  }
  func.func @transform_4(%arg0: i32) -> (i32, i32) {
    %c0_i32 = arith.constant 0 : i32
    %c0_i32_0 = arith.constant 0 : i32
    %c0_i32_1 = arith.constant 0 : i32
    return %c0_i32, %c0_i32_0 : i32, i32
  }
  func.func @transform_5(%arg0: i32) -> (i32, i32) {
    %c0_i32 = arith.constant 0 : i32
    %c0_i32_0 = arith.constant 0 : i32
    return %arg0, %c0_i32 : i32, i32
  }
}

module attributes {stable_mosaic.version = 11 : i64} {
  func.func @mixer_kernel(%arg0: i32, %arg1: i32, %arg2: memref<1x4x8x16xbf16, #tpu.memory_space<vmem>>, %arg3: memref<16x8xbf16, #tpu.memory_space<vmem>>, %arg4: memref<1x8xf32, #tpu.memory_space<vmem>>, %arg5: memref<16x16x4xbf16, #tpu.memory_space<vmem>>, %arg6: memref<1x4xf32, #tpu.memory_space<vmem>>, %arg7: memref<16x16x16xbf16, #tpu.memory_space<vmem>>, %arg8: memref<1x16xf32, #tpu.memory_space<vmem>>, %arg9: memref<16x16xf32, #tpu.memory_space<vmem>>, %arg10: memref<16x16xbf16, #tpu.memory_space<vmem>>, %arg11: memref<1x16xf32, #tpu.memory_space<vmem>>, %arg12: memref<1x4x8x16xbf16, #tpu.memory_space<vmem>>, %arg13: memref<16x16xbf16, #tpu.memory_space<vmem>>) attributes {dimension_semantics = [#tpu.dimension_semantics<parallel>, #tpu.dimension_semantics<parallel>], iteration_bounds = array<i64: 2, 2>, scalar_prefetch = 0 : i64, scratch_operands = 1 : i64, tpu.core_type = #tpu.core_type<tc>, window_params = [{transform_indices = @transform_0, window_bounds = array<i64: 1, 4, 8, 16>}, {pipeline_mode = #tpu.pipeline_mode<synchronous>, transform_indices = @transform_1, window_bounds = array<i64: 16, 8>}, {pipeline_mode = #tpu.pipeline_mode<synchronous>, transform_indices = @transform_2, window_bounds = array<i64: 1, 8>}, {pipeline_mode = #tpu.pipeline_mode<synchronous>, transform_indices = @transform_3, window_bounds = array<i64: 16, 16, 4>}, {pipeline_mode = #tpu.pipeline_mode<synchronous>, transform_indices = @transform_4, window_bounds = array<i64: 1, 4>}, {pipeline_mode = #tpu.pipeline_mode<synchronous>, transform_indices = @transform_5, window_bounds = array<i64: 16, 16, 16>}, {pipeline_mode = #tpu.pipeline_mode<synchronous>, transform_indices = @transform_6, window_bounds = array<i64: 1, 16>}, {pipeline_mode = #tpu.pipeline_mode<synchronous>, transform_indices = @transform_7, window_bounds = array<i64: 16, 16>}, {pipeline_mode = #tpu.pipeline_mode<synchronous>, transform_indices = @transform_8, window_bounds = array<i64: 16, 16>}, {pipeline_mode = #tpu.pipeline_mode<synchronous>, transform_indices = @transform_9, window_bounds = array<i64: 1, 16>}, {transform_indices = @transform_10, window_bounds = array<i64: 1, 4, 8, 16>}]} {
    %c0 = arith.constant 0 : index
    %c0_0 = arith.constant 0 : index
    %0 = vector.load %arg3[%c0, %c0_0] : memref<16x8xbf16, #tpu.memory_space<vmem>>, vector<16x8xbf16>
    %c0_1 = arith.constant 0 : index
    %c0_2 = arith.constant 0 : index
    %1 = vector.load %arg4[%c0_1, %c0_2] : memref<1x8xf32, #tpu.memory_space<vmem>>, vector<1x8xf32>
    %c0_3 = arith.constant 0 : index
    %c0_4 = arith.constant 0 : index
    %c0_5 = arith.constant 0 : index
    %2 = vector.load %arg5[%c0_3, %c0_4, %c0_5] : memref<16x16x4xbf16, #tpu.memory_space<vmem>>, vector<16x16x4xbf16>
    %3 = arith.extf %2 : vector<16x16x4xbf16> to vector<16x16x4xf32>
    %c0_6 = arith.constant 0 : index
    %c0_7 = arith.constant 0 : index
    %4 = vector.load %arg6[%c0_6, %c0_7] : memref<1x4xf32, #tpu.memory_space<vmem>>, vector<1x4xf32>
    %c0_8 = arith.constant 0 : index
    %c0_9 = arith.constant 0 : index
    %c0_10 = arith.constant 0 : index
    %5 = vector.load %arg7[%c0_8, %c0_9, %c0_10] : memref<16x16x16xbf16, #tpu.memory_space<vmem>>, vector<16x16x16xbf16>
    %6 = arith.extf %5 : vector<16x16x16xbf16> to vector<16x16x16xf32>
    %c0_11 = arith.constant 0 : index
    %c0_12 = arith.constant 0 : index
    %7 = vector.load %arg8[%c0_11, %c0_12] : memref<1x16xf32, #tpu.memory_space<vmem>>, vector<1x16xf32>
    %c0_13 = arith.constant 0 : index
    %c0_14 = arith.constant 0 : index
    %8 = vector.load %arg9[%c0_13, %c0_14] : memref<16x16xf32, #tpu.memory_space<vmem>>, vector<16x16xf32>
    %c0_15 = arith.constant 0 : index
    %c0_16 = arith.constant 0 : index
    %9 = vector.load %arg10[%c0_15, %c0_16] : memref<16x16xbf16, #tpu.memory_space<vmem>>, vector<16x16xbf16>
    %c0_17 = arith.constant 0 : index
    %c0_18 = arith.constant 0 : index
    %10 = vector.load %arg11[%c0_17, %c0_18] : memref<1x16xf32, #tpu.memory_space<vmem>>, vector<1x16xf32>
    %c0_19 = arith.constant 0 : index
    %c0_20 = arith.constant 0 : index
    %c0_21 = arith.constant 0 : index
    %c0_22 = arith.constant 0 : index
    %11 = vector.load %arg2[%c0_19, %c0_20, %c0_21, %c0_22] : memref<1x4x8x16xbf16, #tpu.memory_space<vmem>>, vector<1x1x4x16xbf16>
    %12 = vector.shape_cast %11 : vector<1x1x4x16xbf16> to vector<4x16xbf16>
    %c0_23 = arith.constant 0 : index
    %c0_24 = arith.constant 0 : index
    %13 = vector.load %arg13[%c0_23, %c0_24] : memref<16x16xbf16, #tpu.memory_space<vmem>>, vector<4x16xbf16>
    tpu.vector_store %arg13[%c0_23, %c0_24], %12 {strides = array<i32>} : memref<16x16xbf16, #tpu.memory_space<vmem>>, vector<4x16xbf16>,
    %c0_25 = arith.constant 0 : index
    %c1 = arith.constant 1 : index
    %c0_26 = arith.constant 0 : index
    %c0_27 = arith.constant 0 : index
    %14 = vector.load %arg2[%c0_25, %c1, %c0_26, %c0_27] : memref<1x4x8x16xbf16, #tpu.memory_space<vmem>>, vector<1x1x4x16xbf16>
    %15 = vector.shape_cast %14 : vector<1x1x4x16xbf16> to vector<4x16xbf16>
    %c4 = arith.constant 4 : index
    %c0_28 = arith.constant 0 : index
    %16 = vector.load %arg13[%c4, %c0_28] : memref<16x16xbf16, #tpu.memory_space<vmem>>, vector<4x16xbf16>
    tpu.vector_store %arg13[%c4, %c0_28], %15 {strides = array<i32>} : memref<16x16xbf16, #tpu.memory_space<vmem>>, vector<4x16xbf16>,
    %c0_29 = arith.constant 0 : index
    %c2 = arith.constant 2 : index
    %c0_30 = arith.constant 0 : index
    %c0_31 = arith.constant 0 : index
    %17 = vector.load %arg2[%c0_29, %c2, %c0_30, %c0_31] : memref<1x4x8x16xbf16, #tpu.memory_space<vmem>>, vector<1x1x4x16xbf16>
    %18 = vector.shape_cast %17 : vector<1x1x4x16xbf16> to vector<4x16xbf16>
    %c8 = arith.constant 8 : index
    %c0_32 = arith.constant 0 : index
    %19 = vector.load %arg13[%c8, %c0_32] : memref<16x16xbf16, #tpu.memory_space<vmem>>, vector<4x16xbf16>
    tpu.vector_store %arg13[%c8, %c0_32], %18 {strides = array<i32>} : memref<16x16xbf16, #tpu.memory_space<vmem>>, vector<4x16xbf16>,
    %c0_33 = arith.constant 0 : index
    %c3 = arith.constant 3 : index
    %c0_34 = arith.constant 0 : index
    %c0_35 = arith.constant 0 : index
    %20 = vector.load %arg2[%c0_33, %c3, %c0_34, %c0_35] : memref<1x4x8x16xbf16, #tpu.memory_space<vmem>>, vector<1x1x4x16xbf16>
    %21 = vector.shape_cast %20 : vector<1x1x4x16xbf16> to vector<4x16xbf16>
    %c12 = arith.constant 12 : index
    %c0_36 = arith.constant 0 : index
    %22 = vector.load %arg13[%c12, %c0_36] : memref<16x16xbf16, #tpu.memory_space<vmem>>, vector<4x16xbf16>
    tpu.vector_store %arg13[%c12, %c0_36], %21 {strides = array<i32>} : memref<16x16xbf16, #tpu.memory_space<vmem>>, vector<4x16xbf16>,
    %c0_37 = arith.constant 0 : index
    %c0_38 = arith.constant 0 : index
    %23 = vector.load %arg13[%c0_37, %c0_38] : memref<16x16xbf16, #tpu.memory_space<vmem>>, vector<16x16xbf16>
    %24 = arith.extf %23 : vector<16x16xbf16> to vector<16x16xf32>
    %cst = arith.constant dense<0.000000e+00> : vector<16x8xf32>
    %25 = tpu.matmul %23, %0, %cst {dimension_numbers = #tpu.dot_dimension_numbers<[1], [0], [0], [1], [0, 0, 1, 1], [], []>} : vector<16x16xbf16>, vector<16x8xbf16>, vector<16x8xf32> -> vector<16x8xf32>
    %26 = vector.broadcast %1 : vector<1x8xf32> to vector<16x8xf32>
    %27 = arith.addf %25, %26 : vector<16x8xf32>
    %28 = vector.extract_strided_slice %27 {offsets = [0, 0], sizes = [16, 4], strides = [1, 1]} : vector<16x8xf32> to vector<16x4xf32>
    %29 = vector.shape_cast %28 : vector<16x4xf32> to vector<1x16x4xf32>
    %30 = vector.broadcast %29 : vector<1x16x4xf32> to vector<16x16x4xf32>
    %31 = arith.mulf %3, %30 : vector<16x16x4xf32>
    %cst_39 = arith.constant dense<0.000000e+00> : vector<16x4xf32>
    %32 = vector.multi_reduction <add>, %31, %cst_39 [1] : vector<16x16x4xf32> to vector<16x4xf32>
    %33 = vector.broadcast %4 : vector<1x4xf32> to vector<16x4xf32>
    %34 = arith.addf %32, %33 : vector<16x4xf32>
    %35 = vector.extract_strided_slice %27 {offsets = [0, 4], sizes = [16, 4], strides = [1, 1]} : vector<16x8xf32> to vector<16x4xf32>
    %36 = vector.shape_cast %24 : vector<16x16xf32> to vector<1x16x16xf32>
    %37 = vector.broadcast %36 : vector<1x16x16xf32> to vector<16x16x16xf32>
    %38 = arith.mulf %6, %37 : vector<16x16x16xf32>
    %cst_40 = arith.constant dense<0.000000e+00> : vector<16x16xf32>
    %39 = vector.multi_reduction <add>, %38, %cst_40 [1] : vector<16x16x16xf32> to vector<16x16xf32>
    %40 = vector.broadcast %7 : vector<1x16xf32> to vector<16x16xf32>
    %41 = arith.addf %39, %40 : vector<16x16xf32>
    %cst_41 = arith.constant dense<0.000000e+00> : vector<16x16xf32>
    %42 = tpu.matmul %34, %35, %cst_41 {dimension_numbers = #tpu.dot_dimension_numbers<[1], [1], [0], [0], [0, 0, 1, 0], [], []>} : vector<16x4xf32>, vector<16x4xf32>, vector<16x16xf32> -> vector<16x16xf32>
    %43 = arith.addf %42, %8 : vector<16x16xf32>
    %cst_42 = arith.constant dense<0xFF800000> : vector<16xf32>
    %44 = vector.multi_reduction <maximumf>, %43, %cst_42 [1] : vector<16x16xf32> to vector<16xf32>
    %45 = vector.shape_cast %44 : vector<16xf32> to vector<16x1xf32>
    %46 = vector.broadcast %45 : vector<16x1xf32> to vector<16x16xf32>
    %47 = arith.subf %43, %46 : vector<16x16xf32>
    %48 = math.exp %47 : vector<16x16xf32>
    %cst_43 = arith.constant dense<0.000000e+00> : vector<16xf32>
    %49 = vector.multi_reduction <add>, %48, %cst_43 [1] : vector<16x16xf32> to vector<16xf32>
    %50 = vector.shape_cast %49 : vector<16xf32> to vector<16x1xf32>
    %51 = vector.broadcast %50 : vector<16x1xf32> to vector<16x16xf32>
    %52 = arith.divf %48, %51 : vector<16x16xf32>
    %cst_44 = arith.constant dense<0.000000e+00> : vector<16x16xf32>
    %53 = tpu.matmul %52, %41, %cst_44 {dimension_numbers = #tpu.dot_dimension_numbers<[1], [0], [0], [1], [0, 0, 1, 1], [], []>} : vector<16x16xf32>, vector<16x16xf32>, vector<16x16xf32> -> vector<16x16xf32>
    %cst_45 = arith.constant 0.000000e+00 : f32
    %54 = vector.broadcast %cst_45 : f32 to vector<16x16xf32>
    %55 = arith.maximumf %53, %54 : vector<16x16xf32>
    %56 = arith.truncf %55 : vector<16x16xf32> to vector<16x16xbf16>
    %cst_46 = arith.constant dense<0.000000e+00> : vector<16x16xf32>
    %57 = tpu.matmul %56, %9, %cst_46 {dimension_numbers = #tpu.dot_dimension_numbers<[1], [0], [0], [1], [0, 0, 1, 1], [], []>} : vector<16x16xbf16>, vector<16x16xbf16>, vector<16x16xf32> -> vector<16x16xf32>
    %58 = vector.broadcast %10 : vector<1x16xf32> to vector<16x16xf32>
    %59 = arith.addf %57, %58 : vector<16x16xf32>
    %60 = arith.addf %59, %24 : vector<16x16xf32>
    %61 = arith.truncf %60 : vector<16x16xf32> to vector<16x16xbf16>
    %62 = vector.extract_strided_slice %61 {offsets = [0, 0], sizes = [4, 16], strides = [1, 1]} : vector<16x16xbf16> to vector<4x16xbf16>
    %c0_47 = arith.constant 0 : index
    %c0_48 = arith.constant 0 : index
    %c0_49 = arith.constant 0 : index
    %c0_50 = arith.constant 0 : index
    %63 = vector.load %arg12[%c0_47, %c0_48, %c0_49, %c0_50] : memref<1x4x8x16xbf16, #tpu.memory_space<vmem>>, vector<1x1x4x16xbf16>
    %64 = vector.shape_cast %63 : vector<1x1x4x16xbf16> to vector<4x16xbf16>
    %65 = vector.shape_cast %62 : vector<4x16xbf16> to vector<1x1x4x16xbf16>
    tpu.vector_store %arg12[%c0_47, %c0_48, %c0_49, %c0_50], %65 {strides = array<i32>} : memref<1x4x8x16xbf16, #tpu.memory_space<vmem>>, vector<1x1x4x16xbf16>,
    %66 = vector.extract_strided_slice %61 {offsets = [4, 0], sizes = [4, 16], strides = [1, 1]} : vector<16x16xbf16> to vector<4x16xbf16>
    %c0_51 = arith.constant 0 : index
    %c1_52 = arith.constant 1 : index
    %c0_53 = arith.constant 0 : index
    %c0_54 = arith.constant 0 : index
    %67 = vector.load %arg12[%c0_51, %c1_52, %c0_53, %c0_54] : memref<1x4x8x16xbf16, #tpu.memory_space<vmem>>, vector<1x1x4x16xbf16>
    %68 = vector.shape_cast %67 : vector<1x1x4x16xbf16> to vector<4x16xbf16>
    %69 = vector.shape_cast %66 : vector<4x16xbf16> to vector<1x1x4x16xbf16>
    tpu.vector_store %arg12[%c0_51, %c1_52, %c0_53, %c0_54], %69 {strides = array<i32>} : memref<1x4x8x16xbf16, #tpu.memory_space<vmem>>, vector<1x1x4x16xbf16>,
    %70 = vector.extract_strided_slice %61 {offsets = [8, 0], sizes = [4, 16], strides = [1, 1]} : vector<16x16xbf16> to vector<4x16xbf16>
    %c0_55 = arith.constant 0 : index
    %c2_56 = arith.constant 2 : index
    %c0_57 = arith.constant 0 : index
    %c0_58 = arith.constant 0 : index
    %71 = vector.load %arg12[%c0_55, %c2_56, %c0_57, %c0_58] : memref<1x4x8x16xbf16, #tpu.memory_space<vmem>>, vector<1x1x4x16xbf16>
    %72 = vector.shape_cast %71 : vector<1x1x4x16xbf16> to vector<4x16xbf16>
    %73 = vector.shape_cast %70 : vector<4x16xbf16> to vector<1x1x4x16xbf16>
    tpu.vector_store %arg12[%c0_55, %c2_56, %c0_57, %c0_58], %73 {strides = array<i32>} : memref<1x4x8x16xbf16, #tpu.memory_space<vmem>>, vector<1x1x4x16xbf16>,
    %74 = vector.extract_strided_slice %61 {offsets = [12, 0], sizes = [4, 16], strides = [1, 1]} : vector<16x16xbf16> to vector<4x16xbf16>
    %c0_59 = arith.constant 0 : index
    %c3_60 = arith.constant 3 : index
    %c0_61 = arith.constant 0 : index
    %c0_62 = arith.constant 0 : index
    %75 = vector.load %arg12[%c0_59, %c3_60, %c0_61, %c0_62] : memref<1x4x8x16xbf16, #tpu.memory_space<vmem>>, vector<1x1x4x16xbf16>
    %76 = vector.shape_cast %75 : vector<1x1x4x16xbf16> to vector<4x16xbf16>
    %77 = vector.shape_cast %74 : vector<4x16xbf16> to vector<1x1x4x16xbf16>
    tpu.vector_store %arg12[%c0_59, %c3_60, %c0_61, %c0_62], %77 {strides = array<i32>} : memref<1x4x8x16xbf16, #tpu.memory_space<vmem>>, vector<1x1x4x16xbf16>,
    %c0_63 = arith.constant 0 : index
    %c0_64 = arith.constant 0 : index
    %c4_65 = arith.constant 4 : index
    %c0_66 = arith.constant 0 : index
    %78 = vector.load %arg2[%c0_63, %c0_64, %c4_65, %c0_66] : memref<1x4x8x16xbf16, #tpu.memory_space<vmem>>, vector<1x1x4x16xbf16>
    %79 = vector.shape_cast %78 : vector<1x1x4x16xbf16> to vector<4x16xbf16>
    %c0_67 = arith.constant 0 : index
    %c0_68 = arith.constant 0 : index
    %80 = vector.load %arg13[%c0_67, %c0_68] : memref<16x16xbf16, #tpu.memory_space<vmem>>, vector<4x16xbf16>
    tpu.vector_store %arg13[%c0_67, %c0_68], %79 {strides = array<i32>} : memref<16x16xbf16, #tpu.memory_space<vmem>>, vector<4x16xbf16>,
    %c0_69 = arith.constant 0 : index
    %c1_70 = arith.constant 1 : index
    %c4_71 = arith.constant 4 : index
    %c0_72 = arith.constant 0 : index
    %81 = vector.load %arg2[%c0_69, %c1_70, %c4_71, %c0_72] : memref<1x4x8x16xbf16, #tpu.memory_space<vmem>>, vector<1x1x4x16xbf16>
    %82 = vector.shape_cast %81 : vector<1x1x4x16xbf16> to vector<4x16xbf16>
    %c4_73 = arith.constant 4 : index
    %c0_74 = arith.constant 0 : index
    %83 = vector.load %arg13[%c4_73, %c0_74] : memref<16x16xbf16, #tpu.memory_space<vmem>>, vector<4x16xbf16>
    tpu.vector_store %arg13[%c4_73, %c0_74], %82 {strides = array<i32>} : memref<16x16xbf16, #tpu.memory_space<vmem>>, vector<4x16xbf16>,
    %c0_75 = arith.constant 0 : index
    %c2_76 = arith.constant 2 : index
    %c4_77 = arith.constant 4 : index
    %c0_78 = arith.constant 0 : index
    %84 = vector.load %arg2[%c0_75, %c2_76, %c4_77, %c0_78] : memref<1x4x8x16xbf16, #tpu.memory_space<vmem>>, vector<1x1x4x16xbf16>
    %85 = vector.shape_cast %84 : vector<1x1x4x16xbf16> to vector<4x16xbf16>
    %c8_79 = arith.constant 8 : index
    %c0_80 = arith.constant 0 : index
    %86 = vector.load %arg13[%c8_79, %c0_80] : memref<16x16xbf16, #tpu.memory_space<vmem>>, vector<4x16xbf16>
    tpu.vector_store %arg13[%c8_79, %c0_80], %85 {strides = array<i32>} : memref<16x16xbf16, #tpu.memory_space<vmem>>, vector<4x16xbf16>,
    %c0_81 = arith.constant 0 : index
    %c3_82 = arith.constant 3 : index
    %c4_83 = arith.constant 4 : index
    %c0_84 = arith.constant 0 : index
    %87 = vector.load %arg2[%c0_81, %c3_82, %c4_83, %c0_84] : memref<1x4x8x16xbf16, #tpu.memory_space<vmem>>, vector<1x1x4x16xbf16>
    %88 = vector.shape_cast %87 : vector<1x1x4x16xbf16> to vector<4x16xbf16>
    %c12_85 = arith.constant 12 : index
    %c0_86 = arith.constant 0 : index
    %89 = vector.load %arg13[%c12_85, %c0_86] : memref<16x16xbf16, #tpu.memory_space<vmem>>, vector<4x16xbf16>
    tpu.vector_store %arg13[%c12_85, %c0_86], %88 {strides = array<i32>} : memref<16x16xbf16, #tpu.memory_space<vmem>>, vector<4x16xbf16>,
    %c0_87 = arith.constant 0 : index
    %c0_88 = arith.constant 0 : index
    %90 = vector.load %arg13[%c0_87, %c0_88] : memref<16x16xbf16, #tpu.memory_space<vmem>>, vector<16x16xbf16>
    %91 = arith.extf %90 : vector<16x16xbf16> to vector<16x16xf32>
    %cst_89 = arith.constant dense<0.000000e+00> : vector<16x8xf32>
    %92 = tpu.matmul %90, %0, %cst_89 {dimension_numbers = #tpu.dot_dimension_numbers<[1], [0], [0], [1], [0, 0, 1, 1], [], []>} : vector<16x16xbf16>, vector<16x8xbf16>, vector<16x8xf32> -> vector<16x8xf32>
    %93 = vector.broadcast %1 : vector<1x8xf32> to vector<16x8xf32>
    %94 = arith.addf %92, %93 : vector<16x8xf32>
    %95 = vector.extract_strided_slice %94 {offsets = [0, 0], sizes = [16, 4], strides = [1, 1]} : vector<16x8xf32> to vector<16x4xf32>
    %96 = vector.shape_cast %95 : vector<16x4xf32> to vector<1x16x4xf32>
    %97 = vector.broadcast %96 : vector<1x16x4xf32> to vector<16x16x4xf32>
    %98 = arith.mulf %3, %97 : vector<16x16x4xf32>
    %cst_90 = arith.constant dense<0.000000e+00> : vector<16x4xf32>
    %99 = vector.multi_reduction <add>, %98, %cst_90 [1] : vector<16x16x4xf32> to vector<16x4xf32>
    %100 = vector.broadcast %4 : vector<1x4xf32> to vector<16x4xf32>
    %101 = arith.addf %99, %100 : vector<16x4xf32>
    %102 = vector.extract_strided_slice %94 {offsets = [0, 4], sizes = [16, 4], strides = [1, 1]} : vector<16x8xf32> to vector<16x4xf32>
    %103 = vector.shape_cast %91 : vector<16x16xf32> to vector<1x16x16xf32>
    %104 = vector.broadcast %103 : vector<1x16x16xf32> to vector<16x16x16xf32>
    %105 = arith.mulf %6, %104 : vector<16x16x16xf32>
    %cst_91 = arith.constant dense<0.000000e+00> : vector<16x16xf32>
    %106 = vector.multi_reduction <add>, %105, %cst_91 [1] : vector<16x16x16xf32> to vector<16x16xf32>
    %107 = vector.broadcast %7 : vector<1x16xf32> to vector<16x16xf32>
    %108 = arith.addf %106, %107 : vector<16x16xf32>
    %cst_92 = arith.constant dense<0.000000e+00> : vector<16x16xf32>
    %109 = tpu.matmul %101, %102, %cst_92 {dimension_numbers = #tpu.dot_dimension_numbers<[1], [1], [0], [0], [0, 0, 1, 0], [], []>} : vector<16x4xf32>, vector<16x4xf32>, vector<16x16xf32> -> vector<16x16xf32>
    %110 = arith.addf %109, %8 : vector<16x16xf32>
    %cst_93 = arith.constant dense<0xFF800000> : vector<16xf32>
    %111 = vector.multi_reduction <maximumf>, %110, %cst_93 [1] : vector<16x16xf32> to vector<16xf32>
    %112 = vector.shape_cast %111 : vector<16xf32> to vector<16x1xf32>
    %113 = vector.broadcast %112 : vector<16x1xf32> to vector<16x16xf32>
    %114 = arith.subf %110, %113 : vector<16x16xf32>
    %115 = math.exp %114 : vector<16x16xf32>
    %cst_94 = arith.constant dense<0.000000e+00> : vector<16xf32>
    %116 = vector.multi_reduction <add>, %115, %cst_94 [1] : vector<16x16xf32> to vector<16xf32>
    %117 = vector.shape_cast %116 : vector<16xf32> to vector<16x1xf32>
    %118 = vector.broadcast %117 : vector<16x1xf32> to vector<16x16xf32>
    %119 = arith.divf %115, %118 : vector<16x16xf32>
    %cst_95 = arith.constant dense<0.000000e+00> : vector<16x16xf32>
    %120 = tpu.matmul %119, %108, %cst_95 {dimension_numbers = #tpu.dot_dimension_numbers<[1], [0], [0], [1], [0, 0, 1, 1], [], []>} : vector<16x16xf32>, vector<16x16xf32>, vector<16x16xf32> -> vector<16x16xf32>
    %cst_96 = arith.constant 0.000000e+00 : f32
    %121 = vector.broadcast %cst_96 : f32 to vector<16x16xf32>
    %122 = arith.maximumf %120, %121 : vector<16x16xf32>
    %123 = arith.truncf %122 : vector<16x16xf32> to vector<16x16xbf16>
    %cst_97 = arith.constant dense<0.000000e+00> : vector<16x16xf32>
    %124 = tpu.matmul %123, %9, %cst_97 {dimension_numbers = #tpu.dot_dimension_numbers<[1], [0], [0], [1], [0, 0, 1, 1], [], []>} : vector<16x16xbf16>, vector<16x16xbf16>, vector<16x16xf32> -> vector<16x16xf32>
    %125 = vector.broadcast %10 : vector<1x16xf32> to vector<16x16xf32>
    %126 = arith.addf %124, %125 : vector<16x16xf32>
    %127 = arith.addf %126, %91 : vector<16x16xf32>
    %128 = arith.truncf %127 : vector<16x16xf32> to vector<16x16xbf16>
    %129 = vector.extract_strided_slice %128 {offsets = [0, 0], sizes = [4, 16], strides = [1, 1]} : vector<16x16xbf16> to vector<4x16xbf16>
    %c0_98 = arith.constant 0 : index
    %c0_99 = arith.constant 0 : index
    %c4_100 = arith.constant 4 : index
    %c0_101 = arith.constant 0 : index
    %130 = vector.load %arg12[%c0_98, %c0_99, %c4_100, %c0_101] : memref<1x4x8x16xbf16, #tpu.memory_space<vmem>>, vector<1x1x4x16xbf16>
    %131 = vector.shape_cast %130 : vector<1x1x4x16xbf16> to vector<4x16xbf16>
    %132 = vector.shape_cast %129 : vector<4x16xbf16> to vector<1x1x4x16xbf16>
    tpu.vector_store %arg12[%c0_98, %c0_99, %c4_100, %c0_101], %132 {strides = array<i32>} : memref<1x4x8x16xbf16, #tpu.memory_space<vmem>>, vector<1x1x4x16xbf16>,
    %133 = vector.extract_strided_slice %128 {offsets = [4, 0], sizes = [4, 16], strides = [1, 1]} : vector<16x16xbf16> to vector<4x16xbf16>
    %c0_102 = arith.constant 0 : index
    %c1_103 = arith.constant 1 : index
    %c4_104 = arith.constant 4 : index
    %c0_105 = arith.constant 0 : index
    %134 = vector.load %arg12[%c0_102, %c1_103, %c4_104, %c0_105] : memref<1x4x8x16xbf16, #tpu.memory_space<vmem>>, vector<1x1x4x16xbf16>
    %135 = vector.shape_cast %134 : vector<1x1x4x16xbf16> to vector<4x16xbf16>
    %136 = vector.shape_cast %133 : vector<4x16xbf16> to vector<1x1x4x16xbf16>
    tpu.vector_store %arg12[%c0_102, %c1_103, %c4_104, %c0_105], %136 {strides = array<i32>} : memref<1x4x8x16xbf16, #tpu.memory_space<vmem>>, vector<1x1x4x16xbf16>,
    %137 = vector.extract_strided_slice %128 {offsets = [8, 0], sizes = [4, 16], strides = [1, 1]} : vector<16x16xbf16> to vector<4x16xbf16>
    %c0_106 = arith.constant 0 : index
    %c2_107 = arith.constant 2 : index
    %c4_108 = arith.constant 4 : index
    %c0_109 = arith.constant 0 : index
    %138 = vector.load %arg12[%c0_106, %c2_107, %c4_108, %c0_109] : memref<1x4x8x16xbf16, #tpu.memory_space<vmem>>, vector<1x1x4x16xbf16>
    %139 = vector.shape_cast %138 : vector<1x1x4x16xbf16> to vector<4x16xbf16>
    %140 = vector.shape_cast %137 : vector<4x16xbf16> to vector<1x1x4x16xbf16>
    tpu.vector_store %arg12[%c0_106, %c2_107, %c4_108, %c0_109], %140 {strides = array<i32>} : memref<1x4x8x16xbf16, #tpu.memory_space<vmem>>, vector<1x1x4x16xbf16>,
    %141 = vector.extract_strided_slice %128 {offsets = [12, 0], sizes = [4, 16], strides = [1, 1]} : vector<16x16xbf16> to vector<4x16xbf16>
    %c0_110 = arith.constant 0 : index
    %c3_111 = arith.constant 3 : index
    %c4_112 = arith.constant 4 : index
    %c0_113 = arith.constant 0 : index
    %142 = vector.load %arg12[%c0_110, %c3_111, %c4_112, %c0_113] : memref<1x4x8x16xbf16, #tpu.memory_space<vmem>>, vector<1x1x4x16xbf16>
    %143 = vector.shape_cast %142 : vector<1x1x4x16xbf16> to vector<4x16xbf16>
    %144 = vector.shape_cast %141 : vector<4x16xbf16> to vector<1x1x4x16xbf16>
    tpu.vector_store %arg12[%c0_110, %c3_111, %c4_112, %c0_113], %144 {strides = array<i32>} : memref<1x4x8x16xbf16, #tpu.memory_space<vmem>>, vector<1x1x4x16xbf16>,
    return
  }
  func.func @transform_0(%arg0: i32, %arg1: i32) -> (i32, i32, i32, i32) {
    %c0_i32 = arith.constant 0 : i32
    %c0_i32_0 = arith.constant 0 : i32
    %c0_i32_1 = arith.constant 0 : i32
    return %arg0, %arg1, %c0_i32, %c0_i32_0 : i32, i32, i32, i32
  }
  func.func @transform_1(%arg0: i32, %arg1: i32) -> (i32, i32) {
    %c0_i32 = arith.constant 0 : i32
    %c0_i32_0 = arith.constant 0 : i32
    %c0_i32_1 = arith.constant 0 : i32
    return %c0_i32, %c0_i32_0 : i32, i32
  }
  func.func @transform_2(%arg0: i32, %arg1: i32) -> (i32, i32) {
    %c0_i32 = arith.constant 0 : i32
    %c0_i32_0 = arith.constant 0 : i32
    %c0_i32_1 = arith.constant 0 : i32
    return %c0_i32, %c0_i32_0 : i32, i32
  }
  func.func @transform_3(%arg0: i32, %arg1: i32) -> (i32, i32, i32) {
    %c0_i32 = arith.constant 0 : i32
    %c0_i32_0 = arith.constant 0 : i32
    %c0_i32_1 = arith.constant 0 : i32
    %c0_i32_2 = arith.constant 0 : i32
    return %c0_i32, %c0_i32_0, %c0_i32_1 : i32, i32, i32
  }
  func.func @transform_4(%arg0: i32, %arg1: i32) -> (i32, i32) {
    %c0_i32 = arith.constant 0 : i32
    %c0_i32_0 = arith.constant 0 : i32
    %c0_i32_1 = arith.constant 0 : i32
    return %c0_i32, %c0_i32_0 : i32, i32
  }
  func.func @transform_5(%arg0: i32, %arg1: i32) -> (i32, i32, i32) {
    %c0_i32 = arith.constant 0 : i32
    %c0_i32_0 = arith.constant 0 : i32
    %c0_i32_1 = arith.constant 0 : i32
    %c0_i32_2 = arith.constant 0 : i32
    return %c0_i32, %c0_i32_0, %c0_i32_1 : i32, i32, i32
  }
  func.func @transform_6(%arg0: i32, %arg1: i32) -> (i32, i32) {
    %c0_i32 = arith.constant 0 : i32
    %c0_i32_0 = arith.constant 0 : i32
    %c0_i32_1 = arith.constant 0 : i32
    return %c0_i32, %c0_i32_0 : i32, i32
  }
  func.func @transform_7(%arg0: i32, %arg1: i32) -> (i32, i32) {
    %c0_i32 = arith.constant 0 : i32
    %c0_i32_0 = arith.constant 0 : i32
    %c0_i32_1 = arith.constant 0 : i32
    return %c0_i32, %c0_i32_0 : i32, i32
  }
  func.func @transform_8(%arg0: i32, %arg1: i32) -> (i32, i32) {
    %c0_i32 = arith.constant 0 : i32
    %c0_i32_0 = arith.constant 0 : i32
    %c0_i32_1 = arith.constant 0 : i32
    return %c0_i32, %c0_i32_0 : i32, i32
  }
  func.func @transform_9(%arg0: i32, %arg1: i32) -> (i32, i32) {
    %c0_i32 = arith.constant 0 : i32
    %c0_i32_0 = arith.constant 0 : i32
    %c0_i32_1 = arith.constant 0 : i32
    return %c0_i32, %c0_i32_0 : i32, i32
  }
  func.func @transform_10(%arg0: i32, %arg1: i32) -> (i32, i32, i32, i32) {
    %c0_i32 = arith.constant 0 : i32
    %c0_i32_0 = arith.constant 0 : i32
    %c0_i32_1 = arith.constant 0 : i32
    return %arg0, %arg1, %c0_i32, %c0_i32_0 : i32, i32, i32, i32
  }
}

</mosaic_0001>

<bundles_post_ra>
// kernel: tpu_custom_call.1
= control target key start
LH: loop header
LB: loop body
LE: loop exit
PB: predicated region body
PF: predicated region fallthrough
CT: control target
= control target key end

     0   :  { %6 = vsyncpa [#allocation3], 0  ;;  %s124_s0 = inlined_call_operand.hbm [shape: f32[8,128], index: 0, kind: input, shape index: {}]   ;;  %s125_s1 = inlined_call_operand.hbm [shape: f32[8,128], index: 1, kind: output, shape index: {}]  }
   0x1   :  { %7 = vsyncpa [#allocation4], 0  ;;  %s88_s6 = smov [#allocation2]   ;;  %s40_s10 = scalar_lea.hbm %s124_s0, 128 }
   0x2   :  { %s14_s7 = sshll.u32 %s88_s6, 4  ;;  %p41_p0 = scmp.ne.s32.totalorder %s124_s0, %s40_s10  ;;  %s15_s7 = int_to_ptr.vmem [resolvable:$true] %s14_s7 }
   0x3   :  { %p44_p1 = scmp.lt.u32.totalorder %s40_s10, %s124_s0 }
   0x5   :  { %p46_p2 = pnand %p44_p1, %p41_p0 }
   0x7   :  { %49 = shalt.err (!%p46_p2)
}
   0x8   :  { %s50_s15 = scalar_lea.vmem %s15_s7, 128  ;;  %p55_p4 = scmp.lt.s32.totalorder %s15_s7, %s15_s7 }
   0x9   :  { %p51_p3 = scmp.ne.s32.totalorder %s15_s7, %s50_s15  ;;  %p56_p5 = scmp.lt.s32.totalorder %s50_s15, %s50_s15 }
   0xb   :  { %p57_p6 = por %p56_p5, %p55_p4 }
   0xd   :  { %p58_p7 = pnand %p57_p6, %p51_p3 }
   0xf   :  { %61 = shalt.err (!%p58_p7)
}
  0x10   :  { %17 = dma.hbm_to_vmem [thread:$0]  %s124_s0, 128, %s15_s7, [#allocation3]  }
  0x11   :  { %84 = dma.done.wait [#allocation3], 128  }
  0x12   :  { %85 = vsyncadd [#allocation3], 4294967168  ;;  %s89_s18 = smov [#allocation5]   ;;  %v21_v0 = vld [vmem:[#allocation2] sm:$0xff] }
  0x13   :  { %s29_s19 = sshll.u32 %s89_s18, 4  ;;  %22 = vst [vmem:[#allocation5] sm:$0xff] %v21_v0  ;;  %s30_s19 = int_to_ptr.vmem [resolvable:$true] %s29_s19 }
  0x14   :  { %s62_s20 = scalar_lea.vmem %s30_s19, 128  ;;  %p67_p9 = scmp.lt.s32.totalorder %s30_s19, %s30_s19 }
  0x15   :  { %p63_p8 = scmp.ne.s32.totalorder %s30_s19, %s62_s20  ;;  %p68_p10 = scmp.lt.s32.totalorder %s62_s20, %s62_s20 }
  0x17   :  { %p69_p11 = por %p68_p10, %p67_p9 }
  0x19   :  { %p70_p12 = pnand %p69_p11, %p63_p8 }
  0x1b   :  { %73 = shalt.err (!%p70_p12)
}
  0x1c   :  { %s74_s23 = scalar_lea.hbm %s125_s1, 128 }
  0x1d   :  { %p75_p13 = scmp.ne.s32.totalorder %s125_s1, %s74_s23  ;;  %p78_p0 = scmp.lt.u32.totalorder %s74_s23, %s125_s1 }
  0x1f   :  { %p80_p1 = pnand %p78_p0, %p75_p13 }
  0x21   :  { %83 = shalt.err (!%p80_p1)
}
  0x22   :  { %32 = dma.vmem_to_hbm [thread:$0]  %s30_s19, 128, %s125_s1, [#allocation4]  }
  0x23   :  { %86 = dma.done.wait [#allocation4], 128  }
  0x24   :  { %87 = vsyncadd [#allocation4], 4294967168 }
  0x25   :  { %36 = vsyncpa [#allocation3], 1 }
  0x26   :  { %37 = vsyncpa [#allocation4], 1 }

// kernel: efficientvit_stage.5
= control target key start
LH: loop header
LB: loop body
LE: loop exit
PB: predicated region body
PF: predicated region fallthrough
CT: control target
= control target key end

     0   :  { %8 = vsyncpa [#allocation4], 0  ;;  %s1452_s0 = inlined_call_operand.hbm [shape: bf16[2,8,8,16], index: 0, kind: input, shape index: {}]   ;;  %s1453_s1 = inlined_call_operand.hbm [shape: bf16[9,16], index: 1, kind: input, shape index: {}]   ;;  %s1454_s2 = inlined_call_operand.hbm [shape: f32[1,16], index: 2, kind: input, shape index: {}]   ;;  %s1455_s3 = inlined_call_operand.hbm [shape: bf16[2,8,8,16], index: 3, kind: output, shape index: {}]  }
   0x1   :  { %10 = vsyncpa [#allocation4 + $0x1], 0 }
   0x2   :  { %11 = vsyncpa [#allocation7], 0 }
   0x3   :  { %12 = vsyncpa [#allocation5], 0 }
   0x4   :  { %14 = vsyncpa [#allocation5 + $0x1], 0  ;;  %s1006_s12 = smov 0   ;;  %s1008_s13 = smov 0  }
   0x5   :  { %s1010_s14 = smov 0   ;;  %s1012_s15 = smov 0  }
   0x6 LB: > { %s1027_s16 = sadd.s32 4294967295, %s975_s15   ;;  %s688_s17 = sadd.s32 4294967294, %s975_s15   ;;  %s975_s15 = sphi %s1012_s15, %s1475_s15   ;;  %s971_s14 = sphi %s1010_s14, %s1474_s14   ;;  %s967_s13 = sphi %s1008_s13, %s1473_s13   ;;  %s963_s12 = sphi %s1006_s12, %s1472_s12  }
   0x7   : > { %p40_p0 = scmp.ne.s32.totalorder %s967_s13, %s963_s12  ;;  %p1456_p1 = scmp.eq.s32.totalorder %s1027_s16, 0 }
   0x8   : > { %p112_p3 = scmp.eq.s32.totalorder %s688_s17, 1  ;;  %p689_p5 = scmp.ge.s32.totalorder %s975_s15, 1 }
   0x9   : > { %p1036_p4 = por %p1456_p1, %p40_p0  ;;  %p119_p7 = scmp.lt.s32.totalorder %s975_s15, 3 }
   0xa   : > { %p1041_p6 = por %p112_p3, %p40_p0  ;;  %s977_s21 = smov [#allocation6]  }
   0xb   : > { %s1459_s18 = scalar_select %p1036_p4, 1, 0 }
   0xc   : > { %s1460_s19 = scalar_select %p1041_p6, 1, 0 }
   0xd   : > { %p1046_p8 = pnand %p689_p5, %p119_p7  ;;  %s131_s22 = sshll.u32 %s977_s21, 4  ;;  %s1050_s22 = int_to_ptr.vmem [resolvable:$true] %s131_s22 }
   0xe   : > { %s978_s24 = smov [#allocation8]   ;;  %s819_s28 = scalar_lea.hbm %s1453_s1, 128 }
   0xf   : > { %p759_p9 = pneg %p1046_p8  ;;  %s145_s25 = sshll.u32 %s978_s24, 4  ;;  %s1061_s25 = int_to_ptr.vmem [resolvable:$true] %s145_s25 }
  0x10   : > { %p820_p12 = scmp.ne.s32.totalorder %s1453_s1, %s819_s28  ;;  %p826_p5 = scmp.lt.u32.totalorder %s819_s28, %s1453_s1 }
  0x11   : > { %p1057_p11 = pnand %p759_p9, %p1456_p1 }
  0x13   : > { %p821_p13 = pneg %p1057_p11 }
  0x15   : > { %p822_p0 = pnand %p821_p13, %p820_p12 }
  0x17   : > { %p823_p3 = pneg %p822_p0 }
  0x19   : > { %p828_p7 = pnand %p826_p5, %p823_p3 }
  0x1b   : > { %831 = shalt.err (!%p828_p7)
}
  0x1c   : > { %s832_s6 = scalar_lea.vmem %s1050_s22, 128  ;;  %p840_p2 = scmp.lt.s32.totalorder %s1050_s22, %s1050_s22 }
  0x1d   : > { %p833_p9 = scmp.ne.s32.totalorder %s1050_s22, %s832_s6  ;;  %p841_p12 = scmp.lt.s32.totalorder %s832_s6, %s832_s6 }
  0x1f   : > { %p835_p10 = pnand %p833_p9, %p821_p13  ;;  %p842_p0 = por %p841_p12, %p840_p2 }
  0x21   : > { %p836_p1 = pneg %p835_p10 }
  0x23   : > { %p843_p6 = pnand %p842_p0, %p836_p1 }
  0x25   : > { %846 = shalt.err (!%p843_p6)
}
  0x26   : > { %s979_s7 = smov 64   ;;  %s980_s8 = smov 4  }
  0x27   : > { %762 = dma.hbm_to_vmem [thread:$0]  (!%p1057_p11), %s1453_s1, 128, %s1050_s22, [#allocation7], %s979_s7, %s979_s7, %s980_s8  }
  0x28   : > { %s847_s21 = scalar_lea.hbm %s1454_s2, 16 }
  0x29   : > { %p848_p1 = scmp.ne.s32.totalorder %s1454_s2, %s847_s21  ;;  %p854_p10 = scmp.lt.u32.totalorder %s847_s21, %s1454_s2 }
  0x2b   : > { %p850_p2 = pnand %p848_p1, %p821_p13 }
  0x2d   : > { %p851_p6 = pneg %p850_p2 }
  0x2f   : > { %p856_p3 = pnand %p854_p10, %p851_p6 }
  0x31   : > { %859 = shalt.err (!%p856_p3)
}
  0x32   : > { %s860_s22 = scalar_lea.vmem %s1061_s25, 16  ;;  %s867_s29 = scalar_lea.vmem %s1061_s25, 32 }
  0x33   : > { %p861_p5 = scmp.ne.s32.totalorder %s1061_s25, %s860_s22  ;;  %p868_p12 = scmp.lt.s32.totalorder %s1061_s25, %s1061_s25 }
  0x34   : > { %p869_p0 = scmp.lt.s32.totalorder %s867_s29, %s860_s22 }
  0x35   : > { %p863_p7 = pnand %p861_p5, %p821_p13 }
  0x36   : > { %p870_p1 = por %p869_p0, %p868_p12 }
  0x37   : > { %p864_p9 = pneg %p863_p7 }
  0x39   : > { %p871_p2 = pnand %p870_p1, %p864_p9 }
  0x3b   : > { %874 = shalt.err (!%p871_p2)
}
  0x3c   : > { %765 = dma.hbm_to_vmem [thread:$0]  (!%p1057_p11), %s1454_s2, 16, %s1061_s25, [#allocation7]  }
  0x3d   : > { %s1120_s5 = sadd.s32 1, %s975_s15   ;;  %s27_s23 = sadd.s32 1, %s971_s14 }
  0x3e   : > { %s24_s6 = ssub.s32 %s975_s15, %s1120_s5  ;;  %p34_p13 = scmp.ne.s32.totalorder %s971_s14, %s967_s13 }
  0x3f   : > { %p25_p6 = scmp.eq.s32.totalorder %s24_s6, 0  ;;  %p35_p10 = scmp.eq.s32.totalorder %s975_s15, 0 }
  0x40   : > { %p1463_p3 = scmp.eq.s32.totalorder %s1027_s16, 1  ;;  %p776_p7 = scmp.lt.s32.totalorder %s975_s15, 2 }
  0x41   : > { %s1136_s10 = scalar_select %p25_p6, %s971_s14, %s27_s23  }
  0x42   : > { %p1130_p5 = por %p1463_p3, %p34_p13  ;;  %p36_p9 = por %p35_p10, %p34_p13 }
  0x43   : > { %s156_s11 = sand.u32 1, %s971_s14   ;;  %s707_s25 = sshll.u32 %s975_s15, 9 }
  0x44   : > { %s1464_s9 = scalar_select %p1130_p5, 1, 0 }
  0x45   : > { %s693_s17 = sshll.u32 %s156_s11, 5  ;;  %s1143_s26 = scalar_lea.hbm %s1452_s0, %s707_s25 }
  0x46   : > { %s160_s27 = scalar_lea.vmem [#allocation3], %s693_s17  ;;  %p1147_p11 = pnand %p776_p7, %p36_p9 }
  0x47   : > { %s167_s28 = sshll.u32 %s160_s27, 4  ;;  %s1151_s29 = scalar_lea.sflag [#allocation4], %s156_s11  ;;  %s1145_s28 = int_to_ptr.vmem [resolvable:$true] %s167_s28 }
  0x48   : > { %s875_s30 = scalar_lea.hbm %s1143_s26, 512  ;;  %p877_p0 = pneg %p1147_p11 }
  0x49   : > { %p876_p12 = scmp.ne.s32.totalorder %s1143_s26, %s875_s30  ;;  %s880_s6 = scalar_lea.hbm %s1452_s0, 1024 }
  0x4a   : > { %p881_p13 = scmp.lt.u32.totalorder %s1143_s26, %s1452_s0  ;;  %p882_p6 = scmp.lt.u32.totalorder %s880_s6, %s875_s30 }
  0x4b   : > { %p878_p1 = pnand %p877_p0, %p876_p12  ;;  %p884_p3 = scmp.lt.u32.totalorder %s875_s30, %s1143_s26 }
  0x4c   : > { %p883_p10 = por %p882_p6, %p881_p13 }
  0x4d   : > { %p879_p2 = pneg %p878_p1 }
  0x4e   : > { %p885_p7 = por %p884_p3, %p883_p10 }
  0x50   : > { %p886_p9 = pnand %p885_p7, %p879_p2 }
  0x52   : > { %889 = shalt.err (!%p886_p9)
}
  0x53   : > { %s890_s11 = scalar_lea.vmem %s1145_s28, 512  ;;  %s981_s21 = smov [#allocation3]  }
  0x54   : > { %p891_p12 = scmp.ne.s32.totalorder %s1145_s28, %s890_s11  ;;  %s895_s24 = sshll.u32 %s981_s21, 4  ;;  %s896_s24 = int_to_ptr.vmem [resolvable:$false] %s895_s24 }
  0x55   : > { %s897_s27 = scalar_lea.vmem %s896_s24, 1024  ;;  %p898_p4 = scmp.lt.s32.totalorder %s1145_s28, %s896_s24 }
  0x56   : > { %p893_p1 = pnand %p891_p12, %p877_p0  ;;  %p899_p13 = scmp.lt.s32.totalorder %s897_s27, %s890_s11 }
  0x58   : > { %p894_p5 = pneg %p893_p1  ;;  %p900_p6 = por %p899_p13, %p898_p4 }
  0x5a   : > { %p901_p10 = pnand %p900_p6, %p894_p5 }
  0x5c   : > { %904 = shalt.err (!%p901_p10)
}
  0x5d   : > { %769 = dma.hbm_to_vmem [thread:$0]  (!%p1147_p11), %s1143_s26, 512, %s1145_s28, %s1151_s29, %s979_s7, %s979_s7, %s980_s8  }
  0x5e   : > { %179 = sbr.rel (%p1046_p8) target bundleno = 192 (0xc0), region = 32  ;;  %s1185_s30 = sand.u32 (!%p1046_p8), 1, %s967_s13  }
  0x5f   : > { %s697_s4 = sshll.u32 (!%p1046_p8), %s1185_s30, 5  ;;  %s182_s23 = scalar_lea.sflag (!%p1046_p8), [#allocation4], %s1185_s30 }
  0x60   : > { %s1191_s22 = scalar_lea.vmem (!%p1046_p8), [#allocation3], %s697_s4  ;;  %p1466_p4 = scmp.ne.s32.totalorder (!%p1046_p8), %s1459_s18, 0 }
  0x65   : > { %950 = dma.done.wait (%p1466_p4), %s182_s23, 512  }
  0x66   : > { %952 = vsyncadd (%p1466_p4), %s182_s23, 4294966784  ;;  %p1467_p5 = scmp.eq.s32.totalorder %s1027_s16, 0 }
  0x68   : > { %954 = dma.done.wait (%p1467_p5), [#allocation7], 144   ;;  %p1468_p8 = pmov %p1467_p5 }
  0x69   : > { %vm216_vm0 = vcmask 130048   ;;  %vm218_vm1 = vcmask 123904   ;;  %v273_v0 = vlaneseq  ;;  %v982_v1 = vmov 0.0   ;;  %v1222_v4 = vld [vmem:[%s1191_s22] sm:$0xff]   ;;  %v1225_v5 = vld [vmem:[%s1191_s22 + $0x8] sm:$0xff]   ;;  %v1228_v6 = vld [vmem:[%s1191_s22 + $0x10] sm:$0xff]  }
  0x6a   : > { %956 = vsyncadd (%p1468_p8), [#allocation7], 4294967152  ;;  %217 = vst.msk [vmem:[#allocation2] sm:$0xff] %vm216_vm0, %v982_v1  ;;  %v711_v10 = vunpack.c.l.bf16 %v1222_v4  ;;  %v712_v11 = vunpack.c.h.bf16 %v1222_v4  ;;  %v715_v12 = vunpack.c.l.bf16 %v1225_v5  ;;  %v716_v13 = vunpack.c.h.bf16 %v1225_v5  ;;  %v1235_v14 = vld [vmem:[%s1191_s22 + $0x18] sm:$0xff]   ;;  %v263_v15 = vld [vmem:[#allocation6] sm:$0x1] }
  0x6b   : > { %220 = vst.msk [vmem:[#allocation2 + $0x10] sm:$0xff] %vm216_vm0, %v982_v1  ;;  %222 = vst.msk [vmem:[#allocation2 + $0x20] sm:$0xff] %vm216_vm0, %v982_v1  ;;  %v274_v2 = vshrl.u32 %v273_v0, 7  ;;  %v719_v16 = vunpack.c.l.bf16 %v1228_v6  ;;  %v720_v17 = vunpack.c.h.bf16 %v1228_v6  ;;  %v723_v18 = vunpack.c.l.bf16 %v1235_v14  ;;  %v321_v20 = vld [vmem:[#allocation6] sm:$0x2]  ;;  %s1334_s18 = scalar_lea.vmem [#allocation9], %s697_s4 }
  0x6c   : > { %224 = vst.msk [vmem:[#allocation2 + $0x30] sm:$0xff] %vm216_vm0, %v982_v1  ;;  %226 = vst.msk [vmem:[#allocation2 + $0x40] sm:$0xff] %vm216_vm0, %v982_v1  ;;  %v724_v19 = vunpack.c.h.bf16 %v1235_v14  ;;  %v264_v21 = vunpack.c.l.bf16 %v263_v15  ;;  %v322_v22 = vunpack.c.l.bf16 %v321_v20  ;;  %v379_v23 = vld [vmem:[#allocation6] sm:$0x4]  ;;  %v437_v24 = vld [vmem:[#allocation6] sm:$0x8] }
  0x6d   : > { %228 = vst.msk [vmem:[#allocation2 + $0x50] sm:$0xff] %vm216_vm0, %v982_v1  ;;  %230 = vst.msk [vmem:[#allocation2 + $0x60] sm:$0xff] %vm216_vm0, %v982_v1  ;;  %v275_v3 = vsub.s32 0, %v274_v2  ;;  %v303_v7 = vsub.s32 1, %v274_v2  ;;  %v333_v8 = vsub.s32 2, %v274_v2  ;;  %v361_v9 = vsub.s32 3, %v274_v2 }
  0x6e   : > { %232 = vst.msk [vmem:[#allocation2 + $0x70] sm:$0xff] %vm216_vm0, %v982_v1  ;;  %234 = vst.msk [vmem:[#allocation2 + $0x80] sm:$0xff] %vm216_vm0, %v982_v1  ;;  %v496_v25 = vld [vmem:[#allocation6 + $0x4] sm:$0x1]  ;;  %v391_v29 = vsub.s32 4, %v274_v2  ;;  %v419_v30 = vsub.s32 5, %v274_v2  ;;  %v380_v34 = vunpack.c.l.bf16 %v379_v23  ;;  %v438_v35 = vunpack.c.l.bf16 %v437_v24 }
  0x6f   : > { %236 = vst.msk [vmem:[#allocation2 + $0x90] sm:$0xff] %vm216_vm0, %v982_v1  ;;  %v1265_v31 = vrot.slane %v264_v21, %v275_v3  ;;  %v1267_v32 = vrot.slane %v264_v21, %v303_v7  ;;  %v1269_v33 = vrot.slane %v322_v22, %v333_v8  ;;  %v450_v36 = vsub.s32 6, %v274_v2  ;;  %s596_s20 = sshll.u32 %s1334_s18, 4  ;;  %s708_s7 = sshll.u32 %s1027_s16, 9  ;;  %s1401_s20 = int_to_ptr.vmem [resolvable:$true] %s596_s20 }
  0x70   : > { %219 = vst.msk [vmem:[#allocation2 + $0x8] sm:$0x3] %vm218_vm1, %v982_v1  ;;  %221 = vst.msk [vmem:[#allocation2 + $0x18] sm:$0x3] %vm218_vm1, %v982_v1  ;;  %v478_v37 = vsub.s32 7, %v274_v2  ;;  %v497_v38 = vunpack.c.l.bf16 %v496_v25  ;;  %v1274_v42 = vrot.slane %v322_v22, %v361_v9  ;;  %v1276_v44 = vrot.slane %v380_v34, %v391_v29  ;;  %s1406_s28 = scalar_lea.hbm %s1455_s3, %s708_s7  ;;  %s583_s29 = scalar_lea.sflag [#allocation5], %s1185_s30 }
  0x71   : > { %223 = vst.msk [vmem:[#allocation2 + $0x28] sm:$0x3] %vm218_vm1, %v982_v1  ;;  %225 = vst.msk [vmem:[#allocation2 + $0x38] sm:$0x3] %vm218_vm1, %v982_v1  ;;  %v265_v26 = vld [vmem:[#allocation2] sm:$0xff]  ;;  %v1278_v45 = vrot.slane %v380_v34, %v419_v30  ;;  %v1280_v49 = vrot.slane %v438_v35, %v450_v36  ;;  %vm573_vm2 = vcmask 125952  }
  0x72   : > { %227 = vst.msk [vmem:[#allocation2 + $0x48] sm:$0x3] %vm218_vm1, %v982_v1  ;;  %229 = vst.msk [vmem:[#allocation2 + $0x58] sm:$0x3] %vm218_vm1, %v982_v1  ;;  %v277_v39 = vmul.f32 %v1265_v31, %v265_v26  ;;  %v1282_v50 = vrot.slane %v438_v35, %v478_v37  ;;  %v1284_v51 = vrot.slane %v497_v38, %v275_v3  ;;  %s905_s16 = scalar_lea.vmem %s1401_s20, 512  ;;  %p1469_p0 = scmp.ne.s32.totalorder %s1464_s9, 0 }
  0x73   : > { %231 = vst.msk [vmem:[#allocation2 + $0x68] sm:$0x3] %vm218_vm1, %v982_v1  ;;  %233 = vst.msk [vmem:[#allocation2 + $0x78] sm:$0x3] %vm218_vm1, %v982_v1  ;;  %p906_p11 = scmp.ne.s32.totalorder %s1401_s20, %s905_s16  ;;  %s983_s6 = smov [#allocation9]  }
  0x74   : > { %235 = vst.msk [vmem:[#allocation2 + $0x88] sm:$0x3] %vm218_vm1, %v982_v1  ;;  %237 = vst.msk [vmem:[#allocation2 + $0x98] sm:$0x3] %vm218_vm1, %v982_v1  ;;  %s909_s17 = sshll.u32 %s983_s6, 4  ;;  %s910_s17 = int_to_ptr.vmem [resolvable:$false] %s909_s17 }
  0x75   : > { %255 = vst.msk [vmem:[#allocation2 + $0x11] sm:$0xff] %vm216_vm0, %v711_v10  ;;  %256 = vst.msk [vmem:[#allocation2 + $0x21] sm:$0xff] %vm216_vm0, %v712_v11  ;;  %p907_p2 = pnand %p906_p11, %p1469_p0  ;;  %s911_s25 = scalar_lea.vmem %s910_s17, 1024 }
  0x76   : > { %257 = vst.msk [vmem:[#allocation2 + $0x31] sm:$0xff] %vm216_vm0, %v715_v12  ;;  %258 = vst.msk [vmem:[#allocation2 + $0x41] sm:$0xff] %vm216_vm0, %v716_v13  ;;  %p912_p7 = scmp.lt.s32.totalorder %s1401_s20, %s910_s17  ;;  %p913_p9 = scmp.lt.s32.totalorder %s911_s25, %s905_s16 }
  0x77   : > { %259 = vst.msk [vmem:[#allocation2 + $0x51] sm:$0xff] %vm216_vm0, %v719_v16  ;;  %260 = vst.msk [vmem:[#allocation2 + $0x61] sm:$0xff] %vm216_vm0, %v720_v17  ;;  %v293_v27 = vld [vmem:[#allocation2 + $0x1] sm:$0xff]  ;;  %p908_p3 = pneg %p907_p2 }
  0x78   : > { %261 = vst.msk [vmem:[#allocation2 + $0x71] sm:$0xff] %vm216_vm0, %v723_v18  ;;  %262 = vst.msk [vmem:[#allocation2 + $0x81] sm:$0xff] %vm216_vm0, %v724_v19  ;;  %v323_v28 = vld [vmem:[#allocation2 + $0x2] sm:$0xff]  ;;  %v305_v40 = vmul.f32 %v1267_v32, %v293_v27  ;;  %p914_p12 = por %p913_p9, %p912_p7 }
  0x79   : > { %v335_v41 = vmul.f32 %v1269_v33, %v323_v28 }
  0x7a   : > { %v313_v43 = vadd.f32 %v305_v40, %v277_v39  ;;  %p915_p1 = pnand %p914_p12, %p908_p3 }
  0x7c   : > { %v351_v46 = vld [vmem:[#allocation2 + $0x10] sm:$0xff]  ;;  %v343_v52 = vadd.f32 %v335_v41, %v313_v43  ;;  %v440_v54 = vld [vmem:[#allocation2 + $0x20] sm:$0xff] }
  0x7d   : > { %v381_v47 = vld [vmem:[#allocation2 + $0x11] sm:$0xff]  ;;  %v363_v53 = vmul.f32 %v1274_v42, %v351_v46  ;;  %v468_v55 = vld [vmem:[#allocation2 + $0x21] sm:$0xff]  ;;  %v278_v57 = vmul.f32 %v351_v46, %v1265_v31  ;;  %v452_v63 = vmul.f32 %v1280_v49, %v440_v54  ;;  %v364_v15 = vmul.f32 %v440_v54, %v1274_v42 }
  0x7e   : > { %v409_v48 = vld [vmem:[#allocation2 + $0x12] sm:$0xff]  ;;  %v498_v56 = vld [vmem:[#allocation2 + $0x22] sm:$0xff]  ;;  %v393_v59 = vmul.f32 %v1276_v44, %v381_v47  ;;  %v306_v61 = vmul.f32 %v381_v47, %v1267_v32  ;;  %v480_v0 = vmul.f32 %v1282_v50, %v468_v55  ;;  %v279_v20 = vmul.f32 %v440_v54, %v1265_v31 }
  0x7f   : > { %v371_v58 = vadd.f32 %v363_v53, %v343_v52  ;;  %v421_v60 = vmul.f32 %v1278_v45, %v409_v48  ;;  %v441_v62 = vld [vmem:[#allocation2 + $0x30] sm:$0xff]  ;;  %v510_v1 = vmul.f32 %v1284_v51, %v498_v56  ;;  %v336_v2 = vmul.f32 %v409_v48, %v1269_v33  ;;  %v442_v29 = vld [vmem:[#allocation2 + $0x40] sm:$0xff] }
  0x80   : > { %v469_v3 = vld [vmem:[#allocation2 + $0x31] sm:$0xff]  ;;  %v314_v9 = vadd.f32 %v306_v61, %v278_v57  ;;  %v394_v21 = vmul.f32 %v468_v55, %v1276_v44  ;;  %v422_v22 = vmul.f32 %v498_v56, %v1278_v45  ;;  %v453_v23 = vmul.f32 %v1280_v49, %v441_v62  ;;  %v470_v30 = vld [vmem:[#allocation2 + $0x41] sm:$0xff] }
  0x81   : > { %v499_v7 = vld [vmem:[#allocation2 + $0x32] sm:$0xff]  ;;  %v401_v8 = vadd.f32 %v393_v59, %v371_v58  ;;  %v307_v24 = vmul.f32 %v468_v55, %v1267_v32  ;;  %v481_v27 = vmul.f32 %v1282_v50, %v469_v3  ;;  %v337_v35 = vmul.f32 %v498_v56, %v1269_v33  ;;  %v500_v41 = vld [vmem:[#allocation2 + $0x42] sm:$0xff] }
  0x82   : > { %v344_v26 = vadd.f32 %v336_v2, %v314_v9  ;;  %v511_v28 = vmul.f32 %v1284_v51, %v499_v7  ;;  %v365_v36 = vmul.f32 %v441_v62, %v1274_v42  ;;  %v280_v37 = vmul.f32 %v441_v62, %v1265_v31  ;;  %v1312_v57 = vld [vmem:[#allocation8] ss:$0 sm:$0xff] }
  0x83   : > { %v429_v25 = vadd.f32 %v421_v60, %v401_v8  ;;  %v315_v34 = vadd.f32 %v307_v24, %v279_v20  ;;  %v395_v40 = vmul.f32 %v469_v3, %v1276_v44  ;;  %v308_v43 = vmul.f32 %v469_v3, %v1267_v32  ;;  %v443_v3 = vld [vmem:[#allocation2 + $0x50] sm:$0xff] }
  0x84   : > { %v372_v39 = vadd.f32 %v364_v15, %v344_v26  ;;  %v423_v47 = vmul.f32 %v499_v7, %v1278_v45  ;;  %v454_v48 = vmul.f32 %v1280_v49, %v442_v29  ;;  %v482_v52 = vmul.f32 %v1282_v50, %v470_v30  ;;  %v471_v8 = vld [vmem:[#allocation2 + $0x51] sm:$0xff] }
  0x85   : > { %v460_v38 = vadd.f32 %v452_v63, %v429_v25  ;;  %v345_v46 = vadd.f32 %v337_v35, %v315_v34  ;;  %v316_v55 = vadd.f32 %v308_v43, %v280_v37  ;;  %v338_v56 = vmul.f32 %v499_v7, %v1269_v33  ;;  %v501_v37 = vld [vmem:[#allocation2 + $0x52] sm:$0xff] }
  0x86   : > { %v402_v54 = vadd.f32 %v394_v21, %v372_v39  ;;  %v512_v59 = vmul.f32 %v1284_v51, %v500_v41  ;;  %v366_v60 = vmul.f32 %v442_v29, %v1274_v42  ;;  %v281_v61 = vmul.f32 %v442_v29, %v1265_v31 }
  0x87   : > { %v488_v53 = vadd.f32 %v480_v0, %v460_v38  ;;  %v373_v58 = vadd.f32 %v365_v36, %v345_v46  ;;  %v346_v2 = vadd.f32 %v338_v56, %v316_v55  ;;  %v309_v0 = vmul.f32 %v470_v30, %v1267_v32 }
  0x88   : > { %v430_v63 = vadd.f32 %v422_v22, %v402_v54  ;;  %v396_v15 = vmul.f32 %v470_v30, %v1276_v44  ;;  %v424_v7 = vmul.f32 %v500_v41, %v1278_v45  ;;  %v339_v20 = vmul.f32 %v500_v41, %v1269_v33  ;;  %v444_v54 = vld [vmem:[#allocation2 + $0x60] sm:$0xff] }
  0x89   : > { %v518_v62 = vadd.f32 %v510_v1, %v488_v53  ;;  %v403_v9 = vadd.f32 %v395_v40, %v373_v58  ;;  %v374_v25 = vadd.f32 %v366_v60, %v346_v2  ;;  %v317_v26 = vadd.f32 %v309_v0, %v281_v61 }
  0x8a   : > { %v461_v24 = vadd.f32 %v453_v23, %v430_v63  ;;  %v455_v1 = vmul.f32 %v1280_v49, %v443_v3  ;;  %v483_v22 = vmul.f32 %v1282_v50, %v471_v8  ;;  %v367_v34 = vmul.f32 %v443_v3, %v1274_v42 }
  0x8b   : > { %v533_v21 = vadd.f32 %v1312_v57, %v518_v62  ;;  %v431_v29 = vadd.f32 %v423_v47, %v403_v9  ;;  %v404_v36 = vadd.f32 %v396_v15, %v374_v25  ;;  %v347_v38 = vadd.f32 %v339_v20, %v317_v26  ;;  %v502_v15 = vld [vmem:[#allocation2 + $0x62] sm:$0xff] }
  0x8c   : > { %v489_v30 = vadd.f32 %v481_v27, %v461_v24  ;;  %v397_v23 = vmul.f32 %v471_v8, %v1276_v44  ;;  %v282_v40 = vmul.f32 %v443_v3, %v1265_v31  ;;  %v310_v41 = vmul.f32 %v471_v8, %v1267_v32  ;;  %v472_v27 = vld [vmem:[#allocation2 + $0x61] sm:$0xff] }
  0x8d   : > { %v557_v35 = vadd.f32 %v711_v10, %v533_v21  ;;  %v462_v39 = vadd.f32 %v454_v48, %v431_v29  ;;  %v432_v47 = vadd.f32 %v424_v7, %v404_v36  ;;  %v375_v53 = vadd.f32 %v367_v34, %v347_v38  ;;  %v445_v29 = vld [vmem:[#allocation2 + $0x70] sm:$0xff] }
  0x8e   : > { %v519_v46 = vadd.f32 %v511_v28, %v489_v30  ;;  %v513_v10 = vmul.f32 %v1284_v51, %v501_v37  ;;  %v318_v56 = vadd.f32 %v310_v41, %v282_v40  ;;  %v340_v58 = vmul.f32 %v501_v37, %v1269_v33 }
  0x8f   : > { %v565_v43 = vpack.c.bf16 %v557_v35, %v557_v35  ;;  %v490_v55 = vadd.f32 %v482_v52, %v462_v39  ;;  %v463_v60 = vadd.f32 %v455_v1, %v432_v47  ;;  %v405_v28 = vadd.f32 %v397_v23, %v375_v53  ;;  %v473_v1 = vld [vmem:[#allocation2 + $0x71] sm:$0xff] }
  0x90   : > { %v534_v48 = vadd.f32 %v1312_v57, %v519_v46  ;;  %v425_v61 = vmul.f32 %v501_v37, %v1278_v45  ;;  %v456_v52 = vmul.f32 %v1280_v49, %v444_v54  ;;  %v348_v63 = vadd.f32 %v340_v58, %v318_v56  ;;  %v503_v37 = vld [vmem:[#allocation2 + $0x72] sm:$0xff] }
  0x91   : > { %574 = vst.msk [vmem:[%s1334_s18] sm:$0xf] %vm573_vm2, %v565_v43  ;;  %v520_v62 = vadd.f32 %v512_v59, %v490_v55  ;;  %v368_v2 = vmul.f32 %v444_v54, %v1274_v42  ;;  %v491_v8 = vadd.f32 %v483_v22, %v463_v60  ;;  %v484_v9 = vmul.f32 %v1282_v50, %v472_v27 }
  0x92   : > { %v558_v3 = vadd.f32 %v712_v11, %v534_v48  ;;  %v433_v0 = vadd.f32 %v425_v61, %v405_v28  ;;  %v398_v21 = vmul.f32 %v472_v27, %v1276_v44  ;;  %v283_v59 = vmul.f32 %v444_v54, %v1265_v31  ;;  %v446_v54 = vld [vmem:[#allocation2 + $0x80] sm:$0xff] }
  0x93   : > { %v535_v7 = vadd.f32 %v1312_v57, %v520_v62  ;;  %v376_v20 = vadd.f32 %v368_v2, %v348_v63  ;;  %v521_v25 = vadd.f32 %v513_v10, %v491_v8  ;;  %v311_v4 = vmul.f32 %v472_v27, %v1267_v32  ;;  %v474_v63 = vld [vmem:[#allocation2 + $0x81] sm:$0xff] }
  0x94   : > { %v566_v24 = vpack.c.bf16 %v558_v3, %v558_v3  ;;  %v464_v26 = vadd.f32 %v456_v52, %v433_v0  ;;  %v514_v22 = vmul.f32 %v1284_v51, %v502_v15  ;;  %v426_v35 = vmul.f32 %v502_v15, %v1278_v45 }
  0x95   : > { %v559_v11 = vadd.f32 %v715_v12, %v535_v7  ;;  %v406_v34 = vadd.f32 %v398_v21, %v376_v20  ;;  %v536_v30 = vadd.f32 %v1312_v57, %v521_v25  ;;  %v319_v38 = vadd.f32 %v311_v4, %v283_v59  ;;  %v475_v4 = vld [vmem:[#allocation2 + $0x91] sm:$0xff] }
  0x96   : > { %575 = vst.msk [vmem:[%s1334_s18 + $0x4] sm:$0xf] %vm573_vm2, %v566_v24  ;;  %v492_v36 = vadd.f32 %v484_v9, %v464_v26  ;;  %v341_v39 = vmul.f32 %v502_v15, %v1269_v33  ;;  %v457_v41 = vmul.f32 %v1280_v49, %v445_v29  ;;  %v485_v12 = vmul.f32 %v1282_v50, %v473_v1  ;;  %v504_v15 = vld [vmem:[#allocation2 + $0x82] sm:$0xff] }
  0x97   : > { %v567_v23 = vpack.c.bf16 %v559_v11, %v559_v11  ;;  %v434_v40 = vadd.f32 %v426_v35, %v406_v34  ;;  %v560_v43 = vadd.f32 %v716_v13, %v536_v30  ;;  %v369_v53 = vmul.f32 %v445_v29, %v1274_v42  ;;  %v505_v34 = vld [vmem:[#allocation2 + $0x92] sm:$0xff] }
  0x98   : > { %v522_v46 = vadd.f32 %v514_v22, %v492_v36  ;;  %v349_v47 = vadd.f32 %v341_v39, %v319_v38  ;;  %v515_v10 = vmul.f32 %v1284_v51, %v503_v37  ;;  %v284_v27 = vmul.f32 %v445_v29, %v1265_v31 }
  0x99   : > { %576 = vst.msk [vmem:[%s1334_s18 + $0x8] sm:$0xf] %vm573_vm2, %v567_v23  ;;  %v465_v55 = vadd.f32 %v457_v41, %v434_v40  ;;  %v312_v56 = vmul.f32 %v473_v1, %v1267_v32  ;;  %v568_v58 = vpack.c.bf16 %v560_v43, %v560_v43  ;;  %v399_v13 = vmul.f32 %v473_v1, %v1276_v44 }
  0x9a   : > { %v537_v48 = vadd.f32 %v1312_v57, %v522_v46  ;;  %v377_v5 = vadd.f32 %v369_v53, %v349_v47  ;;  %v342_v61 = vmul.f32 %v503_v37, %v1269_v33  ;;  %v370_v62 = vmul.f32 %v446_v54, %v1274_v42  ;;  %v447_v33 = vld [vmem:[#allocation2 + $0x90] sm:$0xff] }
  0x9b   : > { %v493_v60 = vadd.f32 %v485_v12, %v465_v55  ;;  %v320_v28 = vadd.f32 %v312_v56, %v284_v27  ;;  %577 = vst.msk [vmem:[%s1334_s18 + $0xc] sm:$0xf] %vm573_vm2, %v568_v58  ;;  %v427_v32 = vmul.f32 %v503_v37, %v1278_v45  ;;  %v458_v9 = vmul.f32 %v1280_v49, %v446_v54 }
  0x9c   : > { %v561_v31 = vadd.f32 %v719_v16, %v537_v48  ;;  %v407_v52 = vadd.f32 %v399_v13, %v377_v5  ;;  %v400_v20 = vmul.f32 %v474_v63, %v1276_v44  ;;  %v486_v21 = vmul.f32 %v1282_v50, %v474_v63 }
  0x9d   : > { %v523_v2 = vadd.f32 %v515_v10, %v493_v60  ;;  %v350_v3 = vadd.f32 %v342_v61, %v320_v28  ;;  %v428_v25 = vmul.f32 %v504_v15, %v1278_v45  ;;  %v459_v26 = vmul.f32 %v1280_v49, %v447_v33 }
  0x9e   : > { %v569_v8 = vpack.c.bf16 %v561_v31, %v561_v31  ;;  %v435_v0 = vadd.f32 %v427_v32, %v407_v52  ;;  %v516_v1 = vmul.f32 %v1284_v51, %v504_v15  ;;  %v517_v35 = vmul.f32 %v1284_v51, %v505_v34 }
  0x9f   : > { %v538_v42 = vadd.f32 %v1312_v57, %v523_v2  ;;  %v378_v7 = vadd.f32 %v370_v62, %v350_v3 }
  0xa0   : > { %578 = vst.msk [vmem:[%s1334_s18 + $0x10] sm:$0xf] %vm573_vm2, %v569_v8  ;;  %v466_v16 = vadd.f32 %v458_v9, %v435_v0 }
  0xa1   : > { %v562_v59 = vadd.f32 %v720_v17, %v538_v42  ;;  %v408_v24 = vadd.f32 %v400_v20, %v378_v7  ;;  %v487_v17 = vmul.f32 %v1282_v50, %v475_v4 }
  0xa2   : > { %v494_v29 = vadd.f32 %v486_v21, %v466_v16 }
  0xa3   : > { %v570_v44 = vpack.c.bf16 %v562_v59, %v562_v59  ;;  %v436_v11 = vadd.f32 %v428_v25, %v408_v24 }
  0xa4   : > { %v524_v22 = vadd.f32 %v516_v1, %v494_v29 }
  0xa5   : > { %579 = vst.msk [vmem:[%s1334_s18 + $0x14] sm:$0xf] %vm573_vm2, %v570_v44  ;;  %v467_v6 = vadd.f32 %v459_v26, %v436_v11 }
  0xa6   : > { %v539_v45 = vadd.f32 %v1312_v57, %v524_v22 }
  0xa7   : > { %v495_v49 = vadd.f32 %v487_v17, %v467_v6 }
  0xa8   : > { %v563_v30 = vadd.f32 %v723_v18, %v539_v45 }
  0xa9   : > { %v525_v36 = vadd.f32 %v517_v35, %v495_v49 }
  0xaa   : > { %v571_v37 = vpack.c.bf16 %v563_v30, %v563_v30 }
  0xab   : > { %v540_v38 = vadd.f32 %v1312_v57, %v525_v36 }
  0xac   : > { %580 = vst.msk [vmem:[%s1334_s18 + $0x18] sm:$0xf] %vm573_vm2, %v571_v37 }
  0xad   : > { %v564_v50 = vadd.f32 %v724_v19, %v540_v38 }
  0xaf   : > { %v572_v18 = vpack.c.bf16 %v564_v50, %v564_v50 }
  0xb1   : > { %581 = vst.msk [vmem:[%s1334_s18 + $0x1c] sm:$0xf] %vm573_vm2, %v572_v18 }
  0xb2   : > { %918 = shalt.err (!%p915_p1)
}
  0xb3   : > { %s919_s11 = scalar_lea.hbm %s1406_s28, 512  ;;  %s923_s27 = scalar_lea.hbm %s1455_s3, 1024 }
  0xb4   : > { %p920_p13 = scmp.ne.s32.totalorder %s1406_s28, %s919_s11  ;;  %p924_p4 = scmp.lt.u32.totalorder %s1406_s28, %s1455_s3 }
  0xb5   : > { %p925_p5 = scmp.lt.u32.totalorder %s923_s27, %s919_s11  ;;  %p927_p11 = scmp.lt.u32.totalorder %s919_s11, %s1406_s28 }
  0xb6   : > { %p921_p6 = pnand %p920_p13, %p1469_p0 }
  0xb7   : > { %p926_p8 = por %p925_p5, %p924_p4 }
  0xb8   : > { %p922_p10 = pneg %p921_p6 }
  0xb9   : > { %p928_p2 = por %p927_p11, %p926_p8 }
  0xbb   : > { %p929_p3 = pnand %p928_p2, %p922_p10 }
  0xbd   : > { %932 = shalt.err (!%p929_p3)
}
  0xbe   : > { %s984_s22 = smov 64   ;;  %s985_s18 = smov 4  }
  0xbf   : > { %757 = dma.vmem_to_hbm [thread:$0]  (%p1469_p0), %s1401_s20, 512, %s1406_s28, %s583_s29, %s984_s22, %s984_s22, %s985_s18  }
  0xc0 PF: > { %s611_s7 = sand.u32 1, %s963_s12   ;;  %p1470_p7 = scmp.ne.s32.totalorder %s1460_s19, 0 }
  0xc1   : > { %p1471_p9 = scmp.ge.s32.totalorder %s975_s15, 2  ;;  %s612_s8 = scalar_lea.sflag [#allocation5], %s611_s7 }
  0xc3   : > { %p771_p12 = pnand %p1471_p9, %p1470_p7 }
  0xc5   : > { %958 = dma.done.wait (!%p771_p12), %s612_s8, 512  }
  0xc6   : > { %960 = vsyncadd (!%p771_p12), %s612_s8, 4294966784  ;;  %p17_p1 = scmp.ge.s32.totalorder %s1120_s5, 4   ;;  %s1472_s12 = smov %s967_s13 }
  0xc7   : > { %s1473_s13 = smov %s971_s14  ;;  %s1474_s14 = smov %s1136_s10 }
  0xc8   : > { %s1475_s15 = smov %s1120_s5  ;;  %19 = sbr.rel (!%p17_p1) target bundleno = 6 (0x6), region = 87 }
  0xcf   :  { %617 = vsyncpa [#allocation4], 1 }
  0xd0   :  { %619 = vsyncpa [#allocation4 + $0x1], 1 }
  0xd1   :  { %620 = vsyncpa [#allocation7], 1 }
  0xd2   :  { %621 = vsyncpa [#allocation5], 1 }
  0xd3   :  { %623 = vsyncpa [#allocation5 + $0x1], 1 }

// kernel: efficientvit_stage.6
= control target key start
LH: loop header
LB: loop body
LE: loop exit
PB: predicated region body
PF: predicated region fallthrough
CT: control target
= control target key end

     0   :  { %10 = vsyncpa [#allocation3], 0  ;;  %s840_s0 = inlined_call_operand.hbm [shape: bf16[16,128], index: 0, kind: input, shape index: {}]   ;;  %s841_s1 = inlined_call_operand.hbm [shape: bf16[128,256], index: 1, kind: input, shape index: {}]   ;;  %s842_s2 = inlined_call_operand.hbm [shape: f32[1,256], index: 2, kind: input, shape index: {}]   ;;  %s843_s3 = inlined_call_operand.hbm [shape: bf16[256,128], index: 3, kind: input, shape index: {}]   ;;  %s844_s4 = inlined_call_operand.hbm [shape: f32[1,128], index: 4, kind: input, shape index: {}]   ;;  %s845_s5 = inlined_call_operand.hbm [shape: bf16[16,128], index: 5, kind: output, shape index: {}]  }
   0x1   :  { %11 = vsyncpa [#allocation6], 0 }
   0x2   :  { %12 = vsyncpa [#allocation9], 0 }
   0x3   :  { %13 = vsyncpa [#allocation4], 0  ;;  %s718_s18 = smov [#allocation5]   ;;  %s578_s22 = scalar_lea.hbm %s841_s1, 2048 }
   0x4   :  { %s31_s19 = sshll.u32 %s718_s18, 4  ;;  %p579_p0 = scmp.ne.s32.totalorder %s841_s1, %s578_s22  ;;  %s32_s19 = int_to_ptr.vmem [resolvable:$true] %s31_s19 }
   0x5   :  { %p582_p1 = scmp.lt.u32.totalorder %s578_s22, %s841_s1 }
   0x7   :  { %p584_p2 = pnand %p582_p1, %p579_p0 }
   0x9   :  { %587 = shalt.err (!%p584_p2)
}
   0xa   :  { %s588_s27 = scalar_lea.vmem %s32_s19, 2048  ;;  %p593_p4 = scmp.lt.s32.totalorder %s32_s19, %s32_s19 }
   0xb   :  { %p589_p3 = scmp.ne.s32.totalorder %s32_s19, %s588_s27  ;;  %p594_p5 = scmp.lt.s32.totalorder %s588_s27, %s588_s27 }
   0xd   :  { %p595_p6 = por %p594_p5, %p593_p4 }
   0xf   :  { %p596_p7 = pnand %p595_p6, %p589_p3 }
  0x11   :  { %599 = shalt.err (!%p596_p7)
}
  0x12   :  { %s719_s28 = smov 128   ;;  %s720_s29 = smov 8  }
  0x13   :  { %37 = dma.hbm_to_vmem [thread:$0]  %s841_s1, 2048, %s32_s19, [#allocation6], %s719_s28, %s719_s28, %s720_s29  }
  0x14   :  { %s721_s7 = smov [#allocation8]   ;;  %s722_s9 = smov [#allocation2]  }
  0x15   :  { %s53_s8 = sshll.u32 %s721_s7, 4  ;;  %s19_s10 = sshll.u32 %s722_s9, 4  ;;  %s54_s8 = int_to_ptr.vmem [resolvable:$true] %s53_s8  ;;  %s20_s10 = int_to_ptr.vmem [resolvable:$true] %s19_s10 }
  0x16   :  { %s600_s13 = scalar_lea.hbm %s843_s3, 2048 }
  0x17   :  { %p601_p8 = scmp.ne.s32.totalorder %s843_s3, %s600_s13  ;;  %p604_p9 = scmp.lt.u32.totalorder %s600_s13, %s843_s3 }
  0x19   :  { %p606_p10 = pnand %p604_p9, %p601_p8 }
  0x1b   :  { %609 = shalt.err (!%p606_p10)
}
  0x1c   :  { %s610_s1 = scalar_lea.vmem %s54_s8, 2048  ;;  %p615_p12 = scmp.lt.s32.totalorder %s54_s8, %s54_s8 }
  0x1d   :  { %p611_p11 = scmp.ne.s32.totalorder %s54_s8, %s610_s1  ;;  %p616_p13 = scmp.lt.s32.totalorder %s610_s1, %s610_s1 }
  0x1f   :  { %p617_p0 = por %p616_p13, %p615_p12 }
  0x21   :  { %p618_p1 = pnand %p617_p0, %p611_p11 }
  0x23   :  { %621 = shalt.err (!%p618_p1)
}
  0x24   :  { %s723_s18 = smov 64   ;;  %s724_s19 = smov 4  }
  0x25   :  { %59 = dma.hbm_to_vmem [thread:$0]  %s843_s3, 2048, %s54_s8, [#allocation9], %s723_s18, %s723_s18, %s724_s19  }
  0x26   :  { %s622_s24 = scalar_lea.hbm %s840_s0, 128 }
  0x27   :  { %p623_p2 = scmp.ne.s32.totalorder %s840_s0, %s622_s24  ;;  %p626_p3 = scmp.lt.u32.totalorder %s622_s24, %s840_s0 }
  0x29   :  { %p628_p4 = pnand %p626_p3, %p623_p2 }
  0x2b   :  { %631 = shalt.err (!%p628_p4)
}
  0x2c   :  { %s632_s29 = scalar_lea.vmem %s20_s10, 128  ;;  %p637_p6 = scmp.lt.s32.totalorder %s20_s10, %s20_s10 }
  0x2d   :  { %p633_p5 = scmp.ne.s32.totalorder %s20_s10, %s632_s29  ;;  %p638_p7 = scmp.lt.s32.totalorder %s632_s29, %s632_s29 }
  0x2f   :  { %p639_p8 = por %p638_p7, %p637_p6 }
  0x31   :  { %p640_p9 = pnand %p639_p8, %p633_p5 }
  0x33   :  { %643 = shalt.err (!%p640_p9)
}
  0x34   :  { %25 = dma.hbm_to_vmem [thread:$0]  %s840_s0, 128, %s20_s10, [#allocation3], %s723_s18, %s723_s18, %s724_s19  }
  0x35   :  { %s725_s6 = smov [#allocation7]   ;;  %s726_s8 = smov [#allocation10]  }
  0x36   :  { %s44_s7 = sshll.u32 %s725_s6, 4  ;;  %s66_s9 = sshll.u32 %s726_s8, 4  ;;  %s45_s7 = int_to_ptr.vmem [resolvable:$true] %s44_s7  ;;  %s67_s9 = int_to_ptr.vmem [resolvable:$true] %s66_s9 }
  0x37   :  { %s644_s13 = scalar_lea.hbm %s842_s2, 32 }
  0x38   :  { %p645_p10 = scmp.ne.s32.totalorder %s842_s2, %s644_s13  ;;  %p648_p11 = scmp.lt.u32.totalorder %s644_s13, %s842_s2 }
  0x3a   :  { %p650_p12 = pnand %p648_p11, %p645_p10 }
  0x3c   :  { %653 = shalt.err (!%p650_p12)
}
  0x3d   :  { %s654_s0 = scalar_lea.vmem %s45_s7, 32  ;;  %p659_p0 = scmp.lt.s32.totalorder %s45_s7, %s45_s7 }
  0x3e   :  { %p655_p13 = scmp.ne.s32.totalorder %s45_s7, %s654_s0  ;;  %p660_p1 = scmp.lt.s32.totalorder %s654_s0, %s654_s0 }
  0x40   :  { %p661_p2 = por %p660_p1, %p659_p0 }
  0x42   :  { %p662_p3 = pnand %p661_p2, %p655_p13 }
  0x44   :  { %665 = shalt.err (!%p662_p3)
}
  0x45   :  { %47 = dma.hbm_to_vmem [thread:$0]  %s842_s2, 32, %s45_s7, [#allocation6]  }
  0x46   :  { %s666_s22 = scalar_lea.hbm %s844_s4, 16 }
  0x47   :  { %p667_p4 = scmp.ne.s32.totalorder %s844_s4, %s666_s22  ;;  %p670_p5 = scmp.lt.u32.totalorder %s666_s22, %s844_s4 }
  0x49   :  { %p672_p6 = pnand %p670_p5, %p667_p4 }
  0x4b   :  { %675 = shalt.err (!%p672_p6)
}
  0x4c   :  { %s676_s27 = scalar_lea.vmem %s67_s9, 16  ;;  %s680_s28 = scalar_lea.vmem %s67_s9, 32 }
  0x4d   :  { %p677_p7 = scmp.ne.s32.totalorder %s67_s9, %s676_s27  ;;  %p681_p8 = scmp.lt.s32.totalorder %s67_s9, %s67_s9 }
  0x4e   :  { %p682_p9 = scmp.lt.s32.totalorder %s680_s28, %s676_s27 }
  0x50   :  { %p683_p10 = por %p682_p9, %p681_p8 }
  0x52   :  { %p684_p11 = pnand %p683_p10, %p677_p7 }
  0x54   :  { %687 = shalt.err (!%p684_p11)
}
  0x55   :  { %69 = dma.hbm_to_vmem [thread:$0]  %s844_s4, 16, %s67_s9, [#allocation9]  }
  0x56   :  { %710 = dma.done.wait [#allocation3], 128  }
  0x57   :  { %711 = vsyncadd [#allocation3], 4294967168 }
  0x58   :  { %712 = dma.done.wait [#allocation6], 2080  }
  0x59   :  { %713 = vsyncadd [#allocation6], 4294965216 }
  0x5a   :  { %714 = dma.done.wait [#allocation9], 2064  }
  0x5b   :  { %715 = vsyncadd [#allocation9], 4294965232  ;;  %v727_v0 = vmov 0   ;;  %v536_v1 = vld [vmem:[#allocation5 + $0x4] ss:$8 sps:$4 sm:$0xff]   ;;  %v565_v15 = vld [vmem:[#allocation8 + $0x50] sm:$0xff]   ;;  %v106_v34 = vlaneseq }
  0x5c   :  { %234 = vmatprep.mubr.bf16.mxu0 %v727_v0  ;;  %v538_v2 = vld [vmem:[#allocation5] ss:$8 sps:$4 sm:$0xff]   ;;  %202 = vmatprep.subr.bf16.mxu0 %v536_v1  ;;  %v539_v3 = vld [vmem:[#allocation5 + $0x14] ss:$8 sps:$4 sm:$0xff]   ;;  %v541_v4 = vld [vmem:[#allocation5 + $0x10] ss:$8 sps:$4 sm:$0xff]  }
  0x5d   :  { %203 = vmatpush1.bf16.msra.mxu0 %v538_v2  ;;  %v542_v5 = vld [vmem:[#allocation5 + $0x24] ss:$8 sps:$4 sm:$0xff]   ;;  %v544_v6 = vld [vmem:[#allocation5 + $0x20] ss:$8 sps:$4 sm:$0xff]   ;;  %v545_v7 = vld [vmem:[#allocation5 + $0x34] ss:$8 sps:$4 sm:$0xff]  }
  0x5e   :  { %204 = vmatprep.subr.bf16.mxu0 %v539_v3  ;;  %v547_v8 = vld [vmem:[#allocation5 + $0x30] ss:$8 sps:$4 sm:$0xff]   ;;  %v548_v9 = vld [vmem:[#allocation5 + $0x44] ss:$8 sps:$4 sm:$0xff]   ;;  %v550_v12 = vld [vmem:[#allocation5 + $0x40] ss:$8 sps:$4 sm:$0xff]  }
  0x5f   :  { %v561_v10 = vld [vmem:[#allocation8 + $0x40] sm:$0xff]   ;;  %v563_v13 = vld [vmem:[#allocation8 + $0x48] sm:$0xff]   ;;  %v551_v16 = vld [vmem:[#allocation5 + $0x54] ss:$8 sps:$4 sm:$0xff]   ;;  %v107_v35 = vshrl.u32 %v106_v34, 7  ;;  %s728_s4 = smov [#allocation11]  }
  0x60   :  { %v562_v11 = vld [vmem:[#allocation8] sm:$0xff]   ;;  %503 = vmatprep.subr.bf16.mxu1 %v561_v10  ;;  %v564_v14 = vld [vmem:[#allocation8 + $0x8] sm:$0xff]   ;;  %v566_v18 = vld [vmem:[#allocation8 + $0x10] sm:$0xff]   ;;  %s446_s3 = sshll.u32 %s728_s4, 4  ;;  %s447_s3 = int_to_ptr.vmem [resolvable:$true] %s446_s3 }
  0x61   :  { %205 = vmatpush1.bf16.msra.mxu0 %v541_v4  ;;  %504 = vmatpush3.bf16.msra.mxu1 %v562_v11  ;;  %v553_v17 = vld [vmem:[#allocation5 + $0x50] ss:$8 sps:$4 sm:$0xff]   ;;  %v554_v20 = vld [vmem:[#allocation5 + $0x64] ss:$8 sps:$4 sm:$0xff]   ;;  %v556_v21 = vld [vmem:[#allocation5 + $0x60] ss:$8 sps:$4 sm:$0xff]   ;;  %p693_p13 = scmp.lt.s32.totalorder %s447_s3, %s447_s3 }
  0x62   :  { %206 = vmatprep.subr.bf16.mxu0 %v542_v5  ;;  %505 = vmatprep.subr.bf16.mxu1 %v563_v13  ;;  %v567_v19 = vld [vmem:[#allocation8 + $0x58] sm:$0xff]   ;;  %v569_v24 = vld [vmem:[#allocation8 + $0x60] sm:$0xff]   ;;  %v571_v28 = vld [vmem:[#allocation8 + $0x68] sm:$0xff]   ;;  %v108_v36 = vsub.s32 0, %v107_v35  ;;  %v112_v38 = vsub.s32 1, %v107_v35  ;;  %s688_s30 = scalar_lea.vmem %s447_s3, 128 }
  0x63   :  { %v568_v22 = vld [vmem:[#allocation8 + $0x18] sm:$0xff]   ;;  %v570_v25 = vld [vmem:[#allocation8 + $0x20] sm:$0xff]   ;;  %v572_v29 = vld [vmem:[#allocation8 + $0x28] sm:$0xff]   ;;  %p689_p12 = scmp.ne.s32.totalorder %s447_s3, %s688_s30  ;;  %p694_p0 = scmp.lt.s32.totalorder %s688_s30, %s688_s30 }
  0x64   :  { %v557_v23 = vld [vmem:[#allocation5 + $0x74] ss:$8 sps:$4 sm:$0xff]   ;;  %v559_v26 = vld [vmem:[#allocation5 + $0x70] ss:$8 sps:$4 sm:$0xff]   ;;  %v104_v37 = vld [vmem:[#allocation7] sm:$0x3] }
  0x65   :  { %207 = vmatpush1.bf16.msra.mxu0 %v544_v6  ;;  %506 = vmatpush3.bf16.msra.mxu1 %v564_v14  ;;  %v86_v27 = vld [vmem:[#allocation2] sm:$0xff]   ;;  %v109_v39 = vrot.slane %v104_v37, %v108_v36  ;;  %v113_v40 = vrot.slane %v104_v37, %v112_v38  ;;  %v477_v56 = vld [vmem:[#allocation10] ss:$0 sm:$0xff]  ;;  %p695_p1 = por %p694_p0, %p693_p13 }
  0x66   :  { %208 = vmatprep.subr.bf16.mxu0 %v545_v7  ;;  %507 = vmatprep.subr.bf16.mxu1 %v565_v15  ;;  %v573_v30 = vld [vmem:[#allocation8 + $0x70] sm:$0xff]   ;;  %v575_v32 = vld [vmem:[#allocation8 + $0x78] sm:$0xff]   ;;  %v427_v58 = vunpack.c.l.bf16 %v86_v27  ;;  %v428_v62 = vunpack.c.h.bf16 %v86_v27 }
  0x67   :  { %v574_v31 = vld [vmem:[#allocation8 + $0x30] sm:$0xff]   ;;  %v576_v33 = vld [vmem:[#allocation8 + $0x38] sm:$0xff]   ;;  %p696_p2 = pnand %p695_p1, %p689_p12 }
  0x69   :  { %209 = vmatpush1.bf16.msra.mxu0 %v547_v8  ;;  %508 = vmatpush3.bf16.msra.mxu1 %v566_v18 }
  0x6a   :  { %210 = vmatprep.subr.bf16.mxu0 %v548_v9  ;;  %509 = vmatprep.subr.bf16.mxu1 %v567_v19 }
  0x6d   :  { %211 = vmatpush1.bf16.msra.mxu0 %v550_v12  ;;  %510 = vmatpush3.bf16.msra.mxu1 %v568_v22 }
  0x6e   :  { %212 = vmatprep.subr.bf16.mxu0 %v551_v16  ;;  %511 = vmatprep.subr.bf16.mxu1 %v569_v24 }
  0x71   :  { %213 = vmatpush1.bf16.msra.mxu0 %v553_v17  ;;  %512 = vmatpush3.bf16.msra.mxu1 %v570_v25 }
  0x72   :  { %214 = vmatprep.subr.bf16.mxu0 %v554_v20  ;;  %513 = vmatprep.subr.bf16.mxu1 %v571_v28 }
  0x75   :  { %215 = vmatpush1.bf16.msra.mxu0 %v556_v21  ;;  %514 = vmatpush3.bf16.msra.mxu1 %v572_v29 }
  0x76   :  { %216 = vmatprep.subr.bf16.mxu0 %v557_v23  ;;  %515 = vmatprep.subr.bf16.mxu1 %v573_v30 }
  0x79   :  { %217 = vmatpush1.bf16.msra.mxu0 %v559_v26  ;;  %516 = vmatpush3.bf16.msra.mxu1 %v574_v31 }
  0x7a   :  { %517 = vmatprep.subr.bf16.mxu1 %v575_v32 }
  0x7c   :  { %235 = vmatmul.mubr.bf16.vlgmr.msra.gmra.mrb[0].mxu0 %v86_v27 }
  0x7d   :  { %518 = vmatpush3.bf16.msra.mxu1 %v576_v33 }
 0x14f   :  { %v236_v41 = vpop.f32.mrb[0].mxu0 }
 0x150   :  { %v237_v42 = vadd.f32 %v236_v41, %v109_v39  ;;  %v238_v43 = vpop.f32.mrb[1].mxu0 }
 0x151   :  { %v239_v44 = vadd.f32 %v238_v43, %v113_v40  ;;  %v240_v45 = vpop.f32.mrb[2].mxu0 }
 0x152   :  { %v241_v46 = vadd.f32 %v240_v45, %v109_v39  ;;  %v242_v47 = vpop.f32.mrb[3].mxu0  ;;  %v245_v49 = vmax.f32 %v237_v42, 0.0 }
 0x153   :  { %v243_v48 = vadd.f32 %v242_v47, %v113_v40  ;;  %v246_v51 = vmax.f32 %v239_v44, 0.0 }
 0x154   :  { %v247_v50 = vmax.f32 %v241_v46, 0.0 }
 0x155   :  { %v248_v52 = vmax.f32 %v243_v48, 0.0 }
 0x156   :  { %v249_v53 = vpack.c.bf16 %v247_v50, %v245_v49 }
 0x157   :  { %v250_v54 = vpack.c.bf16 %v248_v52, %v246_v51 }
 0x159   :  { %418 = vmatprep.mubr.bf16.mxu1 %v250_v54 }
 0x15a   :  { %419 = vmatmul.mubr.bf16.vlgmr.msra.gmra.mrb[0].mxu1 %v249_v53 }
 0x22d   :  { %v519_v55 = vpop.f32.mrb[0].mxu1 }
 0x22e   :  { %v520_v57 = vpop.f32.mrb[1].mxu1 }
 0x22f   :  { %v521_v59 = vadd.f32 %v520_v57, %v519_v55  ;;  %v522_v60 = vpop.f32.mrb[2].mxu1 }
 0x230   :  { %v523_v61 = vpop.f32.mrb[3].mxu1 }
 0x231   :  { %v421_v63 = vadd.f32 %v521_v59, %v477_v56  ;;  %v524_v0 = vadd.f32 %v523_v61, %v522_v60 }
 0x233   :  { %v429_v1 = vadd.f32 %v427_v58, %v421_v63  ;;  %v424_v2 = vadd.f32 %v524_v0, %v477_v56 }
 0x235   :  { %v430_v3 = vadd.f32 %v428_v62, %v424_v2 }
 0x237   :  { %v501_v4 = vpack.c.bf16 %v430_v3, %v429_v1 }
 0x239   :  { %502 = vst [vmem:[#allocation11] sm:$0xff] %v501_v4  }
 0x23a   :  { %699 = shalt.err (!%p696_p2)
}
 0x23b   :  { %s700_s8 = scalar_lea.hbm %s845_s5, 128 }
 0x23c   :  { %p701_p3 = scmp.ne.s32.totalorder %s845_s5, %s700_s8  ;;  %p704_p4 = scmp.lt.u32.totalorder %s700_s8, %s845_s5 }
 0x23e   :  { %p706_p5 = pnand %p704_p4, %p701_p3 }
 0x240   :  { %709 = shalt.err (!%p706_p5)
}
 0x241   :  { %452 = dma.vmem_to_hbm [thread:$0]  %s447_s3, 128, %s845_s5, [#allocation4], %s723_s18, %s723_s18, %s724_s19  }
 0x242   :  { %716 = dma.done.wait [#allocation4], 128  }
 0x243   :  { %717 = vsyncadd [#allocation4], 4294967168 }
 0x244   :  { %456 = vsyncpa [#allocation3], 1 }
 0x245   :  { %457 = vsyncpa [#allocation6], 1 }
 0x246   :  { %458 = vsyncpa [#allocation9], 1 }
 0x247   :  { %459 = vsyncpa [#allocation4], 1 }

// kernel: efficientvit_stage.7
= control target key start
LH: loop header
LB: loop body
LE: loop exit
PB: predicated region body
PF: predicated region fallthrough
CT: control target
= control target key end

     0   :  { %s5014_s0 = inlined_call_operand.hbm [shape: bf16[2,8,8,16], index: 0, kind: input, shape index: {}]   ;;  %s5015_s1 = inlined_call_operand.hbm [shape: bf16[16,8], index: 1, kind: input, shape index: {}]   ;;  %s5016_s2 = inlined_call_operand.hbm [shape: f32[1,8], index: 2, kind: input, shape index: {}]   ;;  %s5017_s3 = inlined_call_operand.hbm [shape: bf16[16,16,4], index: 3, kind: input, shape index: {}]   ;;  %s5018_s4 = inlined_call_operand.hbm [shape: f32[1,4], index: 4, kind: input, shape index: {}]   ;;  %s5019_s5 = inlined_call_operand.hbm [shape: bf16[16,16,16], index: 5, kind: input, shape index: {}]   ;;  %s5020_s6 = inlined_call_operand.hbm [shape: f32[1,16], index: 6, kind: input, shape index: {}]   ;;  %s5021_s7 = inlined_call_operand.hbm [shape: f32[16,16], index: 7, kind: input, shape index: {}]   ;;  %s5022_s8 = inlined_call_operand.hbm [shape: bf16[16,16], index: 8, kind: input, shape index: {}]   ;;  %s5023_s9 = inlined_call_operand.hbm [shape: f32[1,16], index: 9, kind: input, shape index: {}]   ;;  %s5024_s10 = inlined_call_operand.hbm [shape: bf16[2,8,8,16], index: 10, kind: output, shape index: {}]  }
   0x1   :  { %5130 = sst [smem:[#allocation55_spill]] %s5014_s0 }
   0x2   :  { %5131 = sst [smem:[#allocation56_spill]] %s5015_s1 }
   0x3   :  { %5132 = sst [smem:[#allocation57_spill]] %s5016_s2 }
   0x4   :  { %5133 = sst [smem:[#allocation58_spill]] %s5017_s3 }
   0x5   :  { %5134 = sst [smem:[#allocation59_spill]] %s5018_s4 }
   0x6   :  { %5135 = sst [smem:[#allocation60_spill]] %s5019_s5 }
   0x7   :  { %5136 = sst [smem:[#allocation61_spill]] %s5020_s6 }
   0x8   :  { %5137 = sst [smem:[#allocation62_spill]] %s5024_s10 }
   0x9   :  { %15 = vsyncpa [#allocation4], 0 }
   0xa   :  { %17 = vsyncpa [#allocation4 + $0x1], 0 }
   0xb   :  { %18 = vsyncpa [#allocation7], 0 }
   0xc   :  { %19 = vsyncpa [#allocation10], 0 }
   0xd   :  { %20 = vsyncpa [#allocation13], 0 }
   0xe   :  { %21 = vsyncpa [#allocation16], 0 }
   0xf   :  { %22 = vsyncpa [#allocation19], 0 }
  0x10   :  { %23 = vsyncpa [#allocation5], 0 }
  0x11   :  { %25 = vsyncpa [#allocation5 + $0x1], 0  ;;  %s3541_s13 = smov 0   ;;  %s3543_s14 = smov 0  }
  0x12   :  { %s3545_s15 = smov 0   ;;  %s3547_s16 = smov 0  }
  0x13   :  { %s3549_s17 = smov 0   ;;  %s3551_s18 = smov 0  }
  0x14   :  { %s3553_s19 = smov 0   ;;  %s3555_s20 = smov 0  }
  0x15 LB: > { %5138 = sst [smem:[#allocation28_spill]] %s3448_s16  ;;  %s5025_s21 = sadd.s32 4294967295, %s3464_s20   ;;  %s3464_s20 = sphi %s3555_s20, %s31_s20   ;;  %s3460_s19 = sphi %s3553_s19, %s5311_s19   ;;  %s3456_s18 = sphi %s3551_s18, %s5310_s18   ;;  %s3452_s17 = sphi %s3549_s17, %s5309_s17   ;;  %s3448_s16 = sphi %s3547_s16, %s5308_s16   ;;  %s3444_s15 = sphi %s3545_s15, %s5307_s15   ;;  %s3440_s14 = sphi %s3543_s14, %s5306_s14   ;;  %s3436_s13 = sphi %s3541_s13, %s5305_s13  }
  0x16   : > { %5139 = sst [smem:[#allocation29_spill]] %s3452_s17  ;;  %p2509_p0 = scmp.ge.s32.totalorder %s3464_s20, 1 }
  0x17   : > { %p3585_p1 = scmp.eq.s32.totalorder %s5025_s21, 0  ;;  %p293_p2 = scmp.lt.s32.totalorder %s3464_s20, 5 }
  0x18   : > { %s3466_s24 = smov [#allocation6]   ;;  %s3467_s27 = smov [#allocation9]  }
  0x19   : > { %s5140_s22 = scalar_select %p3585_p1, 1, 0 }
  0x1a   : > { %p3590_p3 = pnand %p2509_p0, %p293_p2  ;;  %s305_s25 = sshll.u32 %s3466_s24, 4  ;;  %s3594_s25 = int_to_ptr.vmem [resolvable:$true] %s305_s25 }
  0x1b   : > { %5141 = sst [smem:[#allocation30_spill]] %s5140_s22  ;;  %s329_s28 = sshll.u32 %s3467_s27, 4  ;;  %s3604_s28 = int_to_ptr.vmem [resolvable:$true] %s329_s28 }
  0x1c   : > { %s5142_s23 = scalar_select %p3590_p3, 1, 0 }
  0x1d   : > { %p2886_p4 = pneg %p3590_p3  ;;  %s3468_s29 = smov [#allocation12]  }
  0x1e   : > { %5143 = sst [smem:[#allocation31_spill]] %s5142_s23  ;;  %s3606_s30 = sshll.u32 %s3468_s29, 4  ;;  %s354_s30 = int_to_ptr.vmem [resolvable:$true] %s3606_s30 }
  0x1f   : > { %p3600_p5 = pnand %p2886_p4, %p3585_p1  ;;  %s5145_s1 = sld [smem:[#allocation56_spill]] }
  0x21   : > { %p3616_p7 = pneg %p3600_p5 }
  0x25   : > { %s3064_s24 = scalar_lea.hbm %s5145_s1, 128 }
  0x26   : > { %p3065_p6 = scmp.ne.s32.totalorder %s5145_s1, %s3064_s24  ;;  %p3071_p10 = scmp.lt.u32.totalorder %s3064_s24, %s5145_s1 }
  0x28   : > { %p3067_p8 = pnand %p3616_p7, %p3065_p6 }
  0x2a   : > { %p3068_p9 = pneg %p3067_p8 }
  0x2c   : > { %p3073_p11 = pnand %p3071_p10, %p3068_p9 }
  0x2e   : > { %3076 = shalt.err (!%p3073_p11)
}
  0x2f   : > { %s3077_s10 = scalar_lea.vmem %s3594_s25, 128  ;;  %p3085_p2 = scmp.lt.s32.totalorder %s3594_s25, %s3594_s25 }
  0x30   : > { %p3078_p12 = scmp.ne.s32.totalorder %s3594_s25, %s3077_s10  ;;  %p3086_p4 = scmp.lt.s32.totalorder %s3077_s10, %s3077_s10 }
  0x32   : > { %p3080_p13 = pnand %p3078_p12, %p3616_p7  ;;  %p3087_p6 = por %p3086_p4, %p3085_p2 }
  0x34   : > { %p3081_p0 = pneg %p3080_p13 }
  0x36   : > { %p3088_p8 = pnand %p3087_p6, %p3081_p0 }
  0x38   : > { %3091 = shalt.err (!%p3088_p8)
}
  0x39   : > { %s5034_s21 = smov 64   ;;  %s5036_s11 = smov 4  }
  0x3a   : > { %2889 = dma.hbm_to_vmem [thread:$0]  (!%p3600_p5), %s5145_s1, 128, %s3594_s25, [#allocation7], %s5034_s21, %s5034_s21, %s5036_s11  }
  0x3b   : > { %s5147_s3 = sld [smem:[#allocation58_spill]] }
  0x41   : > { %s3092_s10 = scalar_lea.hbm %s5147_s3, 2048 }
  0x42   : > { %p3093_p9 = scmp.ne.s32.totalorder %s5147_s3, %s3092_s10  ;;  %p3099_p12 = scmp.lt.u32.totalorder %s3092_s10, %s5147_s3 }
  0x44   : > { %p3095_p10 = pnand %p3093_p9, %p3616_p7 }
  0x46   : > { %p3096_p11 = pneg %p3095_p10 }
  0x48   : > { %p3101_p13 = pnand %p3099_p12, %p3096_p11 }
  0x4a   : > { %3104 = shalt.err (!%p3101_p13)
}
  0x4b   : > { %s3105_s25 = scalar_lea.vmem %s3604_s28, 2048  ;;  %p3113_p6 = scmp.lt.s32.totalorder %s3604_s28, %s3604_s28 }
  0x4c   : > { %p3106_p0 = scmp.ne.s32.totalorder %s3604_s28, %s3105_s25  ;;  %p3114_p8 = scmp.lt.s32.totalorder %s3105_s25, %s3105_s25 }
  0x4e   : > { %p3108_p2 = pnand %p3106_p0, %p3616_p7  ;;  %p3115_p9 = por %p3114_p8, %p3113_p6 }
  0x50   : > { %p3109_p4 = pneg %p3108_p2 }
  0x52   : > { %p3116_p10 = pnand %p3115_p9, %p3109_p4 }
  0x54   : > { %3119 = shalt.err (!%p3116_p10)
}
  0x55   : > { %2895 = dma.hbm_to_vmem [thread:$0]  (!%p3600_p5), %s5147_s3, 2048, %s3604_s28, [#allocation10], %s5034_s21, %s5034_s21, %s5036_s11  }
  0x56   : > { %s5148_s5 = sld [smem:[#allocation60_spill]] }
  0x5c   : > { %s3120_s12 = scalar_lea.hbm %s5148_s5, 2048 }
  0x5d   : > { %p3121_p11 = scmp.ne.s32.totalorder %s5148_s5, %s3120_s12  ;;  %p3127_p0 = scmp.lt.u32.totalorder %s3120_s12, %s5148_s5 }
  0x5f   : > { %p3123_p12 = pnand %p3121_p11, %p3616_p7 }
  0x61   : > { %p3124_p13 = pneg %p3123_p12 }
  0x63   : > { %p3129_p2 = pnand %p3127_p0, %p3124_p13 }
  0x65   : > { %3132 = shalt.err (!%p3129_p2)
}
  0x66   : > { %s3133_s25 = scalar_lea.vmem %s354_s30, 2048  ;;  %p3141_p9 = scmp.lt.s32.totalorder %s354_s30, %s354_s30 }
  0x67   : > { %p3134_p4 = scmp.ne.s32.totalorder %s354_s30, %s3133_s25  ;;  %p3142_p10 = scmp.lt.s32.totalorder %s3133_s25, %s3133_s25 }
  0x69   : > { %p3136_p6 = pnand %p3134_p4, %p3616_p7  ;;  %p3143_p3 = por %p3142_p10, %p3141_p9 }
  0x6b   : > { %p3137_p8 = pneg %p3136_p6 }
  0x6d   : > { %p3144_p1 = pnand %p3143_p3, %p3137_p8 }
  0x6f   : > { %3147 = shalt.err (!%p3144_p1)
}
  0x70   : > { %2901 = dma.hbm_to_vmem [thread:$0]  (!%p3600_p5), %s5148_s5, 2048, %s354_s30, [#allocation13], %s5034_s21, %s5034_s21, %s5036_s11  }
  0x71   : > { %s3471_s16 = smov [#allocation15]   ;;  %s3148_s24 = scalar_lea.hbm %s5021_s7, 256 }
  0x72   : > { %s377_s22 = sshll.u32 %s3471_s16, 4  ;;  %p3149_p1 = scmp.ne.s32.totalorder %s5021_s7, %s3148_s24  ;;  %s378_s22 = int_to_ptr.vmem [resolvable:$true] %s377_s22 }
  0x73   : > { %p3155_p12 = scmp.lt.u32.totalorder %s3148_s24, %s5021_s7 }
  0x74   : > { %p3151_p3 = pnand %p3149_p1, %p3616_p7 }
  0x76   : > { %p3152_p11 = pneg %p3151_p3 }
  0x78   : > { %p3157_p13 = pnand %p3155_p12, %p3152_p11 }
  0x7a   : > { %3160 = shalt.err (!%p3157_p13)
}
  0x7b   : > { %s3161_s30 = scalar_lea.vmem %s378_s22, 256  ;;  %p3169_p6 = scmp.lt.s32.totalorder %s378_s22, %s378_s22 }
  0x7c   : > { %p3162_p0 = scmp.ne.s32.totalorder %s378_s22, %s3161_s30  ;;  %p3170_p8 = scmp.lt.s32.totalorder %s3161_s30, %s3161_s30 }
  0x7e   : > { %p3164_p2 = pnand %p3162_p0, %p3616_p7  ;;  %p3171_p9 = por %p3170_p8, %p3169_p6 }
  0x80   : > { %p3165_p4 = pneg %p3164_p2 }
  0x82   : > { %p3172_p10 = pnand %p3171_p9, %p3165_p4 }
  0x84   : > { %3175 = shalt.err (!%p3172_p10)
}
  0x85   : > { %s3472_s28 = smov 128   ;;  %s3473_s0 = smov 8  }
  0x86   : > { %2907 = dma.hbm_to_vmem [thread:$0]  (!%p3600_p5), %s5021_s7, 256, %s378_s22, [#allocation16], %s3472_s28, %s3472_s28, %s3473_s0  }
  0x87   : > { %s3474_s12 = smov [#allocation8]   ;;  %s3475_s27 = smov [#allocation11]  }
  0x88   : > { %s319_s24 = sshll.u32 %s3474_s12, 4  ;;  %s343_s29 = sshll.u32 %s3475_s27, 4  ;;  %s320_s24 = int_to_ptr.vmem [resolvable:$true] %s319_s24  ;;  %s3706_s29 = int_to_ptr.vmem [resolvable:$true] %s343_s29 }
  0x89   : > { %s5149_s2 = sld [smem:[#allocation57_spill]] }
  0x8f   : > { %s3176_s30 = scalar_lea.hbm %s5149_s2, 16 }
  0x90   : > { %p3177_p1 = scmp.ne.s32.totalorder %s5149_s2, %s3176_s30  ;;  %p3183_p12 = scmp.lt.u32.totalorder %s3176_s30, %s5149_s2 }
  0x92   : > { %p3179_p3 = pnand %p3177_p1, %p3616_p7 }
  0x94   : > { %p3180_p11 = pneg %p3179_p3 }
  0x96   : > { %p3185_p13 = pnand %p3183_p12, %p3180_p11 }
  0x98   : > { %3188 = shalt.err (!%p3185_p13)
}
  0x99   : > { %s3189_s28 = scalar_lea.vmem %s320_s24, 16  ;;  %s3196_s0 = scalar_lea.vmem %s320_s24, 32 }
  0x9a   : > { %p3190_p0 = scmp.ne.s32.totalorder %s320_s24, %s3189_s28  ;;  %p3197_p6 = scmp.lt.s32.totalorder %s320_s24, %s320_s24 }
  0x9b   : > { %p3198_p8 = scmp.lt.s32.totalorder %s3196_s0, %s3189_s28 }
  0x9c   : > { %p3192_p2 = pnand %p3190_p0, %p3616_p7 }
  0x9d   : > { %p3199_p9 = por %p3198_p8, %p3197_p6 }
  0x9e   : > { %p3193_p4 = pneg %p3192_p2 }
  0xa0   : > { %p3200_p10 = pnand %p3199_p9, %p3193_p4 }
  0xa2   : > { %3203 = shalt.err (!%p3200_p10)
}
  0xa3   : > { %2892 = dma.hbm_to_vmem [thread:$0]  (!%p3600_p5), %s5149_s2, 16, %s320_s24, [#allocation7]  }
  0xa4   : > { %s5150_s4 = sld [smem:[#allocation59_spill]] }
  0xaa   : > { %s3204_s27 = scalar_lea.hbm %s5150_s4, 16 }
  0xab   : > { %p3205_p1 = scmp.ne.s32.totalorder %s5150_s4, %s3204_s27  ;;  %p3211_p12 = scmp.lt.u32.totalorder %s3204_s27, %s5150_s4 }
  0xad   : > { %p3207_p3 = pnand %p3205_p1, %p3616_p7 }
  0xaf   : > { %p3208_p11 = pneg %p3207_p3 }
  0xb1   : > { %p3213_p13 = pnand %p3211_p12, %p3208_p11 }
  0xb3   : > { %3216 = shalt.err (!%p3213_p13)
}
  0xb4   : > { %s3217_s24 = scalar_lea.vmem %s3706_s29, 16  ;;  %s3224_s22 = scalar_lea.vmem %s3706_s29, 32 }
  0xb5   : > { %p3218_p0 = scmp.ne.s32.totalorder %s3706_s29, %s3217_s24  ;;  %p3225_p6 = scmp.lt.s32.totalorder %s3706_s29, %s3706_s29 }
  0xb6   : > { %p3226_p8 = scmp.lt.s32.totalorder %s3224_s22, %s3217_s24 }
  0xb7   : > { %p3220_p2 = pnand %p3218_p0, %p3616_p7 }
  0xb8   : > { %p3227_p9 = por %p3226_p8, %p3225_p6 }
  0xb9   : > { %p3221_p4 = pneg %p3220_p2 }
  0xbb   : > { %p3228_p10 = pnand %p3227_p9, %p3221_p4 }
  0xbd   : > { %3231 = shalt.err (!%p3228_p10)
}
  0xbe   : > { %2898 = dma.hbm_to_vmem [thread:$0]  (!%p3600_p5), %s5150_s4, 16, %s3706_s29, [#allocation10]  }
  0xbf   : > { %s3476_s21 = smov [#allocation14]   ;;  %s3477_s23 = smov [#allocation17]  }
  0xc0   : > { %s367_s11 = sshll.u32 %s3476_s21, 4  ;;  %s390_s12 = sshll.u32 %s3477_s23, 4  ;;  %s368_s11 = int_to_ptr.vmem [resolvable:$true] %s367_s11  ;;  %s3750_s12 = int_to_ptr.vmem [resolvable:$true] %s390_s12 }
  0xc1   : > { %s5151_s6 = sld [smem:[#allocation61_spill]] }
  0xc7   : > { %s3232_s25 = scalar_lea.hbm %s5151_s6, 16 }
  0xc8   : > { %p3233_p1 = scmp.ne.s32.totalorder %s5151_s6, %s3232_s25  ;;  %p3239_p12 = scmp.lt.u32.totalorder %s3232_s25, %s5151_s6 }
  0xca   : > { %p3235_p3 = pnand %p3233_p1, %p3616_p7 }
  0xcc   : > { %p3236_p11 = pneg %p3235_p3 }
  0xce   : > { %p3241_p13 = pnand %p3239_p12, %p3236_p11 }
  0xd0   : > { %3244 = shalt.err (!%p3241_p13)
}
  0xd1   : > { %s3245_s22 = scalar_lea.vmem %s368_s11, 16  ;;  %s3252_s28 = scalar_lea.vmem %s368_s11, 32 }
  0xd2   : > { %p3246_p0 = scmp.ne.s32.totalorder %s368_s11, %s3245_s22  ;;  %p3253_p6 = scmp.lt.s32.totalorder %s368_s11, %s368_s11 }
  0xd3   : > { %p3254_p8 = scmp.lt.s32.totalorder %s3252_s28, %s3245_s22 }
  0xd4   : > { %p3248_p2 = pnand %p3246_p0, %p3616_p7 }
  0xd5   : > { %p3255_p9 = por %p3254_p8, %p3253_p6 }
  0xd6   : > { %p3249_p4 = pneg %p3248_p2 }
  0xd8   : > { %p3256_p10 = pnand %p3255_p9, %p3249_p4 }
  0xda   : > { %3259 = shalt.err (!%p3256_p10)
}
  0xdb   : > { %2904 = dma.hbm_to_vmem [thread:$0]  (!%p3600_p5), %s5151_s6, 16, %s368_s11, [#allocation13]  }
  0xdc   : > { %s3260_s10 = scalar_lea.hbm %s5022_s8, 128 }
  0xdd   : > { %p3261_p1 = scmp.ne.s32.totalorder %s5022_s8, %s3260_s10  ;;  %p3267_p12 = scmp.lt.u32.totalorder %s3260_s10, %s5022_s8 }
  0xdf   : > { %p3263_p3 = pnand %p3261_p1, %p3616_p7 }
  0xe1   : > { %p3264_p11 = pneg %p3263_p3 }
  0xe3   : > { %p3269_p13 = pnand %p3267_p12, %p3264_p11 }
  0xe5   : > { %3272 = shalt.err (!%p3269_p13)
}
  0xe6   : > { %s3273_s11 = scalar_lea.vmem %s3750_s12, 128  ;;  %p3281_p6 = scmp.lt.s32.totalorder %s3750_s12, %s3750_s12 }
  0xe7   : > { %p3274_p0 = scmp.ne.s32.totalorder %s3750_s12, %s3273_s11  ;;  %p3282_p8 = scmp.lt.s32.totalorder %s3273_s11, %s3273_s11 }
  0xe9   : > { %p3276_p2 = pnand %p3274_p0, %p3616_p7  ;;  %p3283_p9 = por %p3282_p8, %p3281_p6 }
  0xeb   : > { %p3277_p4 = pneg %p3276_p2 }
  0xed   : > { %p3284_p10 = pnand %p3283_p9, %p3277_p4 }
  0xef   : > { %3287 = shalt.err (!%p3284_p10)
}
  0xf0   : > { %s5152_s29 = smov 4   ;;  %s5153_s22 = smov 64  }
  0xf1   : > { %2910 = dma.hbm_to_vmem [thread:$0]  (!%p3600_p5), %s5022_s8, 128, %s3750_s12, [#allocation16], %s5153_s22, %s5153_s22, %s5152_s29  }
  0xf2   : > { %s3478_s21 = smov [#allocation18]   ;;  %s3288_s25 = scalar_lea.hbm %s5023_s9, 16 }
  0xf3   : > { %s404_s23 = sshll.u32 %s3478_s21, 4  ;;  %p3289_p1 = scmp.ne.s32.totalorder %s5023_s9, %s3288_s25  ;;  %s405_s23 = int_to_ptr.vmem [resolvable:$true] %s404_s23 }
  0xf4   : > { %p3295_p12 = scmp.lt.u32.totalorder %s3288_s25, %s5023_s9 }
  0xf5   : > { %p3291_p3 = pnand %p3289_p1, %p3616_p7 }
  0xf7   : > { %p3292_p11 = pneg %p3291_p3 }
  0xf9   : > { %p3297_p13 = pnand %p3295_p12, %p3292_p11 }
  0xfb   : > { %3300 = shalt.err (!%p3297_p13)
}
  0xfc   : > { %s3301_s12 = scalar_lea.vmem %s405_s23, 16  ;;  %s3308_s28 = scalar_lea.vmem %s405_s23, 32 }
  0xfd   : > { %p3302_p0 = scmp.ne.s32.totalorder %s405_s23, %s3301_s12  ;;  %p3309_p6 = scmp.lt.s32.totalorder %s405_s23, %s405_s23 }
  0xfe   : > { %p3310_p8 = scmp.lt.s32.totalorder %s3308_s28, %s3301_s12 }
  0xff   : > { %p3304_p2 = pnand %p3302_p0, %p3616_p7 }
 0x100   : > { %p3311_p9 = por %p3310_p8, %p3309_p6 }
 0x101   : > { %p3305_p4 = pneg %p3304_p2 }
 0x103   : > { %p3312_p10 = pnand %p3311_p9, %p3305_p4 }
 0x105   : > { %3315 = shalt.err (!%p3312_p10)
}
 0x106   : > { %2913 = dma.hbm_to_vmem [thread:$0]  (!%p3600_p5), %s5023_s9, 16, %s405_s23, [#allocation19]  }
 0x107   : > { %s2508_s17 = sadd.s32 4294967294, %s3464_s20   ;;  %s5154_s27 = sld [smem:[#allocation30_spill]] }
 0x108   : > { %s40_s10 = sadd.s32 1, %s3456_s18  ;;  %s43_s26 = sadd.s32 1, %s3460_s19 }
 0x109   : > { %p41_p7 = scmp.ge.s32.totalorder %s40_s10, 2  ;;  %s52_s25 = sadd.s32 1, %s3444_s15 }
 0x10a   : > { %p59_p1 = scmp.ne.s32.totalorder %s3444_s15, %s3440_s14  ;;  %p60_p3 = scmp.eq.s32.totalorder %s3464_s20, 0 }
 0x10b   : > { %s5313_s10 = smov (%p41_p7, %s40_s10), 0  ;;  %s5315_s26 = smov (!%p41_p7, %s43_s26), %s3460_s19 }
 0x10c   : > { %s48_s30 = ssub.s32 %s3456_s18, %s5313_s10  ;;  %p3826_p11 = por %p60_p3, %p59_p1 }
 0x10d   : > { %p45_p5 = scmp.ge.s32.totalorder %s5315_s26, 2  ;;  %p65_p12 = scmp.ne.s32.totalorder %s3440_s14, %s3436_s13 }
 0x10e   : > { %s5156_s23 = sadd.s32 4294967295, %s3464_s20   ;;  %p286_p0 = scmp.eq.s32.totalorder %s2508_s17, 3 }
 0x10f   : > { %p280_p13 = scmp.eq.s32.totalorder %s5156_s23, 3  ;;  %s5317_s26 = smov (%p45_p5, %s5315_s26), 0 }
 0x110   : > { %p5157_p2 = scmp.ne.s32.totalorder %s5154_s27, 0  ;;  %s47_s12 = ssub.s32 %s3460_s19, %s5317_s26 }
 0x111   : > { %p3842_p6 = por %p280_p13, %p59_p1  ;;  %p3848_p8 = por %p286_p0, %p65_p12 }
 0x112   : > { %p3838_p4 = por %p5157_p2, %p65_p12  ;;  %s49_s0 = sor.u32 %s48_s30, %s47_s12 }
 0x113   : > { %s5159_s11 = scalar_select %p3842_p6, 1, 0 }
 0x114   : > { %s5160_s28 = scalar_select %p3848_p8, 1, 0 }
 0x115   : > { %p2931_p9 = scmp.lt.s32.totalorder %s3464_s20, 4  ;;  %p50_p10 = scmp.eq.s32.totalorder %s49_s0, 0 }
 0x116   : > { %s415_s21 = sand.u32 1, %s3444_s15   ;;  %s2521_s23 = sshll.u32 %s3456_s18, 2 }
 0x117   : > { %s2520_s17 = sshll.u32 %s415_s21, 4  ;;  %s2522_s1 = sshll.u32 %s3460_s19, 3 }
 0x118   : > { %s3855_s27 = scalar_select %p50_p10, %s3444_s15, %s52_s25  }
 0x119   : > { %s419_s2 = scalar_lea.vmem [#allocation3], %s2520_s17  ;;  %s425_s4 = sadd.s32 %s2522_s1, %s2521_s23 }
 0x11a   : > { %s428_s3 = sshll.u32 %s419_s2, 4  ;;  %s2523_s5 = sshll.u32 %s425_s4, 6  ;;  %s3859_s3 = int_to_ptr.vmem [resolvable:$true] %s428_s3 }
 0x11b   : > { %p3863_p7 = pnand %p2931_p9, %p3826_p11  ;;  %s5162_s0 = sld [smem:[#allocation55_spill]] }
 0x11c   : > { %s3872_s1 = scalar_lea.sflag [#allocation4], %s415_s21 }
 0x11d   : > { %p3318_p3 = pneg %p3863_p7 }
 0x121   : > { %s3870_s25 = scalar_lea.hbm %s5162_s0, %s2523_s5  ;;  %s3321_s17 = scalar_lea.hbm %s5162_s0, 1024 }
 0x122   : > { %s3316_s2 = scalar_lea.hbm %s3870_s25, 256  ;;  %p3322_p12 = scmp.lt.u32.totalorder %s3870_s25, %s5162_s0 }
 0x123   : > { %p3317_p1 = scmp.ne.s32.totalorder %s3870_s25, %s3316_s2  ;;  %p3323_p13 = scmp.lt.u32.totalorder %s3321_s17, %s3316_s2 }
 0x124   : > { %p3325_p2 = scmp.lt.u32.totalorder %s3316_s2, %s3870_s25 }
 0x125   : > { %p3319_p11 = pnand %p3318_p3, %p3317_p1  ;;  %p3324_p0 = por %p3323_p13, %p3322_p12 }
 0x127   : > { %p3320_p5 = pneg %p3319_p11  ;;  %p3326_p9 = por %p3325_p2, %p3324_p0 }
 0x129   : > { %p3327_p10 = pnand %p3326_p9, %p3320_p5 }
 0x12b   : > { %3330 = shalt.err (!%p3327_p10)
}
 0x12c   : > { %s3331_s21 = scalar_lea.vmem %s3859_s3, 256  ;;  %s3479_s30 = smov [#allocation3]  }
 0x12d   : > { %p3332_p1 = scmp.ne.s32.totalorder %s3859_s3, %s3331_s21  ;;  %s3336_s12 = sshll.u32 %s3479_s30, 4  ;;  %s3337_s12 = int_to_ptr.vmem [resolvable:$false] %s3336_s12 }
 0x12e   : > { %s3338_s4 = scalar_lea.vmem %s3337_s12, 512  ;;  %p3339_p6 = scmp.lt.s32.totalorder %s3859_s3, %s3337_s12 }
 0x12f   : > { %p3334_p11 = pnand %p3332_p1, %p3318_p3  ;;  %p3340_p12 = scmp.lt.s32.totalorder %s3338_s4, %s3331_s21 }
 0x131   : > { %p3335_p8 = pneg %p3334_p11  ;;  %p3341_p13 = por %p3340_p12, %p3339_p6 }
 0x133   : > { %p3342_p0 = pnand %p3341_p13, %p3335_p8 }
 0x135   : > { %3345 = shalt.err (!%p3342_p0)
}
 0x136   : > { %2917 = dma.hbm_to_vmem [thread:$0]  (!%p3863_p7), %s3870_s25, 256, %s3859_s3, %s3872_s1, %s5153_s22, %s5153_s22, %s5152_s29  }
 0x137   : > { %s5163_s2 = sld [smem:[#allocation31_spill]] }
 0x13d   : > { %p5164_p3 = scmp.ne.s32.totalorder %s5163_s2, 0 }
 0x13f   : > { %440 = sbr.rel (%p5164_p3) target bundleno = 2575 (0xa0f), region = 60 }
 0x146   : > { %s3906_s16 = sand.u32 1, %s3440_s14  }
 0x147   : > { %s2525_s17 = sshll.u32 %s3906_s16, 4  ;;  %s443_s5 = scalar_lea.sflag [#allocation4], %s3906_s16 }
 0x148   : > { %s3912_s6 = scalar_lea.vmem [#allocation3], %s2525_s17 }
 0x149   : > { %3407 = dma.done.wait (%p3838_p4), %s443_s5, 256  }
 0x14a   : > { %3409 = vsyncadd (%p3838_p4), %s443_s5, 4294967040  ;;  %s5165_s3 = sld [smem:[#allocation30_spill]] }
 0x150   : > { %p5166_p6 = scmp.ne.s32.totalorder %s5165_s3, 0 }
 0x152   : > { %3411 = dma.done.wait (%p5166_p6), [#allocation7], 144  }
 0x153   : > { %3413 = vsyncadd (%p5166_p6), [#allocation7], 4294967152 }
 0x154   : > { %3415 = dma.done.wait (%p5166_p6), [#allocation10], 2064  }
 0x155   : > { %3417 = vsyncadd (%p5166_p6), [#allocation10], 4294965232 }
 0x156   : > { %3419 = dma.done.wait (%p5166_p6), [#allocation13], 2064  }
 0x157   : > { %3421 = vsyncadd (%p5166_p6), [#allocation13], 4294965232 }
 0x158   : > { %3423 = dma.done.wait (%p5166_p6), [#allocation16], 384  }
 0x159   : > { %3425 = vsyncadd (%p5166_p6), [#allocation16], 4294966912 }
 0x15a   : > { %3427 = dma.done.wait (%p5166_p6), [#allocation19], 16  }
 0x15b   : > { %3429 = vsyncadd (%p5166_p6), [#allocation19], 4294967280  ;;  %v5055_v0 = vmov 0.0   ;;  %vm3481_vm0 = vmmov 0   ;;  %vm661_vm1 = vcmask 123904   ;;  %v3034_v1 = vld [vmem:[#allocation6] sm:$0xff]  }
 0x15c   : > { %2774 = vmatprep.subr.bf16.mxu0 %v5055_v0  ;;  %2776 = vmatprep.mubr.msk.bf16.mxu0 %vm3481_vm0, %v5055_v0  ;;  %vm678_vm2 = vcmask 128004   ;;  %v660_v2 = vld [vmem:[%s3912_s6] sm:$0x3]  ;;  %v3035_v3 = vld [vmem:[%s3912_s6 + $0x4] ss:$0 sps:$4 sm:$0x33]  }
 0x15d   : > { %2775 = vmatpush3.bf16.msra.mxu0 %v3034_v1  ;;  %662 = vst.msk [vmem:[#allocation2] sm:$0x3] %vm661_vm1, %v660_v2  ;;  %v3036_v4 = vld [vmem:[%s3912_s6 + $0x8] ss:$0 sps:$4 sm:$0x33]   ;;  %vm670_vm3 = vcmask 125954  }
 0x15e   : > { %v3037_v5 = vld [vmem:[%s3912_s6 + $0xc] ss:$0 sps:$4 sm:$0x33]   ;;  %v668_v6 = vrot.slane %v3035_v3, 6  ;;  %679 = vst.msk [vmem:[#allocation2] sm:$0x30] %vm678_vm2, %v3036_v4 }
 0x15f   : > { %vm687_vm4 = vcmask 130054   ;;  %v685_v7 = vrot.slane %v3037_v5, 2  ;;  %v3038_v8 = vld [vmem:[%s3912_s6] ss:$0 sps:$4 sm:$0xcc]   ;;  %vm704_vm5 = vcmask 130048  }
 0x160   : > { %671 = vst.msk [vmem:[#allocation2] sm:$0xc] %vm670_vm3, %v668_v6  ;;  %v3039_v9 = vld [vmem:[%s3912_s6 + $0x8] ss:$0 sps:$4 sm:$0xcc]   ;;  %v1520_v10 = vrot.slane %v3038_v8, 2 }
 0x161   : > { %688 = vst.msk [vmem:[#allocation2] sm:$0xc0] %vm687_vm4, %v685_v7  ;;  %v1529_v11 = vrot.slane %v3039_v9, 6  ;;  %v3040_v12 = vld [vmem:[%s3912_s6 + $0xc] ss:$0 sps:$4 sm:$0xcc]  }
 0x162   : > { %v2564_v13 = vld [vmem:[%s3912_s6 + $0x4] sm:$0xc]  ;;  %v3961_v15 = vld [vmem:[#allocation9] sm:$0xff]   ;;  %v3965_v17 = vld [vmem:[#allocation9 + $0x10] sm:$0xff]   ;;  %vm781_vm6 = vcmask 31744   ;;  %s3482_s29 = smov 124  }
 0x163   : > { %v3963_v16 = vld [vmem:[#allocation9 + $0x8] sm:$0xff]   ;;  %v3967_v18 = vld [vmem:[#allocation9 + $0x18] sm:$0xff]   ;;  %v3969_v19 = vld [vmem:[#allocation9 + $0x20] sm:$0xff]   ;;  %v5053_v21 = vunpack.c.l.bf16 %v3961_v15  ;;  %v5050_v24 = vunpack.c.l.bf16 %v3965_v17  ;;  %v5040_v31 = vunpack.c.h.bf16 %v3961_v15  ;;  %v5042_v33 = vunpack.c.h.bf16 %v3965_v17  ;;  %s4698_s22 = scalar_lea.vmem [#allocation20], %s2525_s17  ;;  %s5299_s24 = sld [smem:[#allocation28_spill]] }
 0x164   : > { %v3971_v20 = vld [vmem:[#allocation9 + $0x28] sm:$0xff]   ;;  %v5052_v22 = vunpack.c.l.bf16 %v3963_v16  ;;  %v3975_v23 = vld [vmem:[#allocation9 + $0x30] sm:$0xff]   ;;  %v5049_v25 = vunpack.c.l.bf16 %v3967_v18  ;;  %v5047_v26 = vunpack.c.l.bf16 %v3969_v19  ;;  %v3981_v28 = vld [vmem:[#allocation9 + $0x38] sm:$0xff]   ;;  %v5041_v32 = vunpack.c.h.bf16 %v3963_v16  ;;  %s5300_s25 = sld [smem:[#allocation29_spill]]  ;;  %s2331_s30 = sshll.u32 %s4698_s22, 4  ;;  %s4947_s30 = int_to_ptr.vmem [resolvable:$true] %s2331_s30 }
 0x165   : > { %v5045_v27 = vunpack.c.l.bf16 %v3971_v20  ;;  %v3983_v29 = vld [vmem:[#allocation9 + $0x40] sm:$0xff]   ;;  %v3985_v30 = vld [vmem:[#allocation9 + $0x48] sm:$0xff]   ;;  %v5043_v34 = vunpack.c.h.bf16 %v3967_v18  ;;  %v3991_v35 = vld [vmem:[#allocation9 + $0x50] sm:$0xff]   ;;  %v5044_v38 = vunpack.c.h.bf16 %v3969_v19  ;;  %v5046_v39 = vunpack.c.h.bf16 %v3971_v20  ;;  %s5301_s17 = sld [smem:[#allocation62_spill]]  ;;  %s2316_s3 = scalar_lea.sflag [#allocation5], %s3906_s16 }
 0x166   : > { %v3993_v36 = vld [vmem:[#allocation9 + $0x58] sm:$0xff]   ;;  %v3995_v37 = vld [vmem:[#allocation9 + $0x60] sm:$0xff]   ;;  %v5039_v40 = vunpack.c.l.bf16 %v3975_v23  ;;  %v5048_v41 = vunpack.c.h.bf16 %v3975_v23  ;;  %v4001_v42 = vld [vmem:[#allocation9 + $0x68] sm:$0xff]   ;;  %v5051_v44 = vunpack.c.l.bf16 %v3981_v28  ;;  %v5054_v45 = vunpack.c.h.bf16 %v3981_v28  ;;  %p5303_p8 = scmp.ne.s32.totalorder %s5159_s11, 0 }
 0x167   : > { %5167 = vst [vmem:[#allocation32_spill] sm:$0xff] %v3995_v37  ;;  %5168 = vst [vmem:[#allocation33_spill] sm:$0xff] %v4001_v42  ;;  %v2542_v43 = vld [vmem:[#allocation8] ss:$0 sm:$0xff]  ;;  %v5069_v46 = vunpack.c.l.bf16 %v3983_v29  ;;  %v5067_v47 = vunpack.c.l.bf16 %v3985_v30  ;;  %v5065_v48 = vunpack.c.l.bf16 %v3991_v35  ;;  %v5063_v49 = vunpack.c.l.bf16 %v3993_v36  ;;  %v4010_v51 = vld [vmem:[#allocation9 + $0x70] sm:$0xff]  }
 0x168   : > { %v3953_v14 = vld [vmem:[#allocation2] sm:$0xff]  ;;  %v5061_v50 = vunpack.c.l.bf16 %v3995_v37  ;;  %5169 = vst [vmem:[#allocation34_spill] sm:$0xff] %v4010_v51  ;;  %v4012_v52 = vld [vmem:[#allocation9 + $0x78] sm:$0xff]   ;;  %v5068_v54 = vunpack.c.h.bf16 %v3983_v29  ;;  %v5066_v55 = vunpack.c.h.bf16 %v3985_v30  ;;  %v5064_v56 = vunpack.c.h.bf16 %v3991_v35  ;;  %vm4195_vm14 = vmpackc.low %vm781_vm6, %vm781_vm6 }
 0x169   : > { %2777 = vmatmul.mubr.msk.bf16.vlgmr.msra.gmra.mrb[0].mxu0 %vm704_vm5, %v3953_v14  ;;  %1522 = vst.msk [vmem:[#allocation2] sm:$0x3] %vm661_vm1, %v1520_v10  ;;  %5170 = vst [vmem:[#allocation35_spill] sm:$0xff] %v4012_v52  ;;  %v5059_v57 = vunpack.c.l.bf16 %v4001_v42  ;;  %v5062_v60 = vunpack.c.h.bf16 %v3993_v36  ;;  %v5060_v61 = vunpack.c.h.bf16 %v3995_v37  ;;  %v5058_v62 = vunpack.c.h.bf16 %v4001_v42  ;;  %s2583_s1 = sshll.u32 %s5299_s24, 2  ;;  %s3483_s24 = smov [#allocation20]  }
 0x16a   : > { %1524 = vst.msk [vmem:[#allocation2] sm:$0xc] %vm670_vm3, %v2564_v13  ;;  %v5057_v1 = vunpack.c.l.bf16 %v4010_v51  ;;  %vm1163_vm7 = vcmask 1041409   ;;  %vm1166_vm8 = vcmask 1042434   ;;  %vm1169_vm9 = vcmask 1043459   ;;  %s2584_s23 = sshll.u32 %s5300_s25, 3 }
 0x16b   : > { %1531 = vst.msk [vmem:[#allocation2] sm:$0x30] %vm678_vm2, %v1529_v11  ;;  %vm1172_vm10 = vcmask 1044484   ;;  %vm1175_vm11 = vcmask 1045509   ;;  %vm1178_vm12 = vcmask 1046534   ;;  %vm1181_vm13 = vcmask 1047559   ;;  %s2328_s21 = sadd.s32 %s2584_s23, %s2583_s1  ;;  %s5302_s5 = smov %s5301_s17 }
 0x16c   : > { %1537 = vst.msk [vmem:[#allocation2] sm:$0xc0] %vm687_vm4, %v3040_v12  ;;  %s2585_s12 = sshll.u32 %s2328_s21, 6  ;;  %s3350_s25 = sshll.u32 %s3483_s24, 4  ;;  %s3351_s25 = int_to_ptr.vmem [resolvable:$false] %s3350_s25 }
 0x16d   : > { %s4958_s6 = scalar_lea.hbm %s5301_s17, %s2585_s12  ;;  %s3352_s1 = scalar_lea.vmem %s3351_s25, 512 }
 0x16e   : > { %p3353_p2 = scmp.lt.s32.totalorder %s4947_s30, %s3351_s25 }
 0x23c   : > { %v742_v53 = vpop.f32.mrb[0].mxu0 }
 0x23d   : > { %v4018_v58 = vadd.f32 %v2542_v43, %v742_v53  ;;  %v2778_v59 = vpop.f32.mrb[1].mxu0 }
 0x23e   : > { %v745_v63 = vpop.f32.mrb[2].mxu0 }
 0x23f   : > { %v4027_v5 = vadd.f32 %v2542_v43, %v745_v63  ;;  %v2779_v6 = vpop.f32.mrb[3].mxu0  ;;  %v749_v7 = vmul.f32 %v5053_v21, %v4018_v58  ;;  %v751_v8 = vmul.f32 %v5052_v22, %v4018_v58  ;;  %v753_v9 = vmul.f32 %v5050_v24, %v4018_v58 }
 0x240   : > { %v755_v10 = vmul.f32 %v5049_v25, %v4018_v58  ;;  %v757_v11 = vmul.f32 %v5047_v26, %v4018_v58  ;;  %v759_v12 = vmul.f32 %v5045_v27, %v4018_v58  ;;  %v761_v13 = vmul.f32 %v5039_v40, %v4018_v58 }
 0x241   : > { %v3024_v43 = vpack.i.bf16 %v4027_v5, %v4018_v58  ;;  %v750_v53 = vmul.f32 %v5040_v31, %v4027_v5  ;;  %v752_v59 = vmul.f32 %v5041_v32, %v4027_v5  ;;  %v754_v63 = vmul.f32 %v5042_v33, %v4027_v5 }
 0x242   : > { %v756_v6 = vmul.f32 %v5043_v34, %v4027_v5  ;;  %v758_v40 = vmul.f32 %v5044_v38, %v4027_v5  ;;  %v760_v31 = vmul.f32 %v5046_v39, %v4027_v5  ;;  %v762_v32 = vmul.f32 %v5048_v41, %v4027_v5 }
 0x243   : > { %3025 = vrot.lane.b32.xlu0 %v3024_v43, %s3482_s29  ;;  %v763_v33 = vmul.f32 %v5051_v44, %v4018_v58  ;;  %v764_v34 = vmul.f32 %v5054_v45, %v4027_v5  ;;  %v782_v38 = vsel %vm781_vm6, %v749_v7, 0.0  ;;  %v783_v27 = vsel %vm781_vm6, %v750_v53, 0.0 }
 0x244   : > { %v784_v39 = vadd.f32 %v783_v27, %v782_v38  ;;  %v791_v26 = vsel %vm781_vm6, %v751_v8, 0.0  ;;  %v792_v41 = vsel %vm781_vm6, %v752_v59, 0.0  ;;  %v800_v25 = vsel %vm781_vm6, %v753_v9, 0.0 }
 0x245   : > { %v793_v43 = vadd.f32 %v792_v41, %v791_v26  ;;  %v801_v24 = vsel %vm781_vm6, %v754_v63, 0.0  ;;  %v809_v44 = vsel %vm781_vm6, %v755_v10, 0.0  ;;  %v810_v22 = vsel %vm781_vm6, %v756_v6, 0.0 }
 0x246   : > { %v785_v21 = vrot.slane %v784_v39, 4  ;;  %v802_v45 = vadd.f32 %v801_v24, %v800_v25  ;;  %v811_v0 = vadd.f32 %v810_v22, %v809_v44  ;;  %v818_v7 = vsel %vm781_vm6, %v757_v11, 0.0 }
 0x247   : > { %v794_v53 = vrot.slane %v793_v43, 4  ;;  %v819_v27 = vsel %vm781_vm6, %v758_v40, 0.0  ;;  %v827_v38 = vsel %vm781_vm6, %v759_v12, 0.0  ;;  %v828_v8 = vsel %vm781_vm6, %v760_v31, 0.0 }
 0x248   : > { %v786_v9 = vadd.f32 %v785_v21, %v784_v39  ;;  %v803_v26 = vrot.slane %v802_v45, 4  ;;  %v812_v41 = vrot.slane %v811_v0, 4  ;;  %v820_v59 = vadd.f32 %v819_v27, %v818_v7 }
 0x249   : > { %v795_v63 = vadd.f32 %v794_v53, %v793_v43  ;;  %v829_v10 = vadd.f32 %v828_v8, %v827_v38  ;;  %v836_v6 = vsel %vm781_vm6, %v761_v13, 0.0  ;;  %v837_v24 = vsel %vm781_vm6, %v762_v32, 0.0  ;;  %v4096_v38 = vld [vmem:[#allocation11] ss:$0 sm:$0xff] }
 0x24a   : > { %v787_v22 = vrot.slane %v786_v9, 2  ;;  %v804_v25 = vadd.f32 %v803_v26, %v802_v45  ;;  %v813_v44 = vadd.f32 %v812_v41, %v811_v0  ;;  %v821_v11 = vrot.slane %v820_v59, 4 }
 0x24b   : > { %v796_v4 = vrot.slane %v795_v63, 2  ;;  %v830_v40 = vrot.slane %v829_v10, 4  ;;  %v838_v3 = vadd.f32 %v837_v24, %v836_v6  ;;  %v845_v12 = vsel %vm781_vm6, %v763_v33, 0.0 }
 0x24c   : > { %v788_v31 = vadd.f32 %v787_v22, %v786_v9  ;;  %v805_v21 = vrot.slane %v804_v25, 2  ;;  %v814_v39 = vrot.slane %v813_v44, 2  ;;  %v822_v2 = vadd.f32 %v821_v11, %v820_v59 }
 0x24d   : > { %v797_v43 = vadd.f32 %v796_v4, %v795_v63  ;;  %v831_v7 = vadd.f32 %v830_v40, %v829_v10  ;;  %v839_v53 = vrot.slane %v838_v3, 4  ;;  %v846_v13 = vsel %vm781_vm6, %v764_v34, 0.0 }
 0x24e   : > { %v789_v32 = vrot.slane %v788_v31, 1  ;;  %v806_v45 = vadd.f32 %v805_v21, %v804_v25  ;;  %v815_v0 = vadd.f32 %v814_v39, %v813_v44  ;;  %v823_v27 = vrot.slane %v822_v2, 2 }
 0x24f   : > { %v798_v8 = vrot.slane %v797_v43, 1  ;;  %v832_v33 = vrot.slane %v831_v7, 2  ;;  %v840_v9 = vadd.f32 %v839_v53, %v838_v3  ;;  %v847_v26 = vadd.f32 %v846_v13, %v845_v12 }
 0x250   : > { %v790_v41 = vadd.f32 %v789_v32, %v788_v31  ;;  %v807_v59 = vrot.slane %v806_v45, 1  ;;  %v816_v4 = vrot.slane %v815_v0, 1  ;;  %v824_v63 = vadd.f32 %v823_v27, %v822_v2 }
 0x251   : > { %v799_v10 = vadd.f32 %v798_v8, %v797_v43  ;;  %v833_v34 = vadd.f32 %v832_v33, %v831_v7  ;;  %v841_v6 = vrot.slane %v840_v9, 2  ;;  %v848_v24 = vrot.slane %v847_v26, 4 }
 0x252   : > { %v808_v22 = vadd.f32 %v807_v59, %v806_v45  ;;  %v817_v25 = vadd.f32 %v816_v4, %v815_v0  ;;  %v825_v44 = vrot.slane %v824_v63, 1  ;;  %v932_v11 = vadd.f32 %v4096_v38, %v790_v41 }
 0x253   : > { %v834_v40 = vrot.slane %v833_v34, 1  ;;  %v842_v21 = vadd.f32 %v841_v6, %v840_v9  ;;  %v849_v3 = vadd.f32 %v848_v24, %v847_v26  ;;  %v933_v12 = vadd.f32 %v4096_v38, %v799_v10 }
 0x254   : > { %v826_v31 = vadd.f32 %v825_v44, %v824_v63  ;;  %v934_v39 = vadd.f32 %v4096_v38, %v808_v22  ;;  %v935_v2 = vadd.f32 %v4096_v38, %v817_v25  ;;  %v765_v43 = vmul.f32 %v5069_v46, %v4018_v58 }
 0x255   : > { %v835_v7 = vadd.f32 %v834_v40, %v833_v34  ;;  %v843_v53 = vrot.slane %v842_v21, 1  ;;  %v850_v13 = vrot.slane %v849_v3, 2  ;;  %v1162_v32 = vrot.slane %v933_v12, 7 }
 0x256   : > { %v936_v45 = vadd.f32 %v4096_v38, %v826_v31  ;;  %v1165_v0 = vrot.slane %v934_v39, 6  ;;  %v1168_v27 = vrot.slane %v935_v2, 5  ;;  %v766_v8 = vmul.f32 %v5068_v54, %v4027_v5 }
 0x257   : > { %v844_v33 = vadd.f32 %v843_v53, %v842_v21  ;;  %v851_v9 = vadd.f32 %v850_v13, %v849_v3  ;;  %v937_v26 = vadd.f32 %v4096_v38, %v835_v7  ;;  %v1164_v41 = vsel %vm1163_vm7, %v1162_v32, %v932_v11 }
 0x258   : > { %v1167_v59 = vsel %vm1166_vm8, %v1165_v0, %v1164_v41  ;;  %v1171_v4 = vrot.slane %v936_v45, 4  ;;  %v767_v63 = vmul.f32 %v5067_v47, %v4018_v58  ;;  %v768_v10 = vmul.f32 %v5066_v55, %v4027_v5 }
 0x259   : > { %v852_v34 = vrot.slane %v851_v9, 1  ;;  %v938_v6 = vadd.f32 %v4096_v38, %v844_v33  ;;  %v1170_v24 = vsel %vm1169_vm9, %v1168_v27, %v1167_v59  ;;  %v1174_v22 = vrot.slane %v937_v26, 3 }
 0x25a   : > { %v1173_v25 = vsel %vm1172_vm10, %v1171_v4, %v1170_v24  ;;  %v769_v44 = vmul.f32 %v5065_v48, %v4018_v58  ;;  %v770_v11 = vmul.f32 %v5064_v56, %v4027_v5  ;;  %v771_v40 = vmul.f32 %v5063_v49, %v4018_v58  ;;  %v4273_v49 = vld [vmem:[#allocation12 + $0x78] sm:$0xff]  }
 0x25b   : > { %v853_v21 = vadd.f32 %v852_v34, %v851_v9  ;;  %v1176_v3 = vsel %vm1175_vm11, %v1174_v22, %v1173_v25  ;;  %v1177_v12 = vrot.slane %v938_v6, 2  ;;  %v772_v31 = vmul.f32 %v5062_v60, %v4027_v5  ;;  %v4271_v60 = vld [vmem:[#allocation12 + $0x70] sm:$0xff]   ;;  %5195 = vst [vmem:[#allocation54_spill] sm:$0xff] %v4273_v49 }
 0x25c   : > { %v773_v39 = vmul.f32 %v5061_v50, %v4018_v58  ;;  %v774_v2 = vmul.f32 %v5060_v61, %v4027_v5  ;;  %v775_v7 = vmul.f32 %v5059_v57, %v4018_v58  ;;  %v776_v53 = vmul.f32 %v5058_v62, %v4027_v5  ;;  %5194 = vst [vmem:[#allocation53_spill] sm:$0xff] %v4271_v60 }
 0x25d   : > { %v939_v13 = vadd.f32 %v4096_v38, %v853_v21  ;;  %v1179_v32 = vsel %vm1178_vm12, %v1177_v12, %v1176_v3  ;;  %v777_v45 = vmul.f32 %v5057_v1, %v4018_v58  ;;  %v5171_v0 = vunpack.c.h.bf16 %v4010_v51  ;;  %v4265_v1 = vld [vmem:[#allocation12 + $0x68] sm:$0xff]  }
 0x25e   : > { %v5172_v33 = vunpack.c.l.bf16 %v4012_v52  ;;  %v5173_v26 = vunpack.c.h.bf16 %v4012_v52  ;;  %v854_v59 = vsel %vm781_vm6, %v765_v43, 0.0  ;;  %v855_v4 = vsel %vm781_vm6, %v766_v8, 0.0  ;;  %5193 = vst [vmem:[#allocation52_spill] sm:$0xff] %v4265_v1 }
 0x25f   : > { %v778_v27 = vmul.f32 %v5171_v0, %v4027_v5  ;;  %v1180_v34 = vrot.slane %v939_v13, 1  ;;  %v856_v6 = vadd.f32 %v855_v4, %v854_v59  ;;  %v863_v24 = vsel %vm781_vm6, %v767_v63, 0.0 }
 0x260   : > { %v779_v9 = vmul.f32 %v5172_v33, %v4018_v58  ;;  %v780_v41 = vmul.f32 %v5173_v26, %v4027_v5  ;;  %v864_v22 = vsel %vm781_vm6, %v768_v10, 0.0  ;;  %v872_v21 = vsel %vm781_vm6, %v769_v44, 0.0 }
 0x261   : > { %v865_v25 = vadd.f32 %v864_v22, %v863_v24  ;;  %v873_v3 = vsel %vm781_vm6, %v770_v11, 0.0  ;;  %v881_v58 = vsel %vm781_vm6, %v771_v40, 0.0  ;;  %v1182_v12 = vsel %vm1181_vm13, %v1180_v34, %v1179_v32 }
 0x262   : > { %v857_v5 = vrot.slane %v856_v6, 4  ;;  %v874_v0 = vadd.f32 %v873_v3, %v872_v21  ;;  %v882_v43 = vsel %vm781_vm6, %v772_v31, 0.0  ;;  %2784 = vmatprep.mubr.msk.f32.mxu1 %vm781_vm6, %v1182_v12  ;;  %v890_v63 = vsel %vm781_vm6, %v773_v39, 0.0 }
 0x263   : > { %v866_v8 = vrot.slane %v865_v25, 4  ;;  %v883_v13 = vadd.f32 %v882_v43, %v881_v58  ;;  %v891_v10 = vsel %vm781_vm6, %v774_v2, 0.0  ;;  %v899_v11 = vsel %vm781_vm6, %v775_v7, 0.0 }
 0x264   : > { %v858_v33 = vadd.f32 %v857_v5, %v856_v6  ;;  %v875_v44 = vrot.slane %v874_v0, 4  ;;  %v892_v26 = vadd.f32 %v891_v10, %v890_v63  ;;  %v900_v32 = vsel %vm781_vm6, %v776_v53, 0.0 }
 0x265   : > { %v867_v40 = vadd.f32 %v866_v8, %v865_v25  ;;  %v884_v59 = vrot.slane %v883_v13, 4  ;;  %v908_v4 = vsel %vm781_vm6, %v777_v45, 0.0  ;;  %v901_v22 = vadd.f32 %v900_v32, %v899_v11 }
 0x266   : > { %v859_v31 = vrot.slane %v858_v33, 2  ;;  %v876_v34 = vadd.f32 %v875_v44, %v874_v0  ;;  %v893_v24 = vrot.slane %v892_v26, 4  ;;  %v909_v39 = vsel %vm781_vm6, %v778_v27, 0.0 }
 0x267   : > { %v868_v21 = vrot.slane %v867_v40, 2  ;;  %v885_v3 = vadd.f32 %v884_v59, %v883_v13  ;;  %v917_v2 = vsel %vm781_vm6, %v779_v9, 0.0  ;;  %v902_v7 = vrot.slane %v901_v22, 4 }
 0x268   : > { %v860_v6 = vadd.f32 %v859_v31, %v858_v33  ;;  %v877_v58 = vrot.slane %v876_v34, 2  ;;  %v894_v12 = vadd.f32 %v893_v24, %v892_v26  ;;  %v910_v43 = vadd.f32 %v909_v39, %v908_v4 }
 0x269   : > { %v869_v25 = vadd.f32 %v868_v21, %v867_v40  ;;  %v886_v5 = vrot.slane %v885_v3, 2  ;;  %v918_v53 = vsel %vm781_vm6, %v780_v41, 0.0  ;;  %v903_v63 = vadd.f32 %v902_v7, %v901_v22 }
 0x26a   : > { %v861_v45 = vrot.slane %v860_v6, 1  ;;  %v878_v8 = vadd.f32 %v877_v58, %v876_v34  ;;  %v895_v0 = vrot.slane %v894_v12, 2  ;;  %v911_v13 = vrot.slane %v910_v43, 4 }
 0x26b   : > { %v870_v10 = vrot.slane %v869_v25, 1  ;;  %v887_v44 = vadd.f32 %v886_v5, %v885_v3  ;;  %v919_v11 = vadd.f32 %v918_v53, %v917_v2  ;;  %v904_v33 = vrot.slane %v903_v63, 2 }
 0x26c   : > { %v862_v27 = vadd.f32 %v861_v45, %v860_v6  ;;  %v879_v59 = vrot.slane %v878_v8, 1  ;;  %v896_v9 = vadd.f32 %v895_v0, %v894_v12  ;;  %v912_v31 = vadd.f32 %v911_v13, %v910_v43 }
 0x26d   : > { %v871_v32 = vadd.f32 %v870_v10, %v869_v25  ;;  %v888_v26 = vrot.slane %v887_v44, 1  ;;  %v920_v40 = vrot.slane %v919_v11, 4  ;;  %v905_v21 = vadd.f32 %v904_v33, %v903_v63 }
 0x26e   : > { %v880_v24 = vadd.f32 %v879_v59, %v878_v8  ;;  %v897_v4 = vrot.slane %v896_v9, 1  ;;  %v913_v39 = vrot.slane %v912_v31, 2  ;;  %v940_v2 = vadd.f32 %v4096_v38, %v862_v27 }
 0x26f   : > { %v889_v41 = vadd.f32 %v888_v26, %v887_v44  ;;  %v921_v34 = vadd.f32 %v920_v40, %v919_v11  ;;  %v941_v22 = vadd.f32 %v4096_v38, %v871_v32  ;;  %v906_v3 = vrot.slane %v905_v21, 1 }
 0x270   : > { %v898_v58 = vadd.f32 %v897_v4, %v896_v9  ;;  %v942_v6 = vadd.f32 %v4096_v38, %v880_v24  ;;  %v914_v12 = vadd.f32 %v913_v39, %v912_v31 }
 0x271   : > { %v922_v7 = vrot.slane %v921_v34, 2  ;;  %v943_v25 = vadd.f32 %v4096_v38, %v889_v41  ;;  %v1183_v5 = vrot.slane %v941_v22, 7  ;;  %v907_v43 = vadd.f32 %v906_v3, %v905_v21 }
 0x272   : > { %v944_v53 = vadd.f32 %v4096_v38, %v898_v58  ;;  %v1185_v45 = vrot.slane %v942_v6, 6  ;;  %v915_v8 = vrot.slane %v914_v12, 1  ;;  %v5174_v3 = vmov 0  ;;  %v656_v6 = vld [vmem:[#allocation15 + $0x8] sm:$0xff] }
 0x273   : > { %v923_v0 = vadd.f32 %v922_v7, %v921_v34  ;;  %v1184_v63 = vsel %vm1163_vm7, %v1183_v5, %v940_v2  ;;  %v1187_v10 = vrot.slane %v943_v25, 5  ;;  %v945_v44 = vadd.f32 %v4096_v38, %v907_v43 }
 0x274   : > { %v1186_v13 = vsel %vm1166_vm8, %v1185_v45, %v1184_v63  ;;  %v1189_v11 = vrot.slane %v944_v53, 4  ;;  %v916_v27 = vadd.f32 %v915_v8, %v914_v12  ;;  %v5175_v3 = vsel %vm4195_vm14, 4294967295, %v5174_v3  ;;  %v655_v12 = vld [vmem:[#allocation15] sm:$0xff] }
 0x275   : > { %v924_v59 = vrot.slane %v923_v0, 1  ;;  %v1188_v9 = vsel %vm1169_vm9, %v1187_v10, %v1186_v13  ;;  %v1191_v32 = vrot.slane %v945_v44, 3  ;;  %5176 = vst [vmem:[#allocation36_spill] sm:$0xff] %v5175_v3 }
 0x276   : > { %v1190_v33 = vsel %vm1172_vm10, %v1189_v11, %v1188_v9  ;;  %v946_v31 = vadd.f32 %v4096_v38, %v916_v27 }
 0x277   : > { %v925_v26 = vadd.f32 %v924_v59, %v923_v0  ;;  %v1192_v40 = vsel %vm1175_vm11, %v1191_v32, %v1190_v33  ;;  %v4218_v33 = vunpack.c.l.bf16 %v3953_v14  ;;  %v4221_v32 = vunpack.c.h.bf16 %v3953_v14  ;;  %v4237_v14 = vld [vmem:[#allocation12 + $0x28] sm:$0xff]  }
 0x278   : > { %v1193_v4 = vrot.slane %v946_v31, 2  ;;  %v4225_v31 = vld [vmem:[#allocation12 + $0x8] sm:$0xff]   ;;  %5185 = vst [vmem:[#allocation44_spill] sm:$0xff] %v4237_v14 }
 0x279   : > { %v947_v24 = vadd.f32 %v4096_v38, %v925_v26  ;;  %v5177_v38 = vmov 0.0   ;;  %5178 = vst [vmem:[#allocation37_spill] sm:$0xff] %v4218_v33  ;;  %5179 = vst [vmem:[#allocation38_spill] sm:$0xff] %v4221_v32  ;;  %v4223_v26 = vld [vmem:[#allocation12] sm:$0xff]  }
 0x27a   : > { %v1194_v21 = vsel %vm1178_vm12, %v1193_v4, %v1192_v40  ;;  %5180 = vst [vmem:[#allocation39_spill] sm:$0xff] %v4223_v26  ;;  %5181 = vst [vmem:[#allocation40_spill] sm:$0xff] %v4225_v31  ;;  %v4227_v40 = vld [vmem:[#allocation12 + $0x10] sm:$0xff]   ;;  %v5071_v4 = vunpack.c.h.bf16 %v4223_v26 }
 0x27b   : > { %v1195_v41 = vrot.slane %v947_v24, 1  ;;  %5182 = vst [vmem:[#allocation41_spill] sm:$0xff] %v4227_v40  ;;  %v5070_v24 = vunpack.c.l.bf16 %v4223_v26 }
 0x27c   : > { %v949_v46 = vmul.f32 %v5071_v4, %v4221_v32 }
 0x27d   : > { %v1196_v39 = vsel %vm1181_vm13, %v1195_v41, %v1194_v21  ;;  %v5072_v21 = vunpack.c.l.bf16 %v4225_v31  ;;  %v5073_v41 = vunpack.c.h.bf16 %v4225_v31  ;;  %v948_v47 = vmul.f32 %v5070_v24, %v4218_v33 }
 0x27f   : > { %v950_v50 = vmul.f32 %v5072_v21, %v4218_v33  ;;  %v951_v62 = vmul.f32 %v5073_v41, %v4221_v32 }
 0x2b5   : > { %v3026_v34 = vpop.permute.xlu0 %3025 }
 0x2b6   : > { %v3028_v22 = vunpack.i.h.bf16 %v3026_v34  ;;  %v3027_v58 = vunpack.i.l.bf16 %v3026_v34  ;;  %v4235_v34 = vld [vmem:[#allocation12 + $0x20] sm:$0xff]  }
 0x2b7   : > { %5184 = vst [vmem:[#allocation43_spill] sm:$0xff] %v4235_v34 }
 0x2b8   : > { %v2826_v2 = vpack.c.bf16 %v3028_v22, %v3027_v58  ;;  %v5074_v22 = vunpack.c.l.bf16 %v4227_v40  ;;  %v5075_v58 = vunpack.c.h.bf16 %v4227_v40  ;;  %v989_v40 = vsel %vm704_vm5, %v950_v50, 0.0 }
 0x2ba   : > { %2828 = vmatprep.subr.msk.bf16.mxu1 %vm4195_vm14, %v2826_v2  ;;  %v952_v48 = vmul.f32 %v5074_v22, %v4218_v33  ;;  %v953_v24 = vmul.f32 %v5075_v58, %v4221_v32 }
 0x2bb   : > { %2831 = vmatpush3.bf16.xpose.msk.msra.mxu1 %vm4195_vm14, %v2826_v2 }
 0x2bc   : > { %2794 = vmatprep.subr.bf16.mxu1 %v5177_v38  ;;  %v998_v26 = vsel %vm704_vm5, %v952_v48, 0.0 }
 0x2c2   : > { %2785 = vmatmul.mubr.msk.f32.vlgmr.msra.gmra.mrb[0].mxu1 %vm781_vm6, %v1196_v39  ;;  %v4233_v39 = vld [vmem:[#allocation12 + $0x18] sm:$0xff]  }
 0x2c3   : > { %2796 = vmatprep.mubr.msk.bf16.mxu1 %vm3481_vm0, %v5177_v38  ;;  %5183 = vst [vmem:[#allocation42_spill] sm:$0xff] %v4233_v39  ;;  %v5076_v2 = vunpack.c.l.bf16 %v4233_v39 }
 0x2c5   : > { %v954_v4 = vmul.f32 %v5076_v2, %v4218_v33 }
 0x2c7   : > { %v1007_v3 = vsel %vm704_vm5, %v954_v4, 0.0 }
 0x395   : > { %v2786_v7 = vpop.f32.mrb[0].mxu1 }
 0x396   : > { %v1283_v25 = vadd.f32 %v2786_v7, %v656_v6  ;;  %v1277_v5 = vpop.f32.mrb[1].mxu1  ;;  %v5077_v6 = vunpack.c.h.bf16 %v4233_v39  ;;  %v4245_v7 = vld [vmem:[#allocation12 + $0x38] sm:$0xff]   ;;  %v980_v39 = vsel %vm704_vm5, %v948_v47, 0.0 }
 0x397   : > { %v1278_v43 = vadd.f32 %v1277_v5, %v655_v12  ;;  %v4243_v12 = vld [vmem:[#allocation12 + $0x30] sm:$0xff]   ;;  %5187 = vst [vmem:[#allocation46_spill] sm:$0xff] %v4245_v7  ;;  %v5078_v5 = vunpack.c.l.bf16 %v4235_v34 }
 0x398   : > { %v1289_v53 = vsel %vm704_vm5, %v1283_v25, -inf  ;;  %5186 = vst [vmem:[#allocation45_spill] sm:$0xff] %v4243_v12  ;;  %v955_v21 = vmul.f32 %v5077_v6, %v4221_v32 }
 0x399   : > { %1290 = vmax.xlane.f32.xlu1 %v1289_v53  ;;  %v1286_v45 = vsel %vm704_vm5, %v1278_v43, -inf  ;;  %v5080_v53 = vunpack.c.l.bf16 %v4237_v14  ;;  %v956_v41 = vmul.f32 %v5078_v5, %v4218_v33 }
 0x39a   : > { %1287 = vmax.xlane.f32.xlu0 %v1286_v45  ;;  %v5081_v45 = vunpack.c.h.bf16 %v4237_v14  ;;  %v5208_v14 = vunpack.c.l.bf16 %v4271_v60 }
 0x39b   : > { %v958_v58 = vmul.f32 %v5080_v53, %v4218_v33 }
 0x39c   : > { %v959_v2 = vmul.f32 %v5081_v45, %v4221_v32 }
 0x39e   : > { %v1026_v48 = vsel %vm704_vm5, %v959_v2, 0.0 }
 0x426   : > { %v1291_v8 = vpop.xlane.xlu1 %1290 }
 0x427   : > { %v1293_v0 = vsub.f32 %v1283_v25, %v1291_v8  ;;  %v1288_v63 = vpop.xlane.xlu0 %1287  ;;  %v4247_v25 = vld [vmem:[#allocation12 + $0x40] sm:$0xff]   ;;  %v4253_v8 = vld [vmem:[#allocation12 + $0x48] sm:$0xff]  }
 0x428   : > { %v1292_v10 = vsub.f32 %v1278_v43, %v1288_v63  ;;  %5188 = vst [vmem:[#allocation47_spill] sm:$0xff] %v4247_v25  ;;  %v5079_v43 = vunpack.c.h.bf16 %v4235_v34  ;;  %5189 = vst [vmem:[#allocation48_spill] sm:$0xff] %v4253_v8  ;;  %v4257_v63 = vld [vmem:[#allocation12 + $0x58] sm:$0xff]   ;;  %v5196_v56 = vunpack.c.l.bf16 %v4247_v25  ;;  %v5210_v34 = vunpack.c.l.bf16 %v4273_v49 }
 0x429   : > { %v1296_v44 = vmul.f32 1.442695, %v1293_v0  ;;  %v4255_v0 = vld [vmem:[#allocation12 + $0x50] sm:$0xff]   ;;  %5191 = vst [vmem:[#allocation50_spill] sm:$0xff] %v4257_v63 }
 0x42a   : > { %v1294_v13 = vmul.f32 1.442695, %v1292_v10  ;;  %5190 = vst [vmem:[#allocation49_spill] sm:$0xff] %v4255_v0  ;;  %v5082_v10 = vunpack.c.l.bf16 %v4243_v12  ;;  %v957_v22 = vmul.f32 %v5079_v43, %v4221_v32  ;;  %v4338_v45 = vmul.f32 %v5196_v56, %v4218_v33 }
 0x42b   : > { %v5201_v55 = vunpack.c.h.bf16 %v4255_v0 }
 0x42c   : > { %3042 = vpow2.f32 %v1294_v13  ;;  %v5084_v13 = vunpack.c.l.bf16 %v4245_v7  ;;  %v960_v6 = vmul.f32 %v5082_v10, %v4218_v33  ;;  %v5197_v10 = vunpack.c.h.bf16 %v4247_v25 }
 0x42d   : > { %3044 = vpow2.f32 %v1296_v44  ;;  %v5083_v44 = vunpack.c.h.bf16 %v4243_v12  ;;  %v5202_v25 = vunpack.c.l.bf16 %v4257_v63  ;;  %v5206_v12 = vunpack.c.l.bf16 %v4265_v1 }
 0x42e   : > { %v962_v43 = vmul.f32 %v5084_v13, %v4218_v33  ;;  %v4343_v57 = vmul.f32 %v5197_v10, %v4221_v32  ;;  %v5199_v13 = vunpack.c.h.bf16 %v4253_v8  ;;  %v4363_v10 = vmul.f32 %v5201_v55, %v4221_v32 }
 0x42f   : > { %v961_v5 = vmul.f32 %v5083_v44, %v4221_v32  ;;  %v5198_v44 = vunpack.c.l.bf16 %v4253_v8  ;;  %v5203_v8 = vunpack.c.h.bf16 %v4257_v63  ;;  %v5207_v63 = vunpack.c.h.bf16 %v4265_v1 }
 0x430   : > { %v4353_v54 = vmul.f32 %v5199_v13, %v4221_v32  ;;  %v5211_v1 = vunpack.c.h.bf16 %v4273_v49  ;;  %v1016_v49 = vsel %vm704_vm5, %v956_v41, 0.0  ;;  %v1017_v50 = vsel %vm704_vm5, %v957_v22, 0.0 }
 0x431   : > { %v4348_v61 = vmul.f32 %v5198_v44, %v4218_v33  ;;  %v4368_v44 = vmul.f32 %v5202_v25, %v4218_v33  ;;  %v4373_v13 = vmul.f32 %v5203_v8, %v4221_v32  ;;  %v4388_v25 = vmul.f32 %v5206_v12, %v4218_v33 }
 0x432   : > { %v4393_v8 = vmul.f32 %v5207_v63, %v4221_v32  ;;  %v4408_v12 = vmul.f32 %v5210_v34, %v4218_v33  ;;  %v4413_v63 = vmul.f32 %v5211_v1, %v4221_v32  ;;  %v999_v34 = vsel %vm704_vm5, %v953_v24, 0.0 }
 0x433   : > { %v1008_v1 = vsel %vm704_vm5, %v955_v21, 0.0  ;;  %v1034_v21 = vsel %vm704_vm5, %v960_v6, 0.0  ;;  %v1035_v41 = vsel %vm704_vm5, %v961_v5, 0.0 }
 0x436   : > { %v4209_v11 = vpop.eup %3042 }
 0x437   : > { %v1298_v27 = vsel %vm704_vm5, %v4209_v11, 0.0  ;;  %v4213_v59 = vpop.eup %3044 }
 0x438   : > { %1299 = vadd.xlane.f32.xlu1 %v1298_v27  ;;  %v1301_v9 = vsel %vm704_vm5, %v4213_v59, 0.0  ;;  %v5085_v27 = vunpack.c.h.bf16 %v4245_v7 }
 0x43a   : > { %v963_v53 = vmul.f32 %v5085_v27, %v4221_v32  ;;  %v5200_v27 = vunpack.c.l.bf16 %v4255_v0 }
 0x43c   : > { %1302 = vadd.xlane.f32.xlu1 %v1301_v9  ;;  %v4263_v9 = vld [vmem:[#allocation12 + $0x60] sm:$0xff]   ;;  %v4358_v56 = vmul.f32 %v5200_v27, %v4218_v33  ;;  %v1044_v6 = vsel %vm704_vm5, %v963_v53, 0.0 }
 0x43d   : > { %5192 = vst [vmem:[#allocation51_spill] sm:$0xff] %v4263_v9  ;;  %v5204_v7 = vunpack.c.l.bf16 %v4263_v9  ;;  %v5205_v0 = vunpack.c.h.bf16 %v4263_v9  ;;  %v5209_v9 = vunpack.c.h.bf16 %v4271_v60  ;;  %v990_v60 = vsel %vm704_vm5, %v951_v62, 0.0 }
 0x43e   : > { %v991_v31 = vadd.f32 %v990_v60, %v989_v40  ;;  %v1018_v62 = vadd.f32 %v1017_v50, %v1016_v49  ;;  %v1025_v60 = vsel %vm704_vm5, %v958_v58, 0.0  ;;  %v1036_v50 = vadd.f32 %v1035_v41, %v1034_v21 }
 0x43f   : > { %v4378_v27 = vmul.f32 %v5204_v7, %v4218_v33  ;;  %v4383_v55 = vmul.f32 %v5205_v0, %v4221_v32  ;;  %v4398_v7 = vmul.f32 %v5208_v14, %v4218_v33  ;;  %v4403_v0 = vmul.f32 %v5209_v9, %v4221_v32 }
 0x440   : > { %v981_v14 = vsel %vm704_vm5, %v949_v46, 0.0  ;;  %v1000_v33 = vadd.f32 %v999_v34, %v998_v26  ;;  %v992_v32 = vrot.slane %v991_v31, 4  ;;  %v1009_v46 = vadd.f32 %v1008_v1, %v1007_v3 }
 0x441   : > { %v982_v9 = vadd.f32 %v981_v14, %v980_v39  ;;  %v1027_v39 = vadd.f32 %v1026_v48, %v1025_v60  ;;  %v1019_v14 = vrot.slane %v1018_v62, 4  ;;  %v1043_v58 = vsel %vm704_vm5, %v962_v43, 0.0 }
 0x442   : > { %v1001_v52 = vrot.slane %v1000_v33, 4  ;;  %v993_v24 = vadd.f32 %v992_v32, %v991_v31  ;;  %v1010_v26 = vrot.slane %v1009_v46, 4 }
 0x443   : > { %v983_v47 = vrot.slane %v982_v9, 4  ;;  %v1028_v22 = vrot.slane %v1027_v39, 4  ;;  %v1020_v49 = vadd.f32 %v1019_v14, %v1018_v62  ;;  %v1045_v62 = vadd.f32 %v1044_v6, %v1043_v58 }
 0x444   : > { %v1002_v4 = vadd.f32 %v1001_v52, %v1000_v33  ;;  %v994_v3 = vrot.slane %v993_v24, 2  ;;  %v1011_v1 = vadd.f32 %v1010_v26, %v1009_v46  ;;  %v1037_v33 = vrot.slane %v1036_v50, 4 }
 0x445   : > { %v984_v40 = vadd.f32 %v983_v47, %v982_v9  ;;  %v1029_v31 = vadd.f32 %v1028_v22, %v1027_v39  ;;  %v1021_v52 = vrot.slane %v1020_v49, 2  ;;  %v1046_v21 = vrot.slane %v1045_v62, 4 }
 0x446   : > { %v1003_v51 = vrot.slane %v1002_v4, 2  ;;  %v995_v9 = vadd.f32 %v994_v3, %v993_v24  ;;  %v1012_v32 = vrot.slane %v1011_v1, 2  ;;  %v1038_v37 = vadd.f32 %v1037_v33, %v1036_v50 }
 0x447   : > { %v985_v34 = vrot.slane %v984_v40, 2  ;;  %v1030_v42 = vrot.slane %v1029_v31, 2  ;;  %v1022_v26 = vadd.f32 %v1021_v52, %v1020_v49  ;;  %v1053_v3 = vsel %vm704_vm5, %v4343_v57, 0.0 }
 0x448   : > { %v1004_v47 = vadd.f32 %v1003_v51, %v1002_v4  ;;  %v996_v5 = vrot.slane %v995_v9, 1  ;;  %v1013_v48 = vadd.f32 %v1012_v32, %v1011_v1  ;;  %v1039_v4 = vrot.slane %v1038_v37, 2 }
 0x449   : > { %v986_v2 = vadd.f32 %v985_v34, %v984_v40  ;;  %v1031_v24 = vadd.f32 %v1030_v42, %v1029_v31  ;;  %v1023_v51 = vrot.slane %v1022_v26, 1  ;;  %v1052_v34 = vsel %vm704_vm5, %v4338_v45, 0.0 }
 0x44a   : > { %v1005_v46 = vrot.slane %v1004_v47, 1  ;;  %v4433_v43 = vadd.f32 %v996_v5, %v995_v9  ;;  %v1014_v40 = vrot.slane %v1013_v48, 1  ;;  %v1040_v22 = vadd.f32 %v1039_v4, %v1038_v37 }
 0x44b   : > { %v987_v60 = vrot.slane %v986_v2, 1  ;;  %v1032_v41 = vrot.slane %v1031_v24, 1  ;;  %v4443_v1 = vadd.f32 %v1023_v51, %v1022_v26  ;;  %v1047_v49 = vadd.f32 %v1046_v21, %v1045_v62 }
 0x44c   : > { %v4435_v39 = vadd.f32 %v1005_v46, %v1004_v47  ;;  %v4437_v53 = vadd.f32 %v1014_v40, %v1013_v48  ;;  %v1054_v50 = vadd.f32 %v1053_v3, %v1052_v34  ;;  %v1061_v58 = vsel %vm704_vm5, %v4348_v61, 0.0 }
 0x44d   : > { %v4431_v14 = vadd.f32 %v987_v60, %v986_v2  ;;  %v4445_v42 = vadd.f32 %v1032_v41, %v1031_v24  ;;  %v1062_v2 = vsel %vm704_vm5, %v4353_v54, 0.0  ;;  %v1070_v9 = vsel %vm704_vm5, %v4358_v56, 0.0 }
 0x44e   : > { %v1041_v45 = vrot.slane %v1040_v22, 1  ;;  %v1048_v32 = vrot.slane %v1047_v49, 2  ;;  %v1055_v31 = vrot.slane %v1054_v50, 4  ;;  %v1063_v57 = vadd.f32 %v1062_v2, %v1061_v58 }
 0x44f   : > { %v1071_v37 = vsel %vm704_vm5, %v4363_v10, 0.0  ;;  %v1079_v47 = vsel %vm704_vm5, %v4368_v44, 0.0  ;;  %v1080_v52 = vsel %vm704_vm5, %v4373_v13, 0.0  ;;  %v1088_v61 = vsel %vm704_vm5, %v4378_v27, 0.0 }
 0x450   : > { %v4461_v54 = vadd.f32 %v1041_v45, %v1040_v22  ;;  %v1049_v33 = vadd.f32 %v1048_v32, %v1047_v49  ;;  %v1056_v56 = vadd.f32 %v1055_v31, %v1054_v50  ;;  %v1064_v6 = vrot.slane %v1063_v57, 4 }
 0x451   : > { %v1072_v60 = vadd.f32 %v1071_v37, %v1070_v9  ;;  %v1081_v5 = vadd.f32 %v1080_v52, %v1079_v47  ;;  %v1089_v48 = vsel %vm704_vm5, %v4383_v55, 0.0  ;;  %v1097_v10 = vsel %vm704_vm5, %v4388_v25, 0.0  ;;  %v2546_v37 = vld [vmem:[#allocation14] ss:$0 sm:$0xff] }
 0x452   : > { %v1050_v44 = vrot.slane %v1049_v33, 1  ;;  %v1057_v46 = vrot.slane %v1056_v56, 2  ;;  %v1065_v26 = vadd.f32 %v1064_v6, %v1063_v57  ;;  %v1090_v13 = vadd.f32 %v1089_v48, %v1088_v61 }
 0x453   : > { %v1073_v62 = vrot.slane %v1072_v60, 4  ;;  %v1082_v40 = vrot.slane %v1081_v5, 4  ;;  %v1098_v27 = vsel %vm704_vm5, %v4393_v8, 0.0  ;;  %v1106_v24 = vsel %vm704_vm5, %v4398_v7, 0.0 }
 0x454   : > { %v1051_v51 = vadd.f32 %v1050_v44, %v1049_v33  ;;  %v1058_v4 = vadd.f32 %v1057_v46, %v1056_v56  ;;  %v1066_v21 = vrot.slane %v1065_v26, 2  ;;  %v1091_v41 = vrot.slane %v1090_v13, 4 }
 0x455   : > { %v1074_v55 = vadd.f32 %v1073_v62, %v1072_v60  ;;  %v1083_v34 = vadd.f32 %v1082_v40, %v1081_v5  ;;  %v1099_v3 = vadd.f32 %v1098_v27, %v1097_v10  ;;  %v1107_v25 = vsel %vm704_vm5, %v4403_v0, 0.0 }
 0x456   : > { %v1059_v22 = vrot.slane %v1058_v4, 1  ;;  %v1067_v49 = vadd.f32 %v1066_v21, %v1065_v26  ;;  %v1092_v50 = vadd.f32 %v1091_v41, %v1090_v13  ;;  %v1108_v58 = vadd.f32 %v1107_v25, %v1106_v24 }
 0x457   : > { %v1075_v2 = vrot.slane %v1074_v55, 2  ;;  %v1084_v9 = vrot.slane %v1083_v34, 2  ;;  %v1100_v8 = vrot.slane %v1099_v3, 4  ;;  %v1115_v7 = vsel %vm704_vm5, %v4408_v12, 0.0 }
 0x458   : > { %v1060_v45 = vadd.f32 %v1059_v22, %v1058_v4  ;;  %v1068_v32 = vrot.slane %v1067_v49, 1  ;;  %v1093_v31 = vrot.slane %v1092_v50, 2  ;;  %v1109_v57 = vrot.slane %v1108_v58, 4 }
 0x459   : > { %v1076_v47 = vadd.f32 %v1075_v2, %v1074_v55  ;;  %v1085_v52 = vadd.f32 %v1084_v9, %v1083_v34  ;;  %v1101_v61 = vadd.f32 %v1100_v8, %v1099_v3  ;;  %v1116_v0 = vsel %vm704_vm5, %v4413_v63, 0.0 }
 0x45a   : > { %v1069_v33 = vadd.f32 %v1068_v32, %v1067_v49  ;;  %v1094_v56 = vadd.f32 %v1093_v31, %v1092_v50  ;;  %v1110_v6 = vadd.f32 %v1109_v57, %v1108_v58  ;;  %v1117_v60 = vadd.f32 %v1116_v0, %v1115_v7 }
 0x45b   : > { %v1077_v5 = vrot.slane %v1076_v47, 1  ;;  %v1086_v48 = vrot.slane %v1085_v52, 1  ;;  %v1102_v10 = vrot.slane %v1101_v61, 2  ;;  %v1130_v12 = vadd.f32 %v2546_v37, %v4431_v14 }
 0x45c   : > { %v1095_v44 = vrot.slane %v1094_v56, 1  ;;  %v1111_v46 = vrot.slane %v1110_v6, 2  ;;  %v1118_v26 = vrot.slane %v1117_v60, 4  ;;  %v1131_v13 = vadd.f32 %v2546_v37, %v4433_v43 }
 0x45d   : > { %v1078_v62 = vadd.f32 %v1077_v5, %v1076_v47  ;;  %v1087_v40 = vadd.f32 %v1086_v48, %v1085_v52  ;;  %v1103_v27 = vadd.f32 %v1102_v10, %v1101_v61  ;;  %v1132_v24 = vadd.f32 %v2546_v37, %v4435_v39 }
 0x45e   : > { %v1096_v63 = vadd.f32 %v1095_v44, %v1094_v56  ;;  %v1112_v4 = vadd.f32 %v1111_v46, %v1110_v6  ;;  %v1119_v21 = vadd.f32 %v1118_v26, %v1117_v60  ;;  %v1133_v41 = vadd.f32 %v2546_v37, %v4437_v53 }
 0x45f   : > { %v1104_v55 = vrot.slane %v1103_v27, 1  ;;  %v1134_v34 = vadd.f32 %v2546_v37, %v4443_v1  ;;  %v1135_v14 = vadd.f32 %v2546_v37, %v4445_v42  ;;  %v1136_v3 = vadd.f32 %v2546_v37, %v4461_v54 }
 0x460   : > { %v1113_v25 = vrot.slane %v1112_v4, 1  ;;  %v1120_v22 = vrot.slane %v1119_v21, 2  ;;  %v1137_v43 = vadd.f32 %v2546_v37, %v1051_v51  ;;  %v1138_v49 = vadd.f32 %v2546_v37, %v1060_v45 }
 0x461   : > { %v1105_v50 = vadd.f32 %v1104_v55, %v1103_v27  ;;  %v1139_v58 = vadd.f32 %v2546_v37, %v1069_v33  ;;  %v1140_v2 = vadd.f32 %v2546_v37, %v1078_v62  ;;  %v1141_v39 = vadd.f32 %v2546_v37, %v1087_v40 }
 0x462   : > { %v1114_v9 = vadd.f32 %v1113_v25, %v1112_v4  ;;  %v1121_v8 = vadd.f32 %v1120_v22, %v1119_v21  ;;  %v1142_v7 = vadd.f32 %v2546_v37, %v1096_v63  ;;  %v1324_v32 = vrot.slane %v1131_v13, 7 }
 0x463   : > { %v1143_v53 = vadd.f32 %v2546_v37, %v1105_v50  ;;  %v1326_v31 = vrot.slane %v1132_v24, 6  ;;  %v1328_v57 = vrot.slane %v1133_v41, 5  ;;  %v1330_v1 = vrot.slane %v1134_v34, 4  ;;  %v4509_v50 = vld [vmem:[#allocation17] sm:$0xff]  }
 0x464   : > { %v1122_v47 = vrot.slane %v1121_v8, 1  ;;  %v1144_v42 = vadd.f32 %v2546_v37, %v1114_v9  ;;  %v1325_v54 = vsel %vm1163_vm7, %v1324_v32, %v1130_v12  ;;  %v1332_v52 = vrot.slane %v1135_v14, 3  ;;  %2795 = vmatpush3.bf16.msra.mxu1 %v4509_v50 }
 0x465   : > { %v1327_v51 = vsel %vm1166_vm8, %v1326_v31, %v1325_v54  ;;  %v1334_v45 = vrot.slane %v1136_v3, 2  ;;  %v1336_v61 = vrot.slane %v1137_v43, 1  ;;  %v1338_v0 = vrot.slane %v1139_v58, 7  ;;  %v3058_v43 = vld [vmem:[#allocation6] sm:$0xff]  }
 0x466   : > { %v1123_v33 = vadd.f32 %v1122_v47, %v1121_v8  ;;  %v1329_v56 = vsel %vm1169_vm9, %v1328_v57, %v1327_v51  ;;  %v1340_v6 = vrot.slane %v1140_v2, 6  ;;  %v1342_v60 = vrot.slane %v1141_v39, 5  ;;  %v3059_v8 = vld [vmem:[#allocation8] ss:$0 sm:$0xff] }
 0x467   : > { %v1331_v5 = vsel %vm1172_vm10, %v1330_v1, %v1329_v56  ;;  %v1339_v48 = vsel %vm1163_vm7, %v1338_v0, %v1138_v49  ;;  %v1344_v10 = vrot.slane %v1142_v7, 4  ;;  %v1346_v44 = vrot.slane %v1143_v53, 3  ;;  %v4505_v49 = vld [vmem:[#allocation2] sm:$0xff] }
 0x468   : > { %v1145_v46 = vadd.f32 %v2546_v37, %v1123_v33  ;;  %v1333_v12 = vsel %vm1175_vm11, %v1332_v52, %v1331_v5  ;;  %v1341_v26 = vsel %vm1166_vm8, %v1340_v6, %v1339_v48  ;;  %v1348_v13 = vrot.slane %v1144_v42, 2 }
 0x469   : > { %v1335_v62 = vsel %vm1178_vm12, %v1334_v45, %v1333_v12  ;;  %v1343_v40 = vsel %vm1169_vm9, %v1342_v60, %v1341_v26  ;;  %v5212_v1 = vunpack.c.l.bf16 %v3961_v15  ;;  %v5213_v42 = vunpack.c.l.bf16 %v3963_v16 }
 0x46a   : > { %v1345_v27 = vsel %vm1172_vm10, %v1344_v10, %v1343_v40  ;;  %v1350_v24 = vrot.slane %v1145_v46, 1  ;;  %v1337_v63 = vsel %vm1181_vm13, %v1336_v61, %v1335_v62  ;;  %v5214_v52 = vunpack.c.l.bf16 %v3965_v17 }
 0x46b   : > { %v1347_v4 = vsel %vm1175_vm11, %v1346_v44, %v1345_v27  ;;  %v5215_v45 = vunpack.c.l.bf16 %v3967_v18  ;;  %v5216_v0 = vunpack.c.l.bf16 %v3969_v19  ;;  %v5217_v56 = vunpack.c.l.bf16 %v3971_v20 }
 0x46c   : > { %v1349_v21 = vsel %vm1178_vm12, %v1348_v13, %v1347_v4  ;;  %v5218_v60 = vunpack.c.l.bf16 %v3975_v23  ;;  %v5219_v10 = vunpack.c.h.bf16 %v3961_v15  ;;  %v5220_v46 = vunpack.c.h.bf16 %v3963_v16 }
 0x46d   : > { %v1351_v37 = vsel %vm1181_vm13, %v1350_v24, %v1349_v21  ;;  %v5221_v26 = vunpack.c.h.bf16 %v3965_v17  ;;  %v5222_v62 = vunpack.c.h.bf16 %v3967_v18  ;;  %v5223_v27 = vunpack.c.h.bf16 %v3969_v19 }
 0x46e   : > { %v2832_v41 = vpack.c.bf16 %v1351_v37, %v1337_v63  ;;  %v5224_v15 = vunpack.c.h.bf16 %v3971_v20  ;;  %v5225_v16 = vunpack.c.h.bf16 %v3975_v23  ;;  %v5226_v17 = vunpack.c.l.bf16 %v3981_v28 }
 0x46f   : > { %v5227_v18 = vunpack.c.h.bf16 %v3981_v28 }
 0x470   : > { %2833 = vmatprep.subr.bf16.mxu0 %v2832_v41 }
 0x471   : > { %2835 = vmatpush3.bf16.msra.mxu0 %v2832_v41 }
 0x472   : > { %2800 = vmatprep.subr.bf16.mxu0 %v5177_v38 }
 0x4c5   : > { %v1300_v55 = vpop.xlane.xlu1 %1299 }
 0x4c6   : > { %3046 = vrcp.f32 %v1300_v55 }
 0x4c9   : > { %v1303_v34 = vpop.xlane.xlu1 %1302 }
 0x4ca   : > { %3048 = vrcp.f32 %v1303_v34 }
 0x4d0   : > { %v3047_v14 = vpop.eup %3046 }
 0x4d1   : > { %v1305_v3 = vmul.f32 %v3047_v14, %v4209_v11 }
 0x4d3   : > { %2791 = vmatprep.mubr.msk.f32.mxu0 %vm704_vm5, %v1305_v3 }
 0x4d4   : > { %v3049_v25 = vpop.eup %3048 }
 0x4d5   : > { %v1307_v22 = vmul.f32 %v3049_v25, %v4213_v59 }
 0x4d7   : > { %2792 = vmatmul.mubr.msk.f32.vlgmr.msra.gmra.mrb[4].mxu0 %vm704_vm5, %v1307_v22 }
 0x4d8   : > { %2801 = vmatpush3.bf16.msra.mxu0 %v3058_v43  ;;  %2802 = vmatprep.mubr.msk.bf16.mxu0 %vm3481_vm0, %v5177_v38 }
 0x4db   : > { %2803 = vmatmul.mubr.msk.bf16.vlgmr.msra.gmra.mrb[8].mxu0 %vm704_vm5, %v4505_v49 }
 0x5aa   : > { %v2793_v11 = vpop.f32.mrb[4].mxu0 }
 0x5ab   : > { %v1436_v58 = vmax.f32 %v2793_v11, 0.0  ;;  %v1426_v2 = vpop.f32.mrb[5].mxu0 }
 0x5ac   : > { %v1435_v59 = vmax.f32 %v1426_v2, 0.0 }
 0x5ae   : > { %v1437_v39 = vpack.c.bf16 %v1436_v58, %v1435_v59  ;;  %v1578_v9 = vpop.f32.mrb[8].mxu0 }
 0x5af   : > { %v4512_v7 = vadd.f32 %v3059_v8, %v1578_v9  ;;  %v2804_v32 = vpop.f32.mrb[9].mxu0 }
 0x5b0   : > { %2797 = vmatmul.mubr.msk.bf16.vlgmr.msra.gmra.mrb[4].mxu1 %vm704_vm5, %v1437_v39  ;;  %v1581_v53 = vpop.f32.mrb[10].mxu0 }
 0x5b1   : > { %v4515_v31 = vadd.f32 %v3059_v8, %v1581_v53  ;;  %v2805_v57 = vpop.f32.mrb[11].mxu0  ;;  %v1585_v47 = vmul.f32 %v5212_v1, %v4512_v7  ;;  %v1587_v54 = vmul.f32 %v5213_v42, %v4512_v7  ;;  %v1589_v51 = vmul.f32 %v5214_v52, %v4512_v7 }
 0x5b2   : > { %v1591_v61 = vmul.f32 %v5215_v45, %v4512_v7  ;;  %v1593_v33 = vmul.f32 %v5216_v0, %v4512_v7  ;;  %v1595_v6 = vmul.f32 %v5217_v56, %v4512_v7  ;;  %v1597_v5 = vmul.f32 %v5218_v60, %v4512_v7 }
 0x5b3   : > { %v3029_v48 = vpack.i.bf16 %v4515_v31, %v4512_v7  ;;  %v1586_v44 = vmul.f32 %v5219_v10, %v4515_v31  ;;  %v1588_v12 = vmul.f32 %v5220_v46, %v4515_v31  ;;  %v1590_v13 = vmul.f32 %v5221_v26, %v4515_v31 }
 0x5b4   : > { %v1592_v40 = vmul.f32 %v5222_v62, %v4515_v31  ;;  %v1594_v24 = vmul.f32 %v5223_v27, %v4515_v31  ;;  %v1596_v63 = vmul.f32 %v5224_v15, %v4515_v31  ;;  %v1598_v4 = vmul.f32 %v5225_v16, %v4515_v31 }
 0x5b5   : > { %3030 = vrot.lane.b32.xlu1 %v3029_v48, %s3482_s29  ;;  %v1599_v21 = vmul.f32 %v5226_v17, %v4512_v7  ;;  %v1600_v37 = vmul.f32 %v5227_v18, %v4515_v31  ;;  %v1617_v19 = vsel %vm781_vm6, %v1585_v47, 0.0  ;;  %v1618_v41 = vsel %vm781_vm6, %v1586_v44, 0.0  ;;  %s3346_s29 = scalar_lea.vmem %s4947_s30, 256 }
 0x5b6   : > { %v1619_v20 = vadd.f32 %v1618_v41, %v1617_v19  ;;  %v1626_v55 = vsel %vm781_vm6, %v1587_v54, 0.0  ;;  %v1627_v23 = vsel %vm781_vm6, %v1588_v12, 0.0  ;;  %v1635_v34 = vsel %vm781_vm6, %v1589_v51, 0.0  ;;  %p3347_p4 = scmp.ne.s32.totalorder %s4947_s30, %s3346_s29  ;;  %p3354_p9 = scmp.lt.s32.totalorder %s3352_s1, %s3346_s29 }
 0x5b7   : > { %v1628_v14 = vadd.f32 %v1627_v23, %v1626_v55  ;;  %v1636_v3 = vsel %vm781_vm6, %v1590_v13, 0.0  ;;  %v1644_v25 = vsel %vm781_vm6, %v1591_v61, 0.0  ;;  %v1645_v22 = vsel %vm781_vm6, %v1592_v40, 0.0 }
 0x5b8   : > { %v1620_v28 = vrot.slane %v1619_v20, 4  ;;  %v1637_v43 = vadd.f32 %v1636_v3, %v1635_v34  ;;  %v1646_v11 = vadd.f32 %v1645_v22, %v1644_v25  ;;  %v1653_v58 = vsel %vm781_vm6, %v1593_v33, 0.0  ;;  %p3348_p7 = pnand %p3347_p4, %p5303_p8  ;;  %p3355_p10 = por %p3354_p9, %p3353_p2 }
 0x5b9   : > { %v1629_v2 = vrot.slane %v1628_v14, 4  ;;  %v1654_v59 = vsel %vm781_vm6, %v1594_v24, 0.0  ;;  %v1662_v39 = vsel %vm781_vm6, %v1595_v6, 0.0  ;;  %v1663_v9 = vsel %vm781_vm6, %v1596_v63, 0.0 }
 0x5ba   : > { %v1621_v8 = vadd.f32 %v1620_v28, %v1619_v20  ;;  %v1638_v32 = vrot.slane %v1637_v43, 4  ;;  %v1647_v53 = vrot.slane %v1646_v11, 4  ;;  %v1655_v57 = vadd.f32 %v1654_v59, %v1653_v58  ;;  %p3349_p5 = pneg %p3348_p7 }
 0x5bb   : > { %v1630_v1 = vadd.f32 %v1629_v2, %v1628_v14  ;;  %v1664_v47 = vadd.f32 %v1663_v9, %v1662_v39  ;;  %v1671_v42 = vsel %vm781_vm6, %v1597_v5, 0.0  ;;  %v1672_v54 = vsel %vm781_vm6, %v1598_v4, 0.0 }
 0x5bc   : > { %v1622_v52 = vrot.slane %v1621_v8, 2  ;;  %v1639_v51 = vadd.f32 %v1638_v32, %v1637_v43  ;;  %v1648_v45 = vadd.f32 %v1647_v53, %v1646_v11  ;;  %v1656_v61 = vrot.slane %v1655_v57, 4  ;;  %p3356_p1 = pnand %p3355_p10, %p3349_p5 }
 0x5bd   : > { %v1631_v0 = vrot.slane %v1630_v1, 2  ;;  %v1665_v33 = vrot.slane %v1664_v47, 4  ;;  %v1673_v56 = vadd.f32 %v1672_v54, %v1671_v42  ;;  %v1680_v6 = vsel %vm781_vm6, %v1599_v21, 0.0 }
 0x5be   : > { %v1623_v60 = vadd.f32 %v1622_v52, %v1621_v8  ;;  %v1640_v48 = vrot.slane %v1639_v51, 2  ;;  %v1649_v10 = vrot.slane %v1648_v45, 2  ;;  %v1657_v44 = vadd.f32 %v1656_v61, %v1655_v57 }
 0x5bf   : > { %v1632_v46 = vadd.f32 %v1631_v0, %v1630_v1  ;;  %v1666_v12 = vadd.f32 %v1665_v33, %v1664_v47  ;;  %v1674_v26 = vrot.slane %v1673_v56, 4  ;;  %v1681_v5 = vsel %vm781_vm6, %v1600_v37, 0.0  ;;  %v4584_v37 = vld [vmem:[#allocation11] ss:$0 sm:$0xff] }
 0x5c0   : > { %v1624_v13 = vrot.slane %v1623_v60, 1  ;;  %v1641_v62 = vadd.f32 %v1640_v48, %v1639_v51  ;;  %v1650_v40 = vadd.f32 %v1649_v10, %v1648_v45  ;;  %v1658_v27 = vrot.slane %v1657_v44, 2 }
 0x5c1   : > { %v1633_v24 = vrot.slane %v1632_v46, 1  ;;  %v1667_v15 = vrot.slane %v1666_v12, 2  ;;  %v1675_v63 = vadd.f32 %v1674_v26, %v1673_v56  ;;  %v1682_v16 = vadd.f32 %v1681_v5, %v1680_v6 }
 0x5c2   : > { %v1625_v4 = vadd.f32 %v1624_v13, %v1623_v60  ;;  %v1642_v17 = vrot.slane %v1641_v62, 1  ;;  %v1651_v21 = vrot.slane %v1650_v40, 1  ;;  %v1659_v18 = vadd.f32 %v1658_v27, %v1657_v44 }
 0x5c3   : > { %v1634_v19 = vadd.f32 %v1633_v24, %v1632_v46  ;;  %v1668_v41 = vadd.f32 %v1667_v15, %v1666_v12  ;;  %v1676_v20 = vrot.slane %v1675_v63, 2  ;;  %v1683_v55 = vrot.slane %v1682_v16, 4 }
 0x5c4   : > { %v1643_v23 = vadd.f32 %v1642_v17, %v1641_v62  ;;  %v1652_v34 = vadd.f32 %v1651_v21, %v1650_v40  ;;  %v1660_v14 = vrot.slane %v1659_v18, 1  ;;  %v1761_v3 = vadd.f32 %v4584_v37, %v1625_v4  ;;  %v5236_v4 = vld [vmem:[#allocation32_spill] sm:$0xff] }
 0x5c5   : > { %v1669_v25 = vrot.slane %v1668_v41, 1  ;;  %v1677_v22 = vadd.f32 %v1676_v20, %v1675_v63  ;;  %v1684_v28 = vadd.f32 %v1683_v55, %v1682_v16  ;;  %v1762_v43 = vadd.f32 %v4584_v37, %v1634_v19  ;;  %v5239_v19 = vld [vmem:[#allocation33_spill] sm:$0xff] }
 0x5c6   : > { %v1661_v11 = vadd.f32 %v1660_v14, %v1659_v18  ;;  %v1763_v58 = vadd.f32 %v4584_v37, %v1643_v23  ;;  %v1764_v2 = vadd.f32 %v4584_v37, %v1652_v34  ;;  %v5228_v59 = vunpack.c.l.bf16 %v3983_v29  ;;  %v5242_v14 = vld [vmem:[#allocation34_spill] sm:$0xff] }
 0x5c7   : > { %v1670_v9 = vadd.f32 %v1669_v25, %v1668_v41  ;;  %v1678_v8 = vrot.slane %v1677_v22, 1  ;;  %v1685_v32 = vrot.slane %v1684_v28, 2  ;;  %v1985_v53 = vrot.slane %v1762_v43, 7  ;;  %v5245_v43 = vld [vmem:[#allocation35_spill] sm:$0xff] }
 0x5c8   : > { %v1601_v39 = vmul.f32 %v5228_v59, %v4512_v7  ;;  %v1765_v57 = vadd.f32 %v4584_v37, %v1661_v11  ;;  %v1987_v1 = vrot.slane %v1763_v58, 6  ;;  %v1989_v47 = vrot.slane %v1764_v2, 5 }
 0x5c9   : > { %v5229_v42 = vunpack.c.h.bf16 %v3983_v29  ;;  %v1679_v52 = vadd.f32 %v1678_v8, %v1677_v22  ;;  %v1686_v51 = vadd.f32 %v1685_v32, %v1684_v28  ;;  %v1766_v45 = vadd.f32 %v4584_v37, %v1670_v9 }
 0x5ca   : > { %v1986_v61 = vsel %vm1163_vm7, %v1985_v53, %v1761_v3  ;;  %v1991_v33 = vrot.slane %v1765_v57, 4  ;;  %v5230_v56 = vunpack.c.l.bf16 %v3985_v30  ;;  %v5231_v60 = vunpack.c.h.bf16 %v3985_v30 }
 0x5cb   : > { %v1602_v54 = vmul.f32 %v5229_v42, %v4515_v31  ;;  %v1988_v0 = vsel %vm1166_vm8, %v1987_v1, %v1986_v61  ;;  %v1687_v10 = vrot.slane %v1686_v51, 1  ;;  %v1767_v29 = vadd.f32 %v4584_v37, %v1679_v52 }
 0x5cc   : > { %v1603_v6 = vmul.f32 %v5230_v56, %v4512_v7  ;;  %v1604_v48 = vmul.f32 %v5231_v60, %v4515_v31  ;;  %v1990_v44 = vsel %vm1169_vm9, %v1989_v47, %v1988_v0  ;;  %v1993_v46 = vrot.slane %v1766_v45, 3 }
 0x5cd   : > { %v1992_v12 = vsel %vm1172_vm10, %v1991_v33, %v1990_v44  ;;  %v5232_v26 = vunpack.c.l.bf16 %v3991_v35  ;;  %v5233_v13 = vunpack.c.h.bf16 %v3991_v35  ;;  %v5234_v30 = vunpack.c.l.bf16 %v3993_v36 }
 0x5ce   : > { %v1688_v27 = vadd.f32 %v1687_v10, %v1686_v51  ;;  %v1994_v24 = vsel %vm1175_vm11, %v1993_v46, %v1992_v12  ;;  %v1995_v15 = vrot.slane %v1767_v29, 2  ;;  %v5235_v63 = vunpack.c.h.bf16 %v3993_v36 }
 0x5cf   : > { %v1605_v5 = vmul.f32 %v5232_v26, %v4512_v7  ;;  %v1606_v62 = vmul.f32 %v5233_v13, %v4515_v31  ;;  %v1607_v40 = vmul.f32 %v5234_v30, %v4512_v7  ;;  %v5237_v17 = vunpack.c.l.bf16 %v5236_v4 }
 0x5d0   : > { %v1608_v16 = vmul.f32 %v5235_v63, %v4515_v31  ;;  %v5238_v35 = vunpack.c.h.bf16 %v5236_v4  ;;  %v5240_v41 = vunpack.c.l.bf16 %v5239_v19  ;;  %v5241_v55 = vunpack.c.h.bf16 %v5239_v19 }
 0x5d1   : > { %v1609_v21 = vmul.f32 %v5237_v17, %v4512_v7  ;;  %v1768_v34 = vadd.f32 %v4584_v37, %v1688_v27  ;;  %v1996_v36 = vsel %vm1178_vm12, %v1995_v15, %v1994_v24  ;;  %v5243_v3 = vunpack.c.l.bf16 %v5242_v14 }
 0x5d2   : > { %v1610_v18 = vmul.f32 %v5238_v35, %v4515_v31  ;;  %v1611_v20 = vmul.f32 %v5240_v41, %v4512_v7  ;;  %v1612_v23 = vmul.f32 %v5241_v55, %v4515_v31  ;;  %v5244_v22 = vunpack.c.h.bf16 %v5242_v14 }
 0x5d3   : > { %v1613_v25 = vmul.f32 %v5243_v3, %v4512_v7  ;;  %v5246_v11 = vunpack.c.l.bf16 %v5245_v43  ;;  %v5247_v2 = vunpack.c.h.bf16 %v5245_v43  ;;  %v1689_v9 = vsel %vm781_vm6, %v1601_v39, 0.0 }
 0x5d4   : > { %v1614_v28 = vmul.f32 %v5244_v22, %v4515_v31  ;;  %v1690_v8 = vsel %vm781_vm6, %v1602_v54, 0.0  ;;  %v1997_v32 = vrot.slane %v1768_v34, 1  ;;  %v1698_v57 = vsel %vm781_vm6, %v1603_v6, 0.0 }
 0x5d5   : > { %v1615_v58 = vmul.f32 %v5246_v11, %v4512_v7  ;;  %v1616_v59 = vmul.f32 %v5247_v2, %v4515_v31  ;;  %v1691_v53 = vadd.f32 %v1690_v8, %v1689_v9  ;;  %v1699_v1 = vsel %vm781_vm6, %v1604_v48, 0.0 }
 0x5d6   : > { %v1700_v47 = vadd.f32 %v1699_v1, %v1698_v57  ;;  %v1707_v42 = vsel %vm781_vm6, %v1605_v5, 0.0  ;;  %v1708_v52 = vsel %vm781_vm6, %v1606_v62, 0.0  ;;  %v1716_v7 = vsel %vm781_vm6, %v1607_v40, 0.0 }
 0x5d7   : > { %v1998_v51 = vsel %vm1181_vm13, %v1997_v32, %v1996_v36  ;;  %v1692_v31 = vrot.slane %v1691_v53, 4  ;;  %v1709_v45 = vadd.f32 %v1708_v52, %v1707_v42  ;;  %v1717_v39 = vsel %vm781_vm6, %v1608_v16, 0.0 }
 0x5d8   : > { %2810 = vmatprep.mubr.msk.f32.mxu1 %vm781_vm6, %v1998_v51  ;;  %v1701_v54 = vrot.slane %v1700_v47, 4  ;;  %v1718_v61 = vadd.f32 %v1717_v39, %v1716_v7  ;;  %v1725_v0 = vsel %vm781_vm6, %v1609_v21, 0.0  ;;  %v1726_v33 = vsel %vm781_vm6, %v1610_v18, 0.0 }
 0x5d9   : > { %v1693_v56 = vadd.f32 %v1692_v31, %v1691_v53  ;;  %v1710_v6 = vrot.slane %v1709_v45, 4  ;;  %v1727_v60 = vadd.f32 %v1726_v33, %v1725_v0  ;;  %v1734_v48 = vsel %vm781_vm6, %v1611_v20, 0.0 }
 0x5da   : > { %v1702_v10 = vadd.f32 %v1701_v54, %v1700_v47  ;;  %v1719_v29 = vrot.slane %v1718_v61, 4  ;;  %v1735_v44 = vsel %vm781_vm6, %v1612_v23, 0.0  ;;  %v1743_v46 = vsel %vm781_vm6, %v1613_v25, 0.0 }
 0x5db   : > { %v1694_v12 = vrot.slane %v1693_v56, 2  ;;  %v1711_v26 = vadd.f32 %v1710_v6, %v1709_v45  ;;  %v1728_v5 = vrot.slane %v1727_v60, 4  ;;  %v1736_v13 = vadd.f32 %v1735_v44, %v1734_v48 }
 0x5dc   : > { %v1703_v62 = vrot.slane %v1702_v10, 2  ;;  %v1720_v30 = vadd.f32 %v1719_v29, %v1718_v61  ;;  %v1744_v40 = vsel %vm781_vm6, %v1614_v28, 0.0  ;;  %v1752_v27 = vsel %vm781_vm6, %v1615_v58, 0.0 }
 0x5dd   : > { %v1695_v24 = vadd.f32 %v1694_v12, %v1693_v56  ;;  %v1712_v15 = vrot.slane %v1711_v26, 2  ;;  %v1729_v63 = vadd.f32 %v1728_v5, %v1727_v60  ;;  %v1737_v16 = vrot.slane %v1736_v13, 4 }
 0x5de   : > { %v1704_v4 = vadd.f32 %v1703_v62, %v1702_v10  ;;  %v1721_v17 = vrot.slane %v1720_v30, 2  ;;  %v1745_v21 = vadd.f32 %v1744_v40, %v1743_v46  ;;  %v1753_v35 = vsel %vm781_vm6, %v1616_v59, 0.0 }
 0x5df   : > { %v1696_v18 = vrot.slane %v1695_v24, 1  ;;  %v1713_v19 = vadd.f32 %v1712_v15, %v1711_v26  ;;  %v1730_v41 = vrot.slane %v1729_v63, 2  ;;  %v1738_v20 = vadd.f32 %v1737_v16, %v1736_v13 }
 0x5e0   : > { %v1705_v55 = vrot.slane %v1704_v4, 1  ;;  %v1722_v23 = vadd.f32 %v1721_v17, %v1720_v30  ;;  %v1746_v34 = vrot.slane %v1745_v21, 4  ;;  %v1754_v36 = vadd.f32 %v1753_v35, %v1752_v27 }
 0x5e1   : > { %v1697_v14 = vadd.f32 %v1696_v18, %v1695_v24  ;;  %v1714_v3 = vrot.slane %v1713_v19, 1  ;;  %v1731_v25 = vadd.f32 %v1730_v41, %v1729_v63  ;;  %v1739_v22 = vrot.slane %v1738_v20, 2 }
 0x5e2   : > { %v1706_v28 = vadd.f32 %v1705_v55, %v1704_v4  ;;  %v1723_v43 = vrot.slane %v1722_v23, 1  ;;  %v1747_v11 = vadd.f32 %v1746_v34, %v1745_v21  ;;  %v1755_v58 = vrot.slane %v1754_v36, 4 }
 0x5e3   : > { %v1715_v2 = vadd.f32 %v1714_v3, %v1713_v19  ;;  %v1732_v9 = vrot.slane %v1731_v25, 1  ;;  %v1740_v8 = vadd.f32 %v1739_v22, %v1738_v20  ;;  %v1769_v42 = vadd.f32 %v4584_v37, %v1697_v14  ;;  %v5249_v20 = vld [vmem:[#allocation37_spill] sm:$0xff]  ;;  %v5250_v14 = vld [vmem:[#allocation38_spill] sm:$0xff] }
 0x5e4   : > { %v1724_v59 = vadd.f32 %v1723_v43, %v1722_v23  ;;  %v1748_v32 = vrot.slane %v1747_v11, 2  ;;  %v1756_v53 = vadd.f32 %v1755_v58, %v1754_v36  ;;  %v1770_v57 = vadd.f32 %v4584_v37, %v1706_v28  ;;  %v3061_v43 = vld [vmem:[#allocation15 + $0x8] sm:$0xff] }
 0x5e5   : > { %v1733_v1 = vadd.f32 %v1732_v9, %v1731_v25  ;;  %v1741_v47 = vrot.slane %v1740_v8, 1  ;;  %v1771_v52 = vadd.f32 %v4584_v37, %v1715_v2  ;;  %v3062_v2 = vld [vmem:[#allocation15] sm:$0xff] }
 0x5e6   : > { %v1749_v7 = vadd.f32 %v1748_v32, %v1747_v11  ;;  %v1757_v51 = vrot.slane %v1756_v53, 2  ;;  %v1772_v31 = vadd.f32 %v4584_v37, %v1724_v59  ;;  %v1999_v45 = vrot.slane %v1770_v57, 7 }
 0x5e7   : > { %v1742_v39 = vadd.f32 %v1741_v47, %v1740_v8  ;;  %v1773_v54 = vadd.f32 %v4584_v37, %v1733_v1  ;;  %v2001_v61 = vrot.slane %v1771_v52, 6 }
 0x5e8   : > { %v1750_v0 = vrot.slane %v1749_v7, 1  ;;  %v1758_v33 = vadd.f32 %v1757_v51, %v1756_v53  ;;  %v2000_v56 = vsel %vm1163_vm7, %v1999_v45, %v1769_v42  ;;  %v2003_v6 = vrot.slane %v1772_v31, 5 }
 0x5e9   : > { %v1774_v60 = vadd.f32 %v4584_v37, %v1742_v39  ;;  %v2002_v48 = vsel %vm1166_vm8, %v2001_v61, %v2000_v56  ;;  %v2005_v10 = vrot.slane %v1773_v54, 4  ;;  %v4719_v45 = vunpack.c.l.bf16 %v4505_v49  ;;  %v5251_v54 = vld [vmem:[#allocation39_spill] sm:$0xff] }
 0x5ea   : > { %v1751_v29 = vadd.f32 %v1750_v0, %v1749_v7  ;;  %v1759_v44 = vrot.slane %v1758_v33, 1  ;;  %v2004_v46 = vsel %vm1169_vm9, %v2003_v6, %v2002_v48  ;;  %v4722_v39 = vunpack.c.h.bf16 %v4505_v49  ;;  %v5254_v6 = vld [vmem:[#allocation40_spill] sm:$0xff] }
 0x5eb   : > { %v2006_v12 = vsel %vm1172_vm10, %v2005_v10, %v2004_v46  ;;  %v2007_v26 = vrot.slane %v1774_v60, 3  ;;  %v5252_v61 = vunpack.c.l.bf16 %v5251_v54  ;;  %v5255_v60 = vunpack.c.l.bf16 %v5254_v6 }
 0x5ec   : > { %v1760_v5 = vadd.f32 %v1759_v44, %v1758_v33  ;;  %v1775_v13 = vadd.f32 %v4584_v37, %v1751_v29  ;;  %v5253_v33 = vunpack.c.h.bf16 %v5251_v54  ;;  %v5256_v10 = vunpack.c.h.bf16 %v5254_v6  ;;  %v5257_v44 = vld [vmem:[#allocation41_spill] sm:$0xff] }
 0x5ed   : > { %v2008_v62 = vsel %vm1175_vm11, %v2007_v26, %v2006_v12  ;;  %v1777_v0 = vmul.f32 %v5252_v61, %v4719_v45  ;;  %v1779_v48 = vmul.f32 %v5255_v60, %v4719_v45  ;;  %v5258_v49 = vunpack.c.l.bf16 %v5257_v44  ;;  %v5287_v61 = vld [vmem:[#allocation51_spill] sm:$0xff] }
 0x5ee   : > { %v1776_v30 = vadd.f32 %v4584_v37, %v1760_v5  ;;  %v2009_v40 = vrot.slane %v1775_v13, 2  ;;  %v4690_v37 = vld [vmem:[#allocation18] ss:$0 sm:$0xff]  ;;  %v1778_v56 = vmul.f32 %v5253_v33, %v4722_v39  ;;  %v1780_v29 = vmul.f32 %v5256_v10, %v4722_v39  ;;  %v5260_v5 = vld [vmem:[#allocation42_spill] sm:$0xff] }
 0x5ef   : > { %v1781_v46 = vmul.f32 %v5258_v49, %v4719_v45  ;;  %v5259_v12 = vunpack.c.h.bf16 %v5257_v44  ;;  %v5261_v13 = vunpack.c.l.bf16 %v5260_v5  ;;  %v5288_v33 = vunpack.c.l.bf16 %v5287_v61  ;;  %v5290_v44 = vld [vmem:[#allocation52_spill] sm:$0xff] }
 0x5f0   : > { %v2010_v27 = vsel %vm1178_vm12, %v2009_v40, %v2008_v62  ;;  %v2011_v24 = vrot.slane %v1776_v30, 1  ;;  %v5262_v30 = vunpack.c.h.bf16 %v5260_v5  ;;  %v5289_v60 = vunpack.c.h.bf16 %v5287_v61 }
 0x5f1   : > { %v1782_v26 = vmul.f32 %v5259_v12, %v4722_v39  ;;  %v1783_v62 = vmul.f32 %v5261_v13, %v4719_v45  ;;  %v4815_v6 = vmul.f32 %v5288_v33, %v4719_v45  ;;  %v5291_v49 = vunpack.c.l.bf16 %v5290_v44 }
 0x5f2   : > { %v2012_v15 = vsel %vm1181_vm13, %v2011_v24, %v2010_v27  ;;  %v1784_v40 = vmul.f32 %v5262_v30, %v4722_v39  ;;  %v5263_v27 = vld [vmem:[#allocation43_spill] sm:$0xff]  ;;  %v4820_v10 = vmul.f32 %v5289_v60, %v4722_v39  ;;  %v5292_v5 = vunpack.c.h.bf16 %v5290_v44  ;;  %v5293_v30 = vld [vmem:[#allocation53_spill] sm:$0xff] }
 0x5f3   : > { %v5264_v24 = vunpack.c.l.bf16 %v5263_v27  ;;  %v4825_v12 = vmul.f32 %v5291_v49, %v4719_v45 }
 0x5f4   : > { %v4830_v13 = vmul.f32 %v5292_v5, %v4722_v39 }
 0x627   : > { %v3031_v63 = vpop.permute.xlu1 %3030 }
 0x628   : > { %v3033_v16 = vunpack.i.h.bf16 %v3031_v63  ;;  %v3032_v4 = vunpack.i.l.bf16 %v3031_v63  ;;  %v5265_v63 = vunpack.c.h.bf16 %v5263_v27  ;;  %v5294_v27 = vunpack.c.l.bf16 %v5293_v30 }
 0x62a   : > { %v2836_v17 = vpack.c.bf16 %v3033_v16, %v3032_v4  ;;  %v1786_v16 = vmul.f32 %v5265_v63, %v4722_v39  ;;  %v5266_v4 = vld [vmem:[#allocation44_spill] sm:$0xff]  ;;  %v5295_v63 = vunpack.c.h.bf16 %v5293_v30 }
 0x62c   : > { %2838 = vmatprep.subr.msk.bf16.mxu1 %vm4195_vm14, %v2836_v17 }
 0x62d   : > { %2841 = vmatpush3.bf16.xpose.msk.msra.mxu1 %vm4195_vm14, %v2836_v17  ;;  %v5267_v17 = vunpack.c.l.bf16 %v5266_v4 }
 0x62e   : > { %2820 = vmatprep.subr.bf16.mxu1 %v5177_v38 }
 0x62f   : > { %v1787_v21 = vmul.f32 %v5267_v17, %v4719_v45  ;;  %v5296_v17 = vld [vmem:[#allocation54_spill] sm:$0xff] }
 0x634   : > { %2811 = vmatmul.mubr.msk.f32.vlgmr.msra.gmra.mrb[2].mxu1 %vm781_vm6, %v2012_v15  ;;  %v1785_v15 = vmul.f32 %v5264_v24, %v4719_v45  ;;  %v4835_v24 = vmul.f32 %v5294_v27, %v4719_v45 }
 0x635   : > { %2821 = vmatpush3.bf16.msra.mxu1 %v4509_v50  ;;  %2822 = vmatprep.mubr.msk.bf16.mxu1 %vm3481_vm0, %v5177_v38 }
 0x683   : > { %v1487_v35 = vpop.f32.mrb[4].mxu1 }
 0x684   : > { %v1488_v18 = vadd.f32 %v4690_v37, %v1487_v35  ;;  %v2798_v19 = vpop.f32.mrb[5].mxu1  ;;  %v5268_v35 = vunpack.c.h.bf16 %v5266_v4  ;;  %v4840_v4 = vmul.f32 %v5295_v63, %v4722_v39 }
 0x685   : > { %v1490_v41 = vpop.f32.mrb[6].mxu1  ;;  %v5269_v19 = vld [vmem:[#allocation45_spill] sm:$0xff] }
 0x686   : > { %v1494_v55 = vadd.f32 %v1488_v18, %v5249_v20  ;;  %v1491_v23 = vadd.f32 %v4690_v37, %v1490_v41  ;;  %v2799_v34 = vpop.f32.mrb[7].mxu1  ;;  %v1788_v18 = vmul.f32 %v5268_v35, %v4722_v39  ;;  %v5270_v41 = vunpack.c.l.bf16 %v5269_v19 }
 0x687   : > { %v5272_v34 = vld [vmem:[#allocation46_spill] sm:$0xff]  ;;  %v5297_v35 = vunpack.c.l.bf16 %v5296_v17 }
 0x688   : > { %v2588_v36 = vpack.c.bf16 %v1494_v55, %v1494_v55  ;;  %v1495_v3 = vadd.f32 %v1491_v23, %v5250_v14  ;;  %v1789_v20 = vmul.f32 %v5270_v41, %v4719_v45  ;;  %v5298_v41 = vunpack.c.h.bf16 %v5296_v17 }
 0x68a   : > { %v2557_v25 = vrot.slane %v2588_v36, 10  ;;  %v1496_v50 = vpack.c.bf16 %v1495_v3, %v1494_v55  ;;  %v2589_v22 = vpack.c.bf16 %v1495_v3, %v1495_v3  ;;  %v5271_v55 = vunpack.c.h.bf16 %v5269_v19 }
 0x68b   : > { %v5273_v36 = vunpack.c.l.bf16 %v5272_v34  ;;  %v5274_v3 = vunpack.c.h.bf16 %v5272_v34  ;;  %v4845_v19 = vmul.f32 %v5297_v35, %v4719_v45  ;;  %v1809_v34 = vsel %vm704_vm5, %v1777_v0, 0.0 }
 0x68c   : > { %2558 = vst.msk [vmem:[%s4698_s22 + $0x4] sm:$0x3] %vm661_vm1, %v2557_v25  ;;  %1497 = vst.msk [vmem:[%s4698_s22] sm:$0x3] %vm661_vm1, %v1496_v50  ;;  %v2561_v38 = vrot.slane %v2589_v22, 10  ;;  %v1790_v23 = vmul.f32 %v5271_v55, %v4722_v39  ;;  %v5275_v50 = vld [vmem:[#allocation47_spill] sm:$0xff]  ;;  %v4850_v55 = vmul.f32 %v5298_v41, %v4722_v39 }
 0x68d   : > { %2560 = vst.msk [vmem:[%s4698_s22 + $0x8] sm:$0x3] %vm661_vm1, %v2589_v22  ;;  %v1791_v14 = vmul.f32 %v5273_v36, %v4719_v45  ;;  %v1792_v25 = vmul.f32 %v5274_v3, %v4722_v39  ;;  %v5276_v22 = vunpack.c.l.bf16 %v5275_v50  ;;  %v1810_v36 = vsel %vm704_vm5, %v1778_v56, 0.0 }
 0x68e   : > { %2562 = vst.msk [vmem:[%s4698_s22 + $0xc] sm:$0x3] %vm661_vm1, %v2561_v38  ;;  %v1818_v3 = vsel %vm704_vm5, %v1779_v48, 0.0  ;;  %v1846_v48 = vsel %vm704_vm5, %v1786_v16, 0.0 }
 0x68f   : > { %v4775_v38 = vmul.f32 %v5276_v22, %v4719_v45  ;;  %v1811_v22 = vadd.f32 %v1810_v36, %v1809_v34 }
 0x691   : > { %v1812_v0 = vrot.slane %v1811_v22, 4 }
 0x693   : > { %v1813_v61 = vadd.f32 %v1812_v0, %v1811_v22 }
 0x695   : > { %v1814_v49 = vrot.slane %v1813_v61, 2 }
 0x707   : > { %v2812_v28 = vpop.f32.mrb[2].mxu1 }
 0x708   : > { %v2099_v11 = vadd.f32 %v3061_v43, %v2812_v28  ;;  %v2093_v58 = vpop.f32.mrb[3].mxu1  ;;  %v5277_v28 = vunpack.c.h.bf16 %v5275_v50  ;;  %v1819_v50 = vsel %vm704_vm5, %v1780_v29, 0.0 }
 0x709   : > { %v2094_v9 = vadd.f32 %v3062_v2, %v2093_v58 }
 0x70a   : > { %v2105_v8 = vsel %vm704_vm5, %v2099_v11, -inf  ;;  %v4780_v43 = vmul.f32 %v5277_v28, %v4722_v39  ;;  %v1820_v28 = vadd.f32 %v1819_v50, %v1818_v3 }
 0x70b   : > { %2106 = vmax.xlane.f32.xlu0 %v2105_v8  ;;  %v2102_v59 = vsel %vm704_vm5, %v2094_v9, -inf }
 0x70c   : > { %2103 = vmax.xlane.f32.xlu1 %v2102_v59  ;;  %v5281_v59 = vld [vmem:[#allocation49_spill] sm:$0xff] }
 0x798   : > { %v2107_v32 = vpop.xlane.xlu0 %2106 }
 0x799   : > { %v2109_v53 = vsub.f32 %v2099_v11, %v2107_v32  ;;  %v2104_v57 = vpop.xlane.xlu1 %2103  ;;  %v5278_v11 = vld [vmem:[#allocation48_spill] sm:$0xff]  ;;  %v5282_v32 = vunpack.c.l.bf16 %v5281_v59 }
 0x79a   : > { %v2108_v1 = vsub.f32 %v2094_v9, %v2104_v57  ;;  %v5279_v58 = vunpack.c.l.bf16 %v5278_v11  ;;  %v5280_v9 = vunpack.c.h.bf16 %v5278_v11  ;;  %v5283_v57 = vunpack.c.h.bf16 %v5281_v59 }
 0x79b   : > { %v2112_v47 = vmul.f32 1.442695, %v2109_v53  ;;  %v4795_v53 = vmul.f32 %v5282_v32, %v4719_v45  ;;  %v1827_v11 = vsel %vm704_vm5, %v1781_v46, 0.0  ;;  %v1836_v59 = vsel %vm704_vm5, %v1783_v62, 0.0 }
 0x79c   : > { %v2110_v42 = vmul.f32 1.442695, %v2108_v1  ;;  %v4785_v2 = vmul.f32 %v5279_v58, %v4719_v45  ;;  %v4790_v8 = vmul.f32 %v5280_v9, %v4722_v39  ;;  %v4800_v1 = vmul.f32 %v5283_v57, %v4722_v39 }
 0x79d   : > { %v1828_v58 = vsel %vm704_vm5, %v1782_v26, 0.0  ;;  %v1837_v32 = vsel %vm704_vm5, %v1784_v40, 0.0  ;;  %v1845_v57 = vsel %vm704_vm5, %v1785_v15, 0.0  ;;  %v1855_v46 = vsel %vm704_vm5, %v1788_v18, 0.0 }
 0x79e   : > { %3050 = vpow2.f32 %v2110_v42  ;;  %v1829_v9 = vadd.f32 %v1828_v58, %v1827_v11  ;;  %v1838_v56 = vadd.f32 %v1837_v32, %v1836_v59  ;;  %v1847_v29 = vadd.f32 %v1846_v48, %v1845_v57 }
 0x79f   : > { %3052 = vpow2.f32 %v2112_v47  ;;  %v5284_v47 = vld [vmem:[#allocation50_spill] sm:$0xff]  ;;  %v1863_v40 = vsel %vm704_vm5, %v1789_v20, 0.0  ;;  %v1864_v15 = vsel %vm704_vm5, %v1790_v23, 0.0  ;;  %v1815_v18 = vadd.f32 %v1814_v49, %v1813_v61 }
 0x7a0   : > { %v5285_v42 = vunpack.c.l.bf16 %v5284_v47  ;;  %v1839_v33 = vrot.slane %v1838_v56, 4  ;;  %v1848_v44 = vrot.slane %v1847_v29, 4  ;;  %v1865_v17 = vadd.f32 %v1864_v15, %v1863_v40 }
 0x7a1   : > { %v1873_v20 = vsel %vm704_vm5, %v1792_v25, 0.0  ;;  %v1816_v22 = vrot.slane %v1815_v18, 1  ;;  %v1882_v61 = vsel %vm704_vm5, %v4780_v43, 0.0  ;;  %v1890_v40 = vsel %vm704_vm5, %v4785_v2, 0.0 }
 0x7a2   : > { %v1840_v30 = vadd.f32 %v1839_v33, %v1838_v56  ;;  %v1849_v63 = vadd.f32 %v1848_v44, %v1847_v29  ;;  %v1866_v50 = vrot.slane %v1865_v17, 4  ;;  %v1891_v15 = vsel %vm704_vm5, %v4790_v8, 0.0 }
 0x7a3   : > { %v4868_v57 = vadd.f32 %v1816_v22, %v1815_v18  ;;  %v1899_v49 = vsel %vm704_vm5, %v4795_v53, 0.0  ;;  %v1892_v43 = vadd.f32 %v1891_v15, %v1890_v40  ;;  %v1917_v2 = vsel %vm704_vm5, %v4815_v6, 0.0 }
 0x7a4   : > { %v1841_v41 = vrot.slane %v1840_v30, 2  ;;  %v1850_v3 = vrot.slane %v1849_v63, 2  ;;  %v1867_v59 = vadd.f32 %v1866_v50, %v1865_v17  ;;  %v1927_v6 = vsel %vm704_vm5, %v4830_v13, 0.0 }
 0x7a8   : > { %v4710_v52 = vpop.eup %3050 }
 0x7a9   : > { %v2114_v7 = vsel %vm704_vm5, %v4710_v52, 0.0  ;;  %v4714_v51 = vpop.eup %3052 }
 0x7aa   : > { %2115 = vadd.xlane.f32.xlu0 %v2114_v7  ;;  %v2117_v31 = vsel %vm704_vm5, %v4714_v51, 0.0  ;;  %v4805_v7 = vmul.f32 %v5285_v42, %v4719_v45  ;;  %v1830_v42 = vrot.slane %v1829_v9, 4 }
 0x7ac   : > { %v1831_v62 = vadd.f32 %v1830_v42, %v1829_v9  ;;  %v1851_v9 = vadd.f32 %v1850_v3, %v1849_v63  ;;  %v1868_v42 = vrot.slane %v1867_v59, 2 }
 0x7ae   : > { %2118 = vadd.xlane.f32.xlu0 %v2117_v31  ;;  %v5286_v31 = vunpack.c.h.bf16 %v5284_v47  ;;  %v1821_v47 = vrot.slane %v1820_v28, 4  ;;  %v1832_v27 = vrot.slane %v1831_v62, 2  ;;  %v1852_v48 = vrot.slane %v1851_v9, 1 }
 0x7af   : > { %v1869_v33 = vadd.f32 %v1868_v42, %v1867_v59 }
 0x7b0   : > { %v4810_v54 = vmul.f32 %v5286_v31, %v4722_v39  ;;  %v1854_v31 = vsel %vm704_vm5, %v1787_v21, 0.0  ;;  %v1822_v26 = vadd.f32 %v1821_v47, %v1820_v28  ;;  %v1872_v21 = vsel %vm704_vm5, %v1791_v14, 0.0 }
 0x7b1   : > { %v1856_v60 = vadd.f32 %v1855_v46, %v1854_v31  ;;  %v1833_v36 = vadd.f32 %v1832_v27, %v1831_v62  ;;  %v1842_v28 = vadd.f32 %v1841_v41, %v1840_v30  ;;  %v1874_v32 = vadd.f32 %v1873_v20, %v1872_v21 }
 0x7b2   : > { %v1823_v5 = vrot.slane %v1822_v26, 2  ;;  %v1881_v46 = vsel %vm704_vm5, %v4775_v38, 0.0  ;;  %v1870_v38 = vrot.slane %v1869_v33, 1  ;;  %v1908_v27 = vsel %vm704_vm5, %v4805_v7, 0.0 }
 0x7b3   : > { %v1857_v16 = vrot.slane %v1856_v60, 4  ;;  %v1834_v58 = vrot.slane %v1833_v36, 1  ;;  %v1843_v0 = vrot.slane %v1842_v28, 1  ;;  %v1875_v29 = vrot.slane %v1874_v32, 4 }
 0x7b4   : > { %v1824_v35 = vadd.f32 %v1823_v5, %v1822_v26  ;;  %v4880_v26 = vadd.f32 %v1852_v48, %v1851_v9  ;;  %v1883_v62 = vadd.f32 %v1882_v61, %v1881_v46  ;;  %v1909_v63 = vsel %vm704_vm5, %v4810_v54, 0.0 }
 0x7b5   : > { %v1858_v34 = vadd.f32 %v1857_v16, %v1856_v60  ;;  %v4872_v56 = vadd.f32 %v1834_v58, %v1833_v36  ;;  %v4874_v25 = vadd.f32 %v1843_v0, %v1842_v28  ;;  %v1876_v60 = vadd.f32 %v1875_v29, %v1874_v32 }
 0x7b6   : > { %v1825_v23 = vrot.slane %v1824_v35, 1  ;;  %v1884_v30 = vrot.slane %v1883_v62, 4  ;;  %v1900_v16 = vsel %vm704_vm5, %v4800_v1, 0.0  ;;  %v4898_v8 = vadd.f32 %v1870_v38, %v1869_v33 }
 0x7b7   : > { %v1859_v11 = vrot.slane %v1858_v34, 2  ;;  %v1877_v5 = vrot.slane %v1876_v60, 2  ;;  %v1893_v21 = vrot.slane %v1892_v43, 4  ;;  %v1901_v18 = vadd.f32 %v1900_v16, %v1899_v49  ;;  %v3063_v16 = vld [vmem:[#allocation14] ss:$0 sm:$0xff] }
 0x7b8   : > { %v4870_v14 = vadd.f32 %v1825_v23, %v1824_v35  ;;  %v1885_v53 = vadd.f32 %v1884_v30, %v1883_v62  ;;  %v1910_v35 = vadd.f32 %v1909_v63, %v1908_v27  ;;  %v1918_v41 = vsel %vm704_vm5, %v4820_v10, 0.0 }
 0x7b9   : > { %v1860_v47 = vadd.f32 %v1859_v11, %v1858_v34  ;;  %v1878_v17 = vadd.f32 %v1877_v5, %v1876_v60  ;;  %v1926_v1 = vsel %vm704_vm5, %v4825_v12, 0.0  ;;  %v1894_v36 = vadd.f32 %v1893_v21, %v1892_v43 }
 0x7ba   : > { %v1886_v34 = vrot.slane %v1885_v53, 2  ;;  %v1919_v54 = vadd.f32 %v1918_v41, %v1917_v2  ;;  %v1902_v3 = vrot.slane %v1901_v18, 4  ;;  %v1911_v50 = vrot.slane %v1910_v35, 4 }
 0x7bb   : > { %v1861_v31 = vrot.slane %v1860_v47, 1  ;;  %v1879_v7 = vrot.slane %v1878_v17, 1  ;;  %v1935_v20 = vsel %vm704_vm5, %v4835_v24, 0.0  ;;  %v1895_v28 = vrot.slane %v1894_v36, 2 }
 0x7bc   : > { %v1887_v23 = vadd.f32 %v1886_v34, %v1885_v53  ;;  %v1920_v11 = vrot.slane %v1919_v54, 4  ;;  %v1903_v10 = vadd.f32 %v1902_v3, %v1901_v18  ;;  %v1912_v58 = vadd.f32 %v1911_v50, %v1910_v35 }
 0x7bd   : > { %v4882_v44 = vadd.f32 %v1861_v31, %v1860_v47  ;;  %v1880_v22 = vadd.f32 %v1879_v7, %v1878_v17  ;;  %v1928_v9 = vadd.f32 %v1927_v6, %v1926_v1  ;;  %v1936_v12 = vsel %vm704_vm5, %v4840_v4, 0.0 }
 0x7be   : > { %v1888_v59 = vrot.slane %v1887_v23, 1  ;;  %v1896_v32 = vadd.f32 %v1895_v28, %v1894_v36  ;;  %v1921_v0 = vadd.f32 %v1920_v11, %v1919_v54  ;;  %v1937_v47 = vadd.f32 %v1936_v12, %v1935_v20 }
 0x7bf   : > { %v1904_v48 = vrot.slane %v1903_v10, 2  ;;  %v1913_v42 = vrot.slane %v1912_v58, 2  ;;  %v1929_v13 = vrot.slane %v1928_v9, 4  ;;  %v1944_v24 = vsel %vm704_vm5, %v4845_v19, 0.0 }
 0x7c0   : > { %v1889_v29 = vadd.f32 %v1888_v59, %v1887_v23  ;;  %v1897_v31 = vrot.slane %v1896_v32, 1  ;;  %v1922_v46 = vrot.slane %v1921_v0, 2  ;;  %v1938_v61 = vrot.slane %v1937_v47, 4 }
 0x7c1   : > { %v1905_v33 = vadd.f32 %v1904_v48, %v1903_v10  ;;  %v1914_v60 = vadd.f32 %v1913_v42, %v1912_v58  ;;  %v1930_v62 = vadd.f32 %v1929_v13, %v1928_v9  ;;  %v1945_v4 = vsel %vm704_vm5, %v4850_v55, 0.0 }
 0x7c2   : > { %v1898_v40 = vadd.f32 %v1897_v31, %v1896_v32  ;;  %v1923_v15 = vadd.f32 %v1922_v46, %v1921_v0  ;;  %v1939_v49 = vadd.f32 %v1938_v61, %v1937_v47  ;;  %v1946_v38 = vadd.f32 %v1945_v4, %v1944_v24 }
 0x7c3   : > { %v1906_v5 = vrot.slane %v1905_v33, 1  ;;  %v1915_v30 = vrot.slane %v1914_v60, 1  ;;  %v1931_v43 = vrot.slane %v1930_v62, 2  ;;  %v1953_v19 = vadd.f32 %v3063_v16, %v4868_v57 }
 0x7c4   : > { %v1924_v27 = vrot.slane %v1923_v15, 1  ;;  %v1940_v63 = vrot.slane %v1939_v49, 2  ;;  %v1947_v2 = vrot.slane %v1946_v38, 4  ;;  %v1954_v17 = vadd.f32 %v3063_v16, %v4870_v14 }
 0x7c5   : > { %v1907_v53 = vadd.f32 %v1906_v5, %v1905_v33  ;;  %v1916_v21 = vadd.f32 %v1915_v30, %v1914_v60  ;;  %v1932_v18 = vadd.f32 %v1931_v43, %v1930_v62  ;;  %v1955_v55 = vadd.f32 %v3063_v16, %v4872_v56 }
 0x7c6   : > { %v1925_v35 = vadd.f32 %v1924_v27, %v1923_v15  ;;  %v1941_v41 = vadd.f32 %v1940_v63, %v1939_v49  ;;  %v1948_v1 = vadd.f32 %v1947_v2, %v1946_v38  ;;  %v1956_v7 = vadd.f32 %v3063_v16, %v4874_v25 }
 0x7c7   : > { %v1933_v34 = vrot.slane %v1932_v18, 1  ;;  %v1957_v36 = vadd.f32 %v3063_v16, %v4880_v26  ;;  %v1958_v57 = vadd.f32 %v3063_v16, %v4882_v44  ;;  %v1959_v54 = vadd.f32 %v3063_v16, %v4898_v8 }
 0x7c8   : > { %v1942_v3 = vrot.slane %v1941_v41, 1  ;;  %v1949_v50 = vrot.slane %v1948_v1, 2  ;;  %v1960_v14 = vadd.f32 %v3063_v16, %v1880_v22  ;;  %v1961_v6 = vadd.f32 %v3063_v16, %v1889_v29 }
 0x7c9   : > { %v1934_v20 = vadd.f32 %v1933_v34, %v1932_v18  ;;  %v1962_v23 = vadd.f32 %v3063_v16, %v1898_v40  ;;  %v1963_v28 = vadd.f32 %v3063_v16, %v1907_v53  ;;  %v1964_v56 = vadd.f32 %v3063_v16, %v1916_v21 }
 0x7ca   : > { %v1943_v11 = vadd.f32 %v1942_v3, %v1941_v41  ;;  %v1950_v10 = vadd.f32 %v1949_v50, %v1948_v1  ;;  %v1965_v58 = vadd.f32 %v3063_v16, %v1925_v35  ;;  %v2140_v9 = vrot.slane %v1954_v17, 7 }
 0x7cb   : > { %v1966_v25 = vadd.f32 %v3063_v16, %v1934_v20  ;;  %v2142_v12 = vrot.slane %v1955_v55, 6  ;;  %v2144_v59 = vrot.slane %v1956_v7, 5  ;;  %v2146_v26 = vrot.slane %v1957_v36, 4 }
 0x7cc   : > { %v1951_v32 = vrot.slane %v1950_v10, 1  ;;  %v1967_v44 = vadd.f32 %v3063_v16, %v1943_v11  ;;  %v2141_v8 = vsel %vm1163_vm7, %v2140_v9, %v1953_v19  ;;  %v2148_v0 = vrot.slane %v1958_v57, 3 }
 0x7cd   : > { %v2143_v22 = vsel %vm1166_vm8, %v2142_v12, %v2141_v8  ;;  %v2150_v47 = vrot.slane %v1959_v54, 2  ;;  %v2152_v48 = vrot.slane %v1960_v14, 1  ;;  %v2154_v42 = vrot.slane %v1962_v23, 7 }
 0x7ce   : > { %v1952_v13 = vadd.f32 %v1951_v32, %v1950_v10  ;;  %v2145_v24 = vsel %vm1169_vm9, %v2144_v59, %v2143_v22  ;;  %v2156_v29 = vrot.slane %v1963_v28, 6  ;;  %v2158_v31 = vrot.slane %v1964_v56, 5 }
 0x7cf   : > { %v2147_v46 = vsel %vm1172_vm10, %v2146_v26, %v2145_v24  ;;  %v2155_v61 = vsel %vm1163_vm7, %v2154_v42, %v1961_v6  ;;  %v2160_v33 = vrot.slane %v1965_v58, 4  ;;  %v2162_v60 = vrot.slane %v1966_v25, 3 }
 0x7d0   : > { %v1968_v62 = vadd.f32 %v3063_v16, %v1952_v13  ;;  %v2149_v4 = vsel %vm1175_vm11, %v2148_v0, %v2147_v46  ;;  %v2157_v40 = vsel %vm1166_vm8, %v2156_v29, %v2155_v61  ;;  %v2164_v15 = vrot.slane %v1967_v44, 2 }
 0x7d1   : > { %v2151_v49 = vsel %vm1178_vm12, %v2150_v47, %v2149_v4  ;;  %v2159_v38 = vsel %vm1169_vm9, %v2158_v31, %v2157_v40 }
 0x7d2   : > { %v2161_v5 = vsel %vm1172_vm10, %v2160_v33, %v2159_v38  ;;  %v2166_v30 = vrot.slane %v1968_v62, 1  ;;  %v2153_v43 = vsel %vm1181_vm13, %v2152_v48, %v2151_v49 }
 0x7d3   : > { %v2163_v19 = vsel %vm1175_vm11, %v2162_v60, %v2161_v5 }
 0x7d4   : > { %v2165_v27 = vsel %vm1178_vm12, %v2164_v15, %v2163_v19 }
 0x7d5   : > { %v2167_v16 = vsel %vm1181_vm13, %v2166_v30, %v2165_v27 }
 0x7d6   : > { %v2842_v63 = vpack.c.bf16 %v2167_v16, %v2153_v43 }
 0x7d8   : > { %2843 = vmatprep.subr.bf16.mxu0 %v2842_v63 }
 0x7d9   : > { %2845 = vmatpush3.bf16.msra.mxu0 %v2842_v63 }
 0x837   : > { %v2116_v2 = vpop.xlane.xlu0 %2115 }
 0x838   : > { %3054 = vrcp.f32 %v2116_v2 }
 0x83b   : > { %v2119_v17 = vpop.xlane.xlu0 %2118 }
 0x83c   : > { %3056 = vrcp.f32 %v2119_v17 }
 0x842   : > { %v3055_v53 = vpop.eup %3054 }
 0x843   : > { %v2121_v21 = vmul.f32 %v3055_v53, %v4710_v52 }
 0x845   : > { %2817 = vmatprep.mubr.msk.f32.mxu0 %vm704_vm5, %v2121_v21 }
 0x846   : > { %v3057_v18 = vpop.eup %3056 }
 0x847   : > { %v2123_v55 = vmul.f32 %v3057_v18, %v4714_v51 }
 0x849   : > { %2818 = vmatmul.mubr.msk.f32.vlgmr.msra.gmra.mrb[6].mxu0 %vm704_vm5, %v2123_v55 }
 0x91c   : > { %v2819_v35 = vpop.f32.mrb[6].mxu0 }
 0x91d   : > { %v2252_v41 = vmax.f32 %v2819_v35, 0.0  ;;  %v2242_v1 = vpop.f32.mrb[7].mxu0 }
 0x91e   : > { %v2251_v7 = vmax.f32 %v2242_v1, 0.0 }
 0x920   : > { %v2253_v34 = vpack.c.bf16 %v2252_v41, %v2251_v7 }
 0x922   : > { %2823 = vmatmul.mubr.msk.bf16.vlgmr.msra.gmra.mrb[8].mxu1 %vm704_vm5, %v2253_v34 }
 0x9f5   : > { %v2291_v36 = vpop.f32.mrb[8].mxu1 }
 0x9f6   : > { %v2292_v52 = vadd.f32 %v4690_v37, %v2291_v36  ;;  %v2824_v57 = vpop.f32.mrb[9].mxu1 }
 0x9f7   : > { %v2294_v54 = vpop.f32.mrb[10].mxu1 }
 0x9f8   : > { %v2298_v51 = vadd.f32 %v2292_v52, %v4719_v45  ;;  %v2295_v3 = vadd.f32 %v4690_v37, %v2294_v54  ;;  %v2825_v50 = vpop.f32.mrb[11].mxu1 }
 0x9fa   : > { %v2590_v14 = vpack.c.bf16 %v2298_v51, %v2298_v51  ;;  %v2299_v6 = vadd.f32 %v2295_v3, %v4722_v39 }
 0x9fc   : > { %v2304_v20 = vrot.slane %v2590_v14, 6  ;;  %v2300_v23 = vpack.c.bf16 %v2299_v6, %v2298_v51  ;;  %v2591_v28 = vpack.c.bf16 %v2299_v6, %v2299_v6 }
 0x9fe   : > { %2306 = vst.msk [vmem:[%s4698_s22] sm:$0xc] %vm670_vm3, %v2304_v20  ;;  %2578 = vst.msk [vmem:[%s4698_s22 + $0x4] sm:$0xc] %vm670_vm3, %v2300_v23  ;;  %v2310_v37 = vrot.slane %v2591_v28, 6 }
 0x9ff   : > { %2581 = vst.msk [vmem:[%s4698_s22 + $0xc] sm:$0xc] %vm670_vm3, %v2591_v28 }
 0xa00   : > { %2580 = vst.msk [vmem:[%s4698_s22 + $0x8] sm:$0xc] %vm670_vm3, %v2310_v37 }
 0xa01   : > { %3359 = shalt.err (!%p3356_p1)
}
 0xa02   : > { %s3360_s22 = scalar_lea.hbm %s4958_s6, 256  ;;  %s3364_s12 = scalar_lea.hbm %s5302_s5, 1024 }
 0xa03   : > { %p3361_p11 = scmp.ne.s32.totalorder %s4958_s6, %s3360_s22  ;;  %p3365_p0 = scmp.lt.u32.totalorder %s4958_s6, %s5302_s5 }
 0xa04   : > { %p3366_p3 = scmp.lt.u32.totalorder %s3364_s12, %s3360_s22  ;;  %p3368_p4 = scmp.lt.u32.totalorder %s3360_s22, %s4958_s6 }
 0xa05   : > { %p3362_p12 = pnand %p3361_p11, %p5303_p8 }
 0xa06   : > { %p3367_p6 = por %p3366_p3, %p3365_p0 }
 0xa07   : > { %p3363_p13 = pneg %p3362_p12 }
 0xa08   : > { %p3369_p7 = por %p3368_p4, %p3367_p6 }
 0xa0a   : > { %p3370_p5 = pnand %p3369_p7, %p3363_p13 }
 0xa0c   : > { %3373 = shalt.err (!%p3370_p5)
}
 0xa0d   : > { %s3484_s17 = smov 64   ;;  %s3485_s29 = smov 4  }
 0xa0e   : > { %2884 = dma.vmem_to_hbm [thread:$0]  (%p5303_p8), %s4947_s30, 256, %s4958_s6, %s2316_s3, %s3484_s17, %s3484_s17, %s3485_s29  }
 0xa0f PF: > { %p2941_p2 = scmp.ge.s32.totalorder %s3464_s20, 2  ;;  %s2346_s24 = sand.u32 1, %s3436_s13  }
 0xa10   : > { %p5304_p9 = scmp.ne.s32.totalorder %s5160_s28, 0  ;;  %s2347_s25 = scalar_lea.sflag [#allocation5], %s2346_s24 }
 0xa12   : > { %p2919_p10 = pnand %p2941_p2, %p5304_p9 }
 0xa14   : > { %3431 = dma.done.wait (!%p2919_p10), %s2347_s25, 256  }
 0xa15   : > { %3433 = vsyncadd (!%p2919_p10), %s2347_s25, 4294967040  ;;  %s31_s20 = sadd.s32 1, %s3464_s20   ;;  %s5305_s13 = smov %s3440_s14 }
 0xa16   : > { %p28_p1 = scmp.ge.s32.totalorder %s31_s20, 6   ;;  %s5306_s14 = smov %s3444_s15 }
 0xa17   : > { %s5307_s15 = smov %s3855_s27  ;;  %s5308_s16 = smov %s3456_s18 }
 0xa18   : > { %s5309_s17 = smov %s3460_s19  ;;  %s5310_s18 = smov %s5313_s10 }
 0xa19   : > { %s5311_s19 = smov %s5317_s26  ;;  %30 = sbr.rel (!%p28_p1) target bundleno = 21 (0x15), region = 147 }
 0xa20   :  { %2352 = vsyncpa [#allocation4], 1 }
 0xa21   :  { %2354 = vsyncpa [#allocation4 + $0x1], 1 }
 0xa22   :  { %2355 = vsyncpa [#allocation7], 1 }
 0xa23   :  { %2356 = vsyncpa [#allocation10], 1 }
 0xa24   :  { %2357 = vsyncpa [#allocation13], 1 }
 0xa25   :  { %2358 = vsyncpa [#allocation16], 1 }
 0xa26   :  { %2359 = vsyncpa [#allocation19], 1 }
 0xa27   :  { %2360 = vsyncpa [#allocation5], 1 }
 0xa28   :  { %2362 = vsyncpa [#allocation5 + $0x1], 1 }

</bundles_post_ra>
